<compile_context>
chip_gen: v7x
topology: tpu7x:2x2x1
jax: 0.10.0
libtpu: 0.0.40
codegen_flags: <defaults>
</compile_context>

<pallas_src>
import functools

import jax
import jax.numpy as jnp
from jax.experimental import pallas as pl
from jax.experimental.pallas import tpu as pltpu


def _round_up(x, m):
    return (x + m - 1) // m * m


# ---------------------------------------------------------------------------
# Fast path: the whole forward in a single grid-less invocation.
# Batch is folded into the matmul M dimension; padded points are edge
# replicas of valid points so the per-batch max is exact without masking.
# ---------------------------------------------------------------------------
def _fused_single_step_kernel(x_ref, w1_ref, b1_ref, w2_ref, b2_ref, w3_ref,
                              b3_ref, wf1_ref, bf1_ref, wf2_ref, bf2_ref,
                              wf3_ref, bf3_ref, out_ref, *, batch,
                              rows_per_batch):
    x = x_ref[...]                                           # (B*Np, cin_pad) bf16

    # conv1 + ReLU (bf16 MXU inputs, f32 accumulate / elementwise)
    h1 = jnp.dot(x, w1_ref[...], preferred_element_type=jnp.float32) + b1_ref[...]
    h1 = jnp.maximum(h1, 0.0)
    # conv2 + ReLU
    h2 = jnp.dot(h1.astype(w2_ref.dtype), w2_ref[...],
                 preferred_element_type=jnp.float32) + b2_ref[...]
    h2 = jnp.maximum(h2, 0.0)
    # conv3 (no activation before the pool)
    h3 = jnp.dot(h2.astype(w3_ref.dtype), w3_ref[...],
                 preferred_element_type=jnp.float32) + b3_ref[...]

    # Global max pool per batch; rows_per_batch is a multiple of 8 so this
    # reshape only regroups whole sublane tiles (free relayout).
    h3 = h3.reshape(batch, rows_per_batch, h3.shape[-1])
    pooled = jnp.max(h3, axis=1)                             # (B, l3) f32

    # Fused FC head: fc1 -> relu -> fc2 -> relu -> fc3 (dropout p=0 -> identity).
    f1 = jnp.dot(pooled.astype(wf1_ref.dtype), wf1_ref[...],
                 preferred_element_type=jnp.float32) + bf1_ref[...]
    f1 = jnp.maximum(f1, 0.0)
    f2 = jnp.dot(f1.astype(wf2_ref.dtype), wf2_ref[...],
                 preferred_element_type=jnp.float32) + bf2_ref[...]
    f2 = jnp.maximum(f2, 0.0)
    out_ref[...] = jnp.dot(f2.astype(wf3_ref.dtype), wf3_ref[...],
                           preferred_element_type=jnp.float32) + bf3_ref[...]


# ---------------------------------------------------------------------------
# Tiled path: conv stack + running max pool + fused FC head on the last tile.
# Grid = (batch, point-tiles); the pooled scratch is the running-max
# accumulator, the output block is resident across the point-tile axis and
# only written on the final tile.
# ---------------------------------------------------------------------------
def _conv_pool_head_kernel(x_ref, w1_ref, b1_ref, w2_ref, b2_ref, w3_ref,
                           b3_ref, wf1_ref, bf1_ref, wf2_ref, bf2_ref,
                           wf3_ref, bf3_ref, out_ref, pooled_sc):
    n = pl.program_id(1)

    @pl.when(n == 0)
    def _init():
        pooled_sc[...] = jnp.full_like(pooled_sc, -jnp.inf)

    x = x_ref[0]                                             # (tile_n, cin_pad) bf16

    h1 = jnp.dot(x, w1_ref[...], preferred_element_type=jnp.float32) + b1_ref[...]
    h1 = jnp.maximum(h1, 0.0)
    h2 = jnp.dot(h1.astype(w2_ref.dtype), w2_ref[...],
                 preferred_element_type=jnp.float32) + b2_ref[...]
    h2 = jnp.maximum(h2, 0.0)
    h3 = jnp.dot(h2.astype(w3_ref.dtype), w3_ref[...],
                 preferred_element_type=jnp.float32) + b3_ref[...]

    # Padded points are edge replicas of valid points -> no masking needed.
    pooled_sc[...] = jnp.maximum(pooled_sc[...],
                                 jnp.max(h3, axis=0, keepdims=True))

    @pl.when(n == pl.num_programs(1) - 1)
    def _head():
        pooled = pooled_sc[...]                              # (1, l3) f32
        f1 = jnp.dot(pooled.astype(wf1_ref.dtype), wf1_ref[...],
                     preferred_element_type=jnp.float32) + bf1_ref[...]
        f1 = jnp.maximum(f1, 0.0)
        f2 = jnp.dot(f1.astype(wf2_ref.dtype), wf2_ref[...],
                     preferred_element_type=jnp.float32) + bf2_ref[...]
        f2 = jnp.maximum(f2, 0.0)
        out_ref[0] = jnp.dot(f2.astype(wf3_ref.dtype), wf3_ref[...],
                             preferred_element_type=jnp.float32) + bf3_ref[...]


# ---------------------------------------------------------------------------
# Parameter pre-packing (done ONCE, outside the per-call path):
# pad conv1 input rows to a multiple of 8, fc3 output cols to a multiple of
# 128 (lane-dense output), cast weights to bf16, keep biases f32.
# ---------------------------------------------------------------------------
def pack_params(params, compute_dtype=jnp.bfloat16):
    cin = params["w1"].shape[0]
    out_dim = params["wf3"].shape[1]
    cin_pad = _round_up(cin, 8)
    out_pad = _round_up(out_dim, 128)

    def wpad(a, rows=None, cols=None):
        rp = 0 if rows is None else rows - a.shape[0]
        cp = 0 if cols is None else cols - a.shape[1]
        if rp or cp:
            a = jnp.pad(a, ((0, rp), (0, cp)))
        return a.astype(compute_dtype)

    def bpad(a, cols=None):
        cp = 0 if cols is None else cols - a.shape[1]
        if cp:
            a = jnp.pad(a, ((0, 0), (0, cp)))
        return a.astype(jnp.float32)

    packed = {
        "w1": wpad(params["w1"], rows=cin_pad), "b1": bpad(params["b1"]),
        "w2": wpad(params["w2"]),               "b2": bpad(params["b2"]),
        "w3": wpad(params["w3"]),               "b3": bpad(params["b3"]),
        "wf1": wpad(params["wf1"]),             "bf1": bpad(params["bf1"]),
        "wf2": wpad(params["wf2"]),             "bf2": bpad(params["bf2"]),
        "wf3": wpad(params["wf3"], cols=out_pad),
        "bf3": bpad(params["bf3"], cols=out_pad),
    }
    return packed, out_dim


# ---------------------------------------------------------------------------
# Forward wrapper
# ---------------------------------------------------------------------------
def pointnet_forward(x_ncw, packed, *, out_dim, tile_n_max=1024,
                     small_rows_max=1024, compute_dtype=jnp.bfloat16,
                     vmem_limit_bytes=48 * 1024 * 1024):
    """x_ncw: (B, Cin, N_points) f32 (PyTorch NCW). Returns (B, out_dim) f32."""
    B, cin, n_pts = x_ncw.shape
    cin_pad = _round_up(cin, 8)
    l1 = packed["w1"].shape[1]
    l2 = packed["w2"].shape[1]
    l3 = packed["w3"].shape[1]
    l4 = packed["wf1"].shape[1]
    l5 = packed["wf2"].shape[1]
    out_pad = packed["wf3"].shape[1]

    weight_args = (packed["w1"], packed["b1"], packed["w2"], packed["b2"],
                   packed["w3"], packed["b3"], packed["wf1"], packed["bf1"],
                   packed["wf2"], packed["bf2"], packed["wf3"], packed["bf3"])
    weight_bytes = sum(int(a.size) * a.dtype.itemsize for a in weight_args)

    full_vmem = pl.BlockSpec(memory_space=pltpu.MemorySpace.VMEM)

    def cost(total_rows):
        flops = (2 * total_rows * (cin_pad * l1 + l1 * l2 + l2 * l3)
                 + 2 * B * (l3 * l4 + l4 * l5 + l5 * out_pad))
        bytes_accessed = (total_rows * cin_pad * 2 + weight_bytes
                          + B * out_pad * 4)
        return pl.CostEstimate(flops=flops, transcendentals=0,
                               bytes_accessed=bytes_accessed)

    # ---- layout plumbing (all folded into the jitted forward) --------------
    # NCW -> (B, N, Cin); channels zero-padded (w1's extra rows are zero),
    # points edge-replicated so the max pool needs no mask.
    x = jnp.transpose(x_ncw, (0, 2, 1))
    x = jnp.pad(x, ((0, 0), (0, 0), (0, cin_pad - cin)))

    rows_small = _round_up(n_pts, 8)

    if B * rows_small <= small_rows_max:
        # ---------------- single-shot fused fast path -----------------------
        n_pad = rows_small
        if n_pad != n_pts:
            x = jnp.pad(x, ((0, 0), (0, n_pad - n_pts), (0, 0)), mode="edge")
        x = x.reshape(B * n_pad, cin_pad).astype(compute_dtype)

        kernel = functools.partial(_fused_single_step_kernel,
                                   batch=B, rows_per_batch=n_pad)
        out = pl.pallas_call(
            kernel,
            out_shape=jax.ShapeDtypeStruct((B, out_pad), jnp.float32),
            in_specs=[full_vmem] * 13,
            out_specs=full_vmem,
            compiler_params=pltpu.CompilerParams(
                vmem_limit_bytes=32 * 1024 * 1024),
            cost_estimate=cost(B * n_pad),
        )(x, *weight_args)
        return out[:, :out_dim]

    # -------------------- tiled path (large point clouds) -------------------
    tile_n = _round_up(min(tile_n_max, n_pts), 8)      # always a multiple of 8
    n_pad = _round_up(n_pts, tile_n)
    n_tiles = n_pad // tile_n
    if n_pad != n_pts:
        x = jnp.pad(x, ((0, 0), (0, n_pad - n_pts), (0, 0)), mode="edge")
    x = x.astype(compute_dtype)

    out = pl.pallas_call(
        _conv_pool_head_kernel,
        out_shape=jax.ShapeDtypeStruct((B, 1, out_pad), jnp.float32),
        grid=(B, n_tiles),
        in_specs=[pl.BlockSpec((1, tile_n, cin_pad), lambda bi, ni: (bi, ni, 0))]
                 + [full_vmem] * 12,
        out_specs=pl.BlockSpec((1, 1, out_pad), lambda bi, ni: (bi, 0, 0)),
        scratch_shapes=[pltpu.VMEM((1, l3), jnp.float32)],
        compiler_params=pltpu.CompilerParams(
            dimension_semantics=("parallel", "arbitrary"),
            vmem_limit_bytes=vmem_limit_bytes),
        cost_estimate=cost(B * n_pad),
    )(x, *weight_args)
    return out.reshape(B, out_pad)[:, :out_dim]


# ---------------------------------------------------------------------------
# Parameters (weights stored (in_features, out_features) so every layer is
# x @ W + b; matches Conv1d-kernel-1 / Linear semantics of the module).
# ---------------------------------------------------------------------------
def make_params(key, cin=6, l1=64, l2=128, l3=1024, l4=512, l5=512, out=323):
    ks = jax.random.split(key, 12)
    def w(k, i, o):
        return jax.random.normal(k, (i, o), jnp.float32) * 0.05
    def b(k, o):
        return jax.random.normal(k, (1, o), jnp.float32) * 0.05
    return {
        "w1": w(ks[0], cin, l1),  "b1": b(ks[1], l1),
        "w2": w(ks[2], l1, l2),   "b2": b(ks[3], l2),
        "w3": w(ks[4], l2, l3),   "b3": b(ks[5], l3),
        "wf1": w(ks[6], l3, l4),  "bf1": b(ks[7], l4),
        "wf2": w(ks[8], l4, l5),  "bf2": b(ks[9], l5),
        "wf3": w(ks[10], l5, out), "bf3": b(ks[11], out),
    }


# ---------------------------------------------------------------------------
# References
# ---------------------------------------------------------------------------
def reference_forward(x_ncw, p):
    """Pure-JAX f32 reference reproducing the PyTorch forward (default flags)."""
    x = jnp.transpose(x_ncw, (0, 2, 1))
    h1 = jnp.maximum(jnp.einsum("bnc,cf->bnf", x, p["w1"]) + p["b1"], 0.0)
    h2 = jnp.maximum(jnp.einsum("bnc,cf->bnf", h1, p["w2"]) + p["b2"], 0.0)
    h3 = jnp.einsum("bnc,cf->bnf", h2, p["w3"]) + p["b3"]
    pooled = jnp.max(h3, axis=1)
    f1 = jnp.maximum(pooled @ p["wf1"] + p["bf1"], 0.0)
    f2 = jnp.maximum(f1 @ p["wf2"] + p["bf2"], 0.0)
    return f2 @ p["wf3"] + p["bf3"]


def matched_reference_forward(x_ncw, p, compute_dtype=jnp.bfloat16):
    """Reference with the same mixed precision as the kernel (bf16 MXU, f32 acc)."""
    c = lambda a: a.astype(compute_dtype)
    pe = dict(preferred_element_type=jnp.float32)
    x = jnp.transpose(x_ncw, (0, 2, 1)).astype(compute_dtype)
    h1 = jnp.maximum(jnp.einsum("bnc,cf->bnf", x, c(p["w1"]), **pe) + p["b1"], 0.0)
    h2 = jnp.maximum(jnp.einsum("bnc,cf->bnf", c(h1), c(p["w2"]), **pe) + p["b2"], 0.0)
    h3 = jnp.einsum("bnc,cf->bnf", c(h2), c(p["w3"]), **pe) + p["b3"]
    pooled = jnp.max(h3, axis=1)
    f1 = jnp.maximum(jnp.dot(c(pooled), c(p["wf1"]), **pe) + p["bf1"], 0.0)
    f2 = jnp.maximum(jnp.dot(c(f1), c(p["wf2"]), **pe) + p["bf2"], 0.0)
    return jnp.dot(c(f2), c(p["wf3"]), **pe) + p["bf3"]


if __name__ == "__main__":
    key = jax.random.PRNGKey(0)
    k_x, k_p, k_x2 = jax.random.split(key, 3)

    # Module defaults for liquid='Ar': Conv1d(6,64)/(64,128)/(128,1024),
    # Linear(1024,512)/(512,512)/(512,323); 56 points per sample.
    B, CIN, NPTS = 2, 6, 56
    params = make_params(k_p, cin=CIN, l1=64, l2=128, l3=1024, l4=512, l5=512,
                         out=323)
    packed, out_dim = pack_params(params)          # pre-packed once, reused

    fwd = jax.jit(functools.partial(pointnet_forward, out_dim=out_dim))

    # --- default (small) shape: exercises the single-shot fused path --------
    x_ncw = jax.random.normal(k_x, (B, CIN, NPTS), jnp.float32)  # PyTorch NCW
    out = jax.block_until_ready(fwd(x_ncw, packed))
    assert out.shape == (B, 323), out.shape

    ref_matched = jax.block_until_ready(matched_reference_forward(x_ncw, params))
    ref_f32 = jax.block_until_ready(reference_forward(x_ncw, params))
    assert jnp.allclose(out, ref_matched, rtol=2e-3, atol=2e-3), \
        float(jnp.max(jnp.abs(out - ref_matched)))
    assert jnp.allclose(out, ref_f32, rtol=5e-2, atol=5e-2), \
        float(jnp.max(jnp.abs(out - ref_f32)))

    # --- large point cloud: exercises the tiled conv+pool+head path ---------
    NPTS_BIG = 2500
    x_big = jax.random.normal(k_x2, (B, CIN, NPTS_BIG), jnp.float32)
    out_big = jax.block_until_ready(fwd(x_big, packed))
    ref_big = jax.block_until_ready(matched_reference_forward(x_big, params))
    assert out_big.shape == (B, 323), out_big.shape
    assert jnp.allclose(out_big, ref_big, rtol=2e-3, atol=2e-3), \
        float(jnp.max(jnp.abs(out_big - ref_big)))

    print("KERNEL_OK")
</pallas_src>

<mosaic_0001>
module attributes {stable_mosaic.version = 11 : i64} {
  func.func @_fused_single_step_kernel(%arg0: memref<112x8xbf16, #tpu.memory_space<vmem>>, %arg1: memref<8x64xbf16, #tpu.memory_space<vmem>>, %arg2: memref<1x64xf32, #tpu.memory_space<vmem>>, %arg3: memref<64x128xbf16, #tpu.memory_space<vmem>>, %arg4: memref<1x128xf32, #tpu.memory_space<vmem>>, %arg5: memref<128x1024xbf16, #tpu.memory_space<vmem>>, %arg6: memref<1x1024xf32, #tpu.memory_space<vmem>>, %arg7: memref<1024x512xbf16, #tpu.memory_space<vmem>>, %arg8: memref<1x512xf32, #tpu.memory_space<vmem>>, %arg9: memref<512x512xbf16, #tpu.memory_space<vmem>>, %arg10: memref<1x512xf32, #tpu.memory_space<vmem>>, %arg11: memref<512x384xbf16, #tpu.memory_space<vmem>>, %arg12: memref<1x384xf32, #tpu.memory_space<vmem>>, %arg13: memref<2x384xf32, #tpu.memory_space<vmem>>) attributes {dimension_semantics = [], scalar_prefetch = 0 : i64, scratch_operands = 0 : i64, tpu.core_type = #tpu.core_type<tc>} {
    %c0 = arith.constant 0 : index
    %c0_0 = arith.constant 0 : index
    %0 = vector.load %arg0[%c0, %c0_0] : memref<112x8xbf16, #tpu.memory_space<vmem>>, vector<112x8xbf16>
    %c0_1 = arith.constant 0 : index
    %c0_2 = arith.constant 0 : index
    %1 = vector.load %arg1[%c0_1, %c0_2] : memref<8x64xbf16, #tpu.memory_space<vmem>>, vector<8x64xbf16>
    %cst = arith.constant dense<0.000000e+00> : vector<112x64xf32>
    %2 = tpu.matmul %0, %1, %cst {dimension_numbers = #tpu.dot_dimension_numbers<[1], [0], [0], [1], [0, 0, 1, 1], [], []>} : vector<112x8xbf16>, vector<8x64xbf16>, vector<112x64xf32> -> vector<112x64xf32>
    %c0_3 = arith.constant 0 : index
    %c0_4 = arith.constant 0 : index
    %3 = vector.load %arg2[%c0_3, %c0_4] : memref<1x64xf32, #tpu.memory_space<vmem>>, vector<1x64xf32>
    %4 = vector.broadcast %3 : vector<1x64xf32> to vector<112x64xf32>
    %5 = arith.addf %2, %4 : vector<112x64xf32>
    %cst_5 = arith.constant 0.000000e+00 : f32
    %6 = vector.broadcast %cst_5 : f32 to vector<112x64xf32>
    %7 = arith.maximumf %5, %6 : vector<112x64xf32>
    %8 = arith.truncf %7 : vector<112x64xf32> to vector<112x64xbf16>
    %c0_6 = arith.constant 0 : index
    %c0_7 = arith.constant 0 : index
    %9 = vector.load %arg3[%c0_6, %c0_7] : memref<64x128xbf16, #tpu.memory_space<vmem>>, vector<64x128xbf16>
    %cst_8 = arith.constant dense<0.000000e+00> : vector<112x128xf32>
    %10 = tpu.matmul %8, %9, %cst_8 {dimension_numbers = #tpu.dot_dimension_numbers<[1], [0], [0], [1], [0, 0, 1, 1], [], []>} : vector<112x64xbf16>, vector<64x128xbf16>, vector<112x128xf32> -> vector<112x128xf32>
    %c0_9 = arith.constant 0 : index
    %c0_10 = arith.constant 0 : index
    %11 = vector.load %arg4[%c0_9, %c0_10] : memref<1x128xf32, #tpu.memory_space<vmem>>, vector<1x128xf32>
    %12 = vector.broadcast %11 : vector<1x128xf32> to vector<112x128xf32>
    %13 = arith.addf %10, %12 : vector<112x128xf32>
    %cst_11 = arith.constant 0.000000e+00 : f32
    %14 = vector.broadcast %cst_11 : f32 to vector<112x128xf32>
    %15 = arith.maximumf %13, %14 : vector<112x128xf32>
    %16 = arith.truncf %15 : vector<112x128xf32> to vector<112x128xbf16>
    %c0_12 = arith.constant 0 : index
    %c0_13 = arith.constant 0 : index
    %17 = vector.load %arg5[%c0_12, %c0_13] : memref<128x1024xbf16, #tpu.memory_space<vmem>>, vector<128x1024xbf16>
    %cst_14 = arith.constant dense<0.000000e+00> : vector<112x1024xf32>
    %18 = tpu.matmul %16, %17, %cst_14 {dimension_numbers = #tpu.dot_dimension_numbers<[1], [0], [0], [1], [0, 0, 1, 1], [], []>} : vector<112x128xbf16>, vector<128x1024xbf16>, vector<112x1024xf32> -> vector<112x1024xf32>
    %c0_15 = arith.constant 0 : index
    %c0_16 = arith.constant 0 : index
    %19 = vector.load %arg6[%c0_15, %c0_16] : memref<1x1024xf32, #tpu.memory_space<vmem>>, vector<1x1024xf32>
    %20 = vector.broadcast %19 : vector<1x1024xf32> to vector<112x1024xf32>
    %21 = arith.addf %18, %20 : vector<112x1024xf32>
    %22 = vector.shape_cast %21 : vector<112x1024xf32> to vector<2x56x1024xf32>
    %cst_17 = arith.constant dense<0xFF800000> : vector<2x1024xf32>
    %23 = vector.multi_reduction <maximumf>, %22, %cst_17 [1] : vector<2x56x1024xf32> to vector<2x1024xf32>
    %24 = arith.truncf %23 : vector<2x1024xf32> to vector<2x1024xbf16>
    %c0_18 = arith.constant 0 : index
    %c0_19 = arith.constant 0 : index
    %25 = vector.load %arg7[%c0_18, %c0_19] : memref<1024x512xbf16, #tpu.memory_space<vmem>>, vector<1024x512xbf16>
    %cst_20 = arith.constant dense<0.000000e+00> : vector<2x512xf32>
    %26 = tpu.matmul %24, %25, %cst_20 {dimension_numbers = #tpu.dot_dimension_numbers<[1], [0], [0], [1], [0, 0, 1, 1], [], []>} : vector<2x1024xbf16>, vector<1024x512xbf16>, vector<2x512xf32> -> vector<2x512xf32>
    %c0_21 = arith.constant 0 : index
    %c0_22 = arith.constant 0 : index
    %27 = vector.load %arg8[%c0_21, %c0_22] : memref<1x512xf32, #tpu.memory_space<vmem>>, vector<1x512xf32>
    %28 = vector.broadcast %27 : vector<1x512xf32> to vector<2x512xf32>
    %29 = arith.addf %26, %28 : vector<2x512xf32>
    %cst_23 = arith.constant 0.000000e+00 : f32
    %30 = vector.broadcast %cst_23 : f32 to vector<2x512xf32>
    %31 = arith.maximumf %29, %30 : vector<2x512xf32>
    %32 = arith.truncf %31 : vector<2x512xf32> to vector<2x512xbf16>
    %c0_24 = arith.constant 0 : index
    %c0_25 = arith.constant 0 : index
    %33 = vector.load %arg9[%c0_24, %c0_25] : memref<512x512xbf16, #tpu.memory_space<vmem>>, vector<512x512xbf16>
    %cst_26 = arith.constant dense<0.000000e+00> : vector<2x512xf32>
    %34 = tpu.matmul %32, %33, %cst_26 {dimension_numbers = #tpu.dot_dimension_numbers<[1], [0], [0], [1], [0, 0, 1, 1], [], []>} : vector<2x512xbf16>, vector<512x512xbf16>, vector<2x512xf32> -> vector<2x512xf32>
    %c0_27 = arith.constant 0 : index
    %c0_28 = arith.constant 0 : index
    %35 = vector.load %arg10[%c0_27, %c0_28] : memref<1x512xf32, #tpu.memory_space<vmem>>, vector<1x512xf32>
    %36 = vector.broadcast %35 : vector<1x512xf32> to vector<2x512xf32>
    %37 = arith.addf %34, %36 : vector<2x512xf32>
    %cst_29 = arith.constant 0.000000e+00 : f32
    %38 = vector.broadcast %cst_29 : f32 to vector<2x512xf32>
    %39 = arith.maximumf %37, %38 : vector<2x512xf32>
    %40 = arith.truncf %39 : vector<2x512xf32> to vector<2x512xbf16>
    %c0_30 = arith.constant 0 : index
    %c0_31 = arith.constant 0 : index
    %41 = vector.load %arg11[%c0_30, %c0_31] : memref<512x384xbf16, #tpu.memory_space<vmem>>, vector<512x384xbf16>
    %cst_32 = arith.constant dense<0.000000e+00> : vector<2x384xf32>
    %42 = tpu.matmul %40, %41, %cst_32 {dimension_numbers = #tpu.dot_dimension_numbers<[1], [0], [0], [1], [0, 0, 1, 1], [], []>} : vector<2x512xbf16>, vector<512x384xbf16>, vector<2x384xf32> -> vector<2x384xf32>
    %c0_33 = arith.constant 0 : index
    %c0_34 = arith.constant 0 : index
    %43 = vector.load %arg12[%c0_33, %c0_34] : memref<1x384xf32, #tpu.memory_space<vmem>>, vector<1x384xf32>
    %44 = vector.broadcast %43 : vector<1x384xf32> to vector<2x384xf32>
    %45 = arith.addf %42, %44 : vector<2x384xf32>
    %c0_35 = arith.constant 0 : index
    %c0_36 = arith.constant 0 : index
    %46 = vector.load %arg13[%c0_35, %c0_36] : memref<2x384xf32, #tpu.memory_space<vmem>>, vector<2x384xf32>
    tpu.vector_store %arg13[%c0_35, %c0_36], %45 {strides = array<i32>} : memref<2x384xf32, #tpu.memory_space<vmem>>, vector<2x384xf32>,
    return
  }
}

</mosaic_0001>

<bundles_post_ra>
// kernel: pointnet_forward.1
= control target key start
LH: loop header
LB: loop body
LE: loop exit
PB: predicated region body
PF: predicated region fallthrough
CT: control target
= control target key end

     0   :  { %18 = vsyncpa [#allocation3], 0  ;;  %s7485_s0 = inlined_call_operand.vmem [shape: bf16[112,8], index: 0, kind: input, shape index: {}]   ;;  %s7486_s1 = inlined_call_operand.vmem [shape: bf16[8,64], index: 1, kind: input, shape index: {}]   ;;  %s7487_s2 = inlined_call_operand.vmem [shape: f32[1,64], index: 2, kind: input, shape index: {}]   ;;  %s7488_s3 = inlined_call_operand.vmem [shape: bf16[64,128], index: 3, kind: input, shape index: {}]   ;;  %s7489_s4 = inlined_call_operand.vmem [shape: f32[1,128], index: 4, kind: input, shape index: {}]   ;;  %s7490_s5 = inlined_call_operand.hbm [shape: bf16[128,1024], index: 5, kind: input, shape index: {}]   ;;  %s7491_s6 = inlined_call_operand.vmem [shape: f32[1,1024], index: 6, kind: input, shape index: {}]   ;;  %s7492_s7 = inlined_call_operand.hbm [shape: bf16[1024,512], index: 7, kind: input, shape index: {}]   ;;  %s7493_s8 = inlined_call_operand.vmem [shape: f32[1,512], index: 8, kind: input, shape index: {}]   ;;  %s7494_s9 = inlined_call_operand.hbm [shape: bf16[512,512], index: 9, kind: input, shape index: {}]   ;;  %s7495_s10 = inlined_call_operand.vmem [shape: f32[1,512], index: 10, kind: input, shape index: {}]   ;;  %s7496_s11 = inlined_call_operand.hbm [shape: bf16[512,384], index: 11, kind: input, shape index: {}]   ;;  %s7497_s12 = inlined_call_operand.vmem [shape: f32[1,384], index: 12, kind: input, shape index: {}]   ;;  %s7498_s13 = inlined_call_operand.hbm [shape: f32[2,384], index: 13, kind: output, shape index: {}]  }
   0x1   :  { %19 = vsyncpa [#allocation6], 0 }
   0x2   :  { %20 = vsyncpa [#allocation9], 0 }
   0x3   :  { %21 = vsyncpa [#allocation4], 0  ;;  %s6877_s25 = smov [#allocation5]   ;;  %s6759_s29 = scalar_lea.hbm %s7492_s7, 32768 }
   0x4   :  { %s51_s26 = sshll.u32 %s6877_s25, 4  ;;  %p6760_p0 = scmp.ne.s32.totalorder %s7492_s7, %s6759_s29  ;;  %s52_s26 = int_to_ptr.vmem [resolvable:$true] %s51_s26 }
   0x5   :  { %p6763_p1 = scmp.lt.u32.totalorder %s6759_s29, %s7492_s7 }
   0x7   :  { %p6765_p2 = pnand %p6763_p1, %p6760_p0 }
   0x9   :  { %6768 = shalt.err (!%p6765_p2)
}
   0xa   :  { %s6769_s17 = scalar_lea.vmem %s52_s26, 32768  ;;  %p6774_p4 = scmp.lt.s32.totalorder %s52_s26, %s52_s26 }
   0xb   :  { %p6770_p3 = scmp.ne.s32.totalorder %s52_s26, %s6769_s17  ;;  %p6775_p5 = scmp.lt.s32.totalorder %s6769_s17, %s6769_s17 }
   0xd   :  { %p6776_p6 = por %p6775_p5, %p6774_p4 }
   0xf   :  { %p6777_p7 = pnand %p6776_p6, %p6770_p3 }
  0x11   :  { %6780 = shalt.err (!%p6777_p7)
}
  0x12   :  { %s6878_s18 = smov 256   ;;  %s6879_s19 = smov 16  }
  0x13   :  { %57 = dma.hbm_to_vmem [thread:$0]  %s7492_s7, 32768, %s52_s26, [#allocation6], %s6878_s18, %s6878_s18, %s6879_s19  }
  0x14   :  { %s6880_s22 = smov [#allocation2]   ;;  %s6781_s27 = scalar_lea.hbm %s7490_s5, 8192 }
  0x15   :  { %s37_s23 = sshll.u32 %s6880_s22, 4  ;;  %p6782_p8 = scmp.ne.s32.totalorder %s7490_s5, %s6781_s27  ;;  %s38_s23 = int_to_ptr.vmem [resolvable:$true] %s37_s23 }
  0x16   :  { %p6785_p9 = scmp.lt.u32.totalorder %s6781_s27, %s7490_s5 }
  0x18   :  { %p6787_p10 = pnand %p6785_p9, %p6782_p8 }
  0x1a   :  { %6790 = shalt.err (!%p6787_p10)
}
  0x1b   :  { %s6791_s15 = scalar_lea.vmem %s38_s23, 8192  ;;  %p6796_p12 = scmp.lt.s32.totalorder %s38_s23, %s38_s23 }
  0x1c   :  { %p6792_p11 = scmp.ne.s32.totalorder %s38_s23, %s6791_s15  ;;  %p6797_p13 = scmp.lt.s32.totalorder %s6791_s15, %s6791_s15 }
  0x1e   :  { %p6798_p0 = por %p6797_p13, %p6796_p12 }
  0x20   :  { %p6799_p1 = pnand %p6798_p0, %p6792_p11 }
  0x22   :  { %6802 = shalt.err (!%p6799_p1)
}
  0x23   :  { %s6881_s7 = smov 512   ;;  %s6882_s26 = smov 32  }
  0x24   :  { %43 = dma.hbm_to_vmem [thread:$0]  %s7490_s5, 8192, %s38_s23, [#allocation3], %s6881_s7, %s6881_s7, %s6882_s26  }
  0x25   :  { %s6883_s20 = smov [#allocation7]   ;;  %s6884_s22 = smov [#allocation8]  }
  0x26   :  { %s65_s21 = sshll.u32 %s6883_s20, 4  ;;  %s79_s24 = sshll.u32 %s6884_s22, 4  ;;  %s66_s21 = int_to_ptr.vmem [resolvable:$true] %s65_s21  ;;  %s6989_s24 = int_to_ptr.vmem [resolvable:$true] %s79_s24 }
  0x27   :  { %s6803_s28 = scalar_lea.hbm %s7494_s9, 16384 }
  0x28   :  { %p6804_p2 = scmp.ne.s32.totalorder %s7494_s9, %s6803_s28  ;;  %p6807_p3 = scmp.lt.u32.totalorder %s6803_s28, %s7494_s9 }
  0x2a   :  { %p6809_p4 = pnand %p6807_p3, %p6804_p2 }
  0x2c   :  { %6812 = shalt.err (!%p6809_p4)
}
  0x2d   :  { %s6813_s5 = scalar_lea.vmem %s66_s21, 16384  ;;  %p6818_p6 = scmp.lt.s32.totalorder %s66_s21, %s66_s21 }
  0x2e   :  { %p6814_p5 = scmp.ne.s32.totalorder %s66_s21, %s6813_s5  ;;  %p6819_p7 = scmp.lt.s32.totalorder %s6813_s5, %s6813_s5 }
  0x30   :  { %p6820_p8 = por %p6819_p7, %p6818_p6 }
  0x32   :  { %p6821_p9 = pnand %p6820_p8, %p6814_p5 }
  0x34   :  { %6824 = shalt.err (!%p6821_p9)
}
  0x35   :  { %71 = dma.hbm_to_vmem [thread:$0]  %s7494_s9, 16384, %s66_s21, [#allocation6], %s6878_s18, %s6878_s18, %s6879_s19  }
  0x36   :  { %s6825_s17 = scalar_lea.hbm %s7496_s11, 12288 }
  0x37   :  { %p6826_p10 = scmp.ne.s32.totalorder %s7496_s11, %s6825_s17  ;;  %p6829_p11 = scmp.lt.u32.totalorder %s6825_s17, %s7496_s11 }
  0x39   :  { %p6831_p12 = pnand %p6829_p11, %p6826_p10 }
  0x3b   :  { %6834 = shalt.err (!%p6831_p12)
}
  0x3c   :  { %s6835_s28 = scalar_lea.vmem %s6989_s24, 12288  ;;  %p6840_p0 = scmp.lt.s32.totalorder %s6989_s24, %s6989_s24 }
  0x3d   :  { %p6836_p13 = scmp.ne.s32.totalorder %s6989_s24, %s6835_s28  ;;  %p6841_p1 = scmp.lt.s32.totalorder %s6835_s28, %s6835_s28 }
  0x3f   :  { %p6842_p2 = por %p6841_p1, %p6840_p0 }
  0x41   :  { %p6843_p3 = pnand %p6842_p2, %p6836_p13 }
  0x43   :  { %6846 = shalt.err (!%p6843_p3)
}
  0x44   :  { %s6885_s9 = smov 192   ;;  %s6886_s18 = smov 12  }
  0x45   :  { %85 = dma.hbm_to_vmem [thread:$0]  %s7496_s11, 12288, %s6989_s24, [#allocation9], %s6885_s9, %s6885_s9, %s6886_s18  }
  0x46   :  { %6869 = dma.done.wait [#allocation3], 8192  }
  0x47   :  { %6870 = vsyncadd [#allocation3], 4294959104 }
  0x48   :  { %6871 = dma.done.wait [#allocation6], 49152  }
  0x49   :  { %6872 = vsyncadd [#allocation6], 4294918144 }
  0x4a   :  { %6873 = dma.done.wait [#allocation9], 12288  }
  0x4b   :  { %6874 = vsyncadd [#allocation9], 4294955008  ;;  %v6887_v0 = vmov 0.0   ;;  %vm6888_vm0 = vmmov 0   ;;  %vm180_vm1 = vcmask 1043456   ;;  %v6044_v3 = vld [vmem:[%s7485_s0] sm:$0xff]  }
  0x4c   :  { %5915 = vmatprep.subr.bf16.mxu0 %v6887_v0  ;;  %5917 = vmatprep.mubr.msk.bf16.mxu0 %vm6888_vm0, %v6887_v0  ;;  %v115_v1 = vld [vmem:[%s7486_s1] sm:$0xf]  ;;  %vm158_vm2 = vcmask 64512   ;;  %v6045_v6 = vld [vmem:[%s7485_s0 + $0x8] sm:$0xff]   ;;  %v6053_v9 = vld [vmem:[%s7488_s3 + $0x10] sm:$0xff]   ;;  %vm333_vm3 = vcmask 523264  }
  0x4d   :  { %5981 = vmatprep.subr.bf16.mxu1 %v6887_v0  ;;  %5933 = vmatprep.mubr.msk.bf16.mxu1 %vm6888_vm0, %v6887_v0  ;;  %v182_v2 = vsel %vm180_vm1, %v115_v1, 0  ;;  %v6048_v4 = vld [vmem:[%s7485_s0 + $0x20] sm:$0xff]   ;;  %v6049_v7 = vld [vmem:[%s7485_s0 + $0x28] sm:$0xff]   ;;  %v6046_v10 = vld [vmem:[%s7485_s0 + $0x10] sm:$0xff]   ;;  %vm1821_vm4 = vcmask 1041409  }
  0x4e   :  { %5916 = vmatpush3.bf16.msra.mxu0 %v182_v2  ;;  %5982 = vmatpush3.bf16.msra.mxu1 %v182_v2  ;;  %v6051_v5 = vld [vmem:[%s7488_s3] sm:$0xff]   ;;  %v6052_v8 = vld [vmem:[%s7488_s3 + $0x8] sm:$0xff]   ;;  %v6050_v11 = vld [vmem:[%s7485_s0 + $0x30] sm:$0xff]  }
  0x4f   :  { %5945 = vmatprep.subr.bf16.mxu1 %v6887_v0  ;;  %v6047_v12 = vld [vmem:[%s7485_s0 + $0x18] sm:$0xff]   ;;  %v465_v14 = vld [vmem:[#allocation2] sm:$0xff]  ;;  %v7088_v16 = vld [vmem:[#allocation2 + $0x8] sm:$0xff] }
  0x50   :  { %v6054_v13 = vld [vmem:[%s7488_s3 + $0x18] sm:$0xff]   ;;  %v469_v15 = vld [vmem:[#allocation2 + $0x20] sm:$0xff]  ;;  %v7090_v19 = vld [vmem:[#allocation2 + $0x28] sm:$0xff] }
  0x51   :  { %5918 = vmatmul.mubr.msk.bf16.vlgmr.msra.gmra.mrb[0].mxu0 %vm158_vm2, %v6044_v3  ;;  %5934 = vmatmul.mubr.msk.bf16.vlgmr.msra.gmra.mrb[0].mxu1 %vm158_vm2, %v6048_v4  ;;  %v5308_v17 = vcombine.low %v465_v14, %v469_v15  ;;  %v5309_v18 = vcombine.high %v465_v14, %v469_v15  ;;  %v473_v20 = vld [vmem:[#allocation2 + $0x40] sm:$0xff]  ;;  %v5310_v22 = vcombine.low %v7088_v16, %v7090_v19  ;;  %v474_v53 = vld [vmem:[#allocation2 + $0x48] sm:$0xff] }
  0x52   :  { %5921 = vmatprep.mubr.msk.bf16.mxu0 %vm6888_vm0, %v6887_v0  ;;  %5937 = vmatprep.mubr.msk.bf16.mxu1 %vm6888_vm0, %v6887_v0  ;;  %v477_v21 = vld [vmem:[#allocation2 + $0x60] sm:$0xff]  ;;  %v5311_v23 = vcombine.high %v7088_v16, %v7090_v19  ;;  %v478_v54 = vld [vmem:[#allocation2 + $0x68] sm:$0xff] }
  0x53   :  { %5946 = vmatpush3.bf16.msra.mxu1 %v6051_v5  ;;  %v5317_v24 = vcombine.high %v473_v20, %v477_v21  ;;  %v481_v25 = vld [vmem:[#allocation2 + $0x80] sm:$0xff]  ;;  %891 = vmatprep.subr.bf16.mxu0 %v5309_v18  ;;  %v5316_v27 = vcombine.low %v473_v20, %v477_v21  ;;  %v5319_v62 = vcombine.high %v474_v53, %v478_v54  ;;  %v482_v1 = vld [vmem:[#allocation2 + $0x88] sm:$0xff] }
  0x54   :  { %5947 = vmatprep.subr.bf16.mxu1 %v6887_v0  ;;  %v485_v26 = vld [vmem:[#allocation2 + $0xa0] sm:$0xff]  ;;  %892 = vmatpush1.bf16.msra.mxu0 %v5308_v17  ;;  %v486_v2 = vld [vmem:[#allocation2 + $0xa8] sm:$0xff] }
  0x55   :  { %893 = vmatprep.subr.bf16.mxu0 %v5317_v24  ;;  %v5325_v28 = vcombine.high %v481_v25, %v485_v26  ;;  %v489_v29 = vld [vmem:[#allocation2 + $0xc0] sm:$0xff]  ;;  %v5324_v31 = vcombine.low %v481_v25, %v485_v26  ;;  %v490_v15 = vld [vmem:[#allocation2 + $0xc8] sm:$0xff]  ;;  %v5326_v16 = vcombine.low %v482_v1, %v486_v2 }
  0x56   :  { %v493_v30 = vld [vmem:[#allocation2 + $0xe0] sm:$0xff]  ;;  %v494_v17 = vld [vmem:[#allocation2 + $0xe8] sm:$0xff] }
  0x57   :  { %5948 = vmatpush3.bf16.msra.mxu1 %v6052_v8  ;;  %v497_v32 = vld [vmem:[#allocation2 + $0x100] sm:$0xff]  ;;  %v5333_v34 = vcombine.high %v489_v29, %v493_v30  ;;  %v5332_v35 = vcombine.low %v489_v29, %v493_v30  ;;  %v5318_v8 = vcombine.low %v474_v53, %v478_v54  ;;  %v5335_v25 = vcombine.high %v490_v15, %v494_v17 }
  0x58   :  { %5949 = vmatprep.subr.bf16.mxu1 %v6887_v0  ;;  %894 = vmatpush1.bf16.msra.mxu0 %v5316_v27  ;;  %v501_v33 = vld [vmem:[#allocation2 + $0x120] sm:$0xff]  ;;  %v498_v27 = vld [vmem:[#allocation2 + $0x108] sm:$0xff] }
  0x59   :  { %5922 = vmatmul.mubr.msk.bf16.gmra.mrb[4].mxu0 %vm158_vm2, %v6045_v6  ;;  %5938 = vmatmul.mubr.msk.bf16.gmra.mrb[4].mxu1 %vm158_vm2, %v6049_v7  ;;  %v505_v36 = vld [vmem:[#allocation2 + $0x140] sm:$0xff]  ;;  %v5341_v38 = vcombine.high %v497_v32, %v501_v33  ;;  %v5340_v39 = vcombine.low %v497_v32, %v501_v33 }
  0x5a   :  { %5925 = vmatprep.mubr.msk.bf16.mxu0 %vm6888_vm0, %v6887_v0  ;;  %5941 = vmatprep.mubr.msk.bf16.mxu1 %vm6888_vm0, %v6887_v0  ;;  %v509_v37 = vld [vmem:[#allocation2 + $0x160] sm:$0xff] }
  0x5b   :  { %5950 = vmatpush3.bf16.msra.mxu1 %v6053_v9  ;;  %895 = vmatprep.subr.bf16.mxu0 %v5325_v28  ;;  %v5349_v40 = vcombine.high %v505_v36, %v509_v37  ;;  %v5348_v41 = vcombine.low %v505_v36, %v509_v37  ;;  %v7099_v42 = vld [vmem:[%s7487_s2] ss:$0 sm:$0xff]  ;;  %v502_v28 = vld [vmem:[#allocation2 + $0x128] sm:$0xff] }
  0x5c   :  { %5951 = vmatprep.subr.bf16.mxu1 %v6887_v0  ;;  %896 = vmatpush1.bf16.msra.mxu0 %v5324_v31 }
  0x5d   :  { %897 = vmatprep.subr.bf16.mxu0 %v5333_v34  ;;  %v5334_v34 = vcombine.low %v490_v15, %v494_v17  ;;  %v6889_v15 = vmov 0   ;;  %v467_v17 = vld [vmem:[#allocation2 + $0x10] sm:$0xff] }
  0x5f   :  { %5952 = vmatpush3.bf16.msra.mxu1 %v6054_v13  ;;  %v5327_v13 = vcombine.high %v482_v1, %v486_v2  ;;  %v517_v1 = vld [vmem:[#allocation2 + $0x1a0] sm:$0xff]  ;;  %v514_v2 = vld [vmem:[#allocation2 + $0x188] sm:$0xff] }
  0x60   :  { %994 = vmatprep.subr.bf16.mxu1 %v5311_v23  ;;  %898 = vmatpush1.bf16.msra.mxu0 %v5332_v35 }
  0x61   :  { %5926 = vmatmul.mubr.msk.bf16.gmra.mrb[8].mxu0 %vm158_vm2, %v6046_v10  ;;  %5942 = vmatmul.mubr.msk.bf16.gmra.mrb[8].mxu1 %vm158_vm2, %v6050_v11 }
  0x62   :  { %5929 = vmatprep.mubr.msk.bf16.mxu0 %vm6888_vm0, %v6887_v0  ;;  %5953 = vmatprep.mubr.msk.bf16.mxu1 %vm6888_vm0, %v6887_v0 }
  0x63   :  { %899 = vmatprep.subr.bf16.mxu0 %v5341_v38 }
  0x64   :  { %900 = vmatpush1.bf16.msra.mxu0 %v5340_v39  ;;  %v5343_v39 = vcombine.high %v498_v27, %v502_v28 }
  0x65   :  { %901 = vmatprep.subr.bf16.mxu0 %v5349_v40 }
  0x68   :  { %902 = vmatpush1.bf16.msra.mxu0 %v5348_v41  ;;  %v506_v41 = vld [vmem:[#allocation2 + $0x148] sm:$0xff] }
  0x69   :  { %5930 = vmatmul.mubr.msk.bf16.gmra.mrb[12].mxu0 %vm158_vm2, %v6047_v12 }
  0x6a   :  { %923 = vmatprep.mubr.bf16.mxu0 %v6889_v15 }
 0x124   :  { %v218_v43 = vpop.f32.mrb[0].mxu0  ;;  %v250_v47 = vpop.f32.mrb[0].mxu1 }
 0x125   :  { %v219_v44 = vadd.f32 %v7099_v42, %v218_v43  ;;  %v5919_v45 = vpop.f32.mrb[1].mxu0  ;;  %v251_v50 = vadd.f32 %v7099_v42, %v250_v47  ;;  %v5935_v51 = vpop.f32.mrb[1].mxu1  ;;  %v510_v43 = vld [vmem:[#allocation2 + $0x168] sm:$0xff] }
 0x126   :  { %v221_v46 = vpop.f32.mrb[2].mxu0  ;;  %v253_v52 = vpop.f32.mrb[2].mxu1 }
 0x127   :  { %v222_v48 = vadd.f32 %v7099_v42, %v221_v46  ;;  %v5920_v49 = vpop.f32.mrb[3].mxu0  ;;  %v273_v55 = vmax.f32 %v219_v44, 0.0  ;;  %v281_v57 = vmax.f32 %v251_v50, 0.0  ;;  %v254_v58 = vadd.f32 %v7099_v42, %v253_v52  ;;  %v5936_v59 = vpop.f32.mrb[3].mxu1 }
 0x128   :  { %v5342_v49 = vcombine.low %v498_v27, %v502_v28  ;;  %v5351_v52 = vcombine.high %v506_v41, %v510_v43 }
 0x129   :  { %v274_v56 = vmax.f32 %v222_v48, 0.0  ;;  %v282_v61 = vmax.f32 %v254_v58, 0.0  ;;  %v5350_v58 = vcombine.low %v506_v41, %v510_v43  ;;  %v483_v41 = vld [vmem:[#allocation2 + $0x90] sm:$0xff] }
 0x12b   :  { %v287_v60 = vpack.c.bf16 %v274_v56, %v273_v55  ;;  %v7107_v5 = vpack.c.bf16 %v282_v61, %v281_v57 }
 0x12c   :  { %v226_v63 = vpop.f32.mrb[4].mxu0  ;;  %v258_v7 = vpop.f32.mrb[4].mxu1 }
 0x12d   :  { %v227_v3 = vadd.f32 %v7099_v42, %v226_v63  ;;  %v5923_v4 = vpop.f32.mrb[5].mxu0  ;;  %5954 = vmatmul.mubr.msk.bf16.vlgmr.msra.gmra.mrb[12].mxu1 %vm333_vm3, %v287_v60  ;;  %v259_v11 = vadd.f32 %v7099_v42, %v258_v7  ;;  %v5939_v12 = vpop.f32.mrb[5].mxu1 }
 0x12e   :  { %v229_v6 = vpop.f32.mrb[6].mxu0  ;;  %5957 = vmatprep.mubr.msk.bf16.mxu1 %vm6888_vm0, %v6887_v0  ;;  %995 = vmatpush1.bf16.msra.mxu1 %v5310_v22  ;;  %v261_v14 = vpop.f32.mrb[6].mxu1  ;;  %v518_v4 = vld [vmem:[#allocation2 + $0x1a8] sm:$0xff] }
 0x12f   :  { %v230_v9 = vadd.f32 %v7099_v42, %v229_v6  ;;  %v5924_v10 = vpop.f32.mrb[7].mxu0  ;;  %996 = vmatprep.subr.bf16.mxu1 %v5319_v62  ;;  %v275_v18 = vmax.f32 %v227_v3, 0.0  ;;  %v283_v21 = vmax.f32 %v259_v11, 0.0  ;;  %v262_v23 = vadd.f32 %v7099_v42, %v261_v14  ;;  %v5940_v24 = vpop.f32.mrb[7].mxu1  ;;  %v526_v12 = vld [vmem:[#allocation2 + $0x1e8] sm:$0xff] }
 0x130   :  { %v5358_v7 = vcombine.low %v514_v2, %v518_v4  ;;  %v522_v10 = vld [vmem:[#allocation2 + $0x1c8] sm:$0xff] }
 0x131   :  { %v276_v20 = vmax.f32 %v230_v9, 0.0  ;;  %v284_v22 = vmax.f32 %v262_v23, 0.0  ;;  %v525_v9 = vld [vmem:[#allocation2 + $0x1e0] sm:$0xff]  ;;  %v5367_v14 = vcombine.high %v522_v10, %v526_v12  ;;  %v472_v23 = vld [vmem:[#allocation2 + $0x38] sm:$0xff] }
 0x132   :  { %997 = vmatpush1.bf16.msra.mxu1 %v5318_v8  ;;  %v5359_v8 = vcombine.high %v514_v2, %v518_v4 }
 0x133   :  { %v288_v19 = vpack.c.bf16 %v276_v20, %v275_v18  ;;  %998 = vmatprep.subr.bf16.mxu1 %v5327_v13  ;;  %v292_v31 = vpack.c.bf16 %v284_v22, %v283_v21  ;;  %v5366_v13 = vcombine.low %v522_v10, %v526_v12  ;;  %v471_v18 = vld [vmem:[#allocation2 + $0x30] sm:$0xff]  ;;  %v468_v20 = vld [vmem:[#allocation2 + $0x18] sm:$0xff]  ;;  %v7145_v22 = vld [vmem:[%s7489_s4] ss:$0 sm:$0xff] }
 0x134   :  { %v234_v26 = vpop.f32.mrb[8].mxu0  ;;  %v266_v33 = vpop.f32.mrb[8].mxu1  ;;  %v5313_v21 = vcombine.high %v467_v17, %v471_v18  ;;  %v5312_v24 = vcombine.low %v467_v17, %v471_v18  ;;  %v507_v17 = vld [vmem:[#allocation2 + $0x150] sm:$0xff] }
 0x135   :  { %v235_v29 = vadd.f32 %v7099_v42, %v234_v26  ;;  %v5927_v30 = vpop.f32.mrb[9].mxu0  ;;  %5958 = vmatmul.mubr.msk.bf16.gmra.mrb[16].mxu1 %vm333_vm3, %v288_v19  ;;  %v267_v37 = vadd.f32 %v7099_v42, %v266_v33  ;;  %v5943_v38 = vpop.f32.mrb[9].mxu1  ;;  %v5315_v19 = vcombine.high %v468_v20, %v472_v23 }
 0x136   :  { %v237_v32 = vpop.f32.mrb[10].mxu0  ;;  %5961 = vmatprep.mubr.msk.bf16.mxu1 %vm6888_vm0, %v6887_v0  ;;  %999 = vmatpush1.bf16.msra.mxu1 %v5326_v16  ;;  %v269_v40 = vpop.f32.mrb[10].mxu1  ;;  %v5314_v16 = vcombine.low %v468_v20, %v472_v23  ;;  %v508_v23 = vld [vmem:[#allocation2 + $0x158] sm:$0xff] }
 0x137   :  { %v238_v35 = vadd.f32 %v7099_v42, %v237_v32  ;;  %v5928_v36 = vpop.f32.mrb[11].mxu0  ;;  %1000 = vmatprep.subr.bf16.mxu1 %v5335_v25  ;;  %v277_v44 = vmax.f32 %v235_v29, 0.0  ;;  %v285_v46 = vmax.f32 %v267_v37, 0.0  ;;  %v270_v47 = vadd.f32 %v7099_v42, %v269_v40  ;;  %v5944_v48 = vpop.f32.mrb[11].mxu1 }
 0x138   :  { %v480_v36 = vld [vmem:[#allocation2 + $0x78] sm:$0xff] }
 0x139   :  { %v278_v45 = vmax.f32 %v238_v35, 0.0  ;;  %v286_v51 = vmax.f32 %v270_v47, 0.0  ;;  %v476_v35 = vld [vmem:[#allocation2 + $0x58] sm:$0xff] }
 0x13a   :  { %1001 = vmatpush1.bf16.msra.mxu1 %v5334_v34  ;;  %v479_v34 = vld [vmem:[#allocation2 + $0x70] sm:$0xff]  ;;  %v5323_v40 = vcombine.high %v476_v35, %v480_v36  ;;  %v488_v47 = vld [vmem:[#allocation2 + $0xb8] sm:$0xff] }
 0x13b   :  { %v289_v50 = vpack.c.bf16 %v278_v45, %v277_v44  ;;  %1002 = vmatprep.subr.bf16.mxu1 %v5343_v39  ;;  %v293_v56 = vpack.c.bf16 %v286_v51, %v285_v46  ;;  %v487_v45 = vld [vmem:[#allocation2 + $0xb0] sm:$0xff]  ;;  %v484_v46 = vld [vmem:[#allocation2 + $0x98] sm:$0xff] }
 0x13c   :  { %v242_v53 = vpop.f32.mrb[12].mxu0 }
 0x13d   :  { %v243_v54 = vadd.f32 %v7099_v42, %v242_v53  ;;  %v5931_v55 = vpop.f32.mrb[13].mxu0  ;;  %5962 = vmatmul.mubr.msk.bf16.gmra.mrb[20].mxu1 %vm333_vm3, %v289_v50  ;;  %v5329_v53 = vcombine.high %v483_v41, %v487_v45 }
 0x13e   :  { %v245_v57 = vpop.f32.mrb[14].mxu0  ;;  %5965 = vmatprep.mubr.msk.bf16.mxu1 %vm6888_vm0, %v6887_v0  ;;  %1003 = vmatpush1.bf16.msra.mxu1 %v5342_v49  ;;  %v491_v55 = vld [vmem:[#allocation2 + $0xd0] sm:$0xff] }
 0x13f   :  { %v246_v59 = vadd.f32 %v7099_v42, %v245_v57  ;;  %v5932_v60 = vpop.f32.mrb[15].mxu0  ;;  %1004 = vmatprep.subr.bf16.mxu1 %v5351_v52  ;;  %v279_v61 = vmax.f32 %v243_v54, 0.0  ;;  %v513_v42 = vld [vmem:[#allocation2 + $0x180] sm:$0xff]  ;;  %v5322_v52 = vcombine.low %v476_v35, %v480_v36  ;;  %v5331_v54 = vcombine.high %v484_v46, %v488_v47 }
 0x140   :  { %v5357_v3 = vcombine.high %v513_v42, %v517_v1  ;;  %v5356_v6 = vcombine.low %v513_v42, %v517_v1  ;;  %v496_v60 = vld [vmem:[#allocation2 + $0xf8] sm:$0xff] }
 0x141   :  { %v280_v62 = vmax.f32 %v246_v59, 0.0  ;;  %v492_v59 = vld [vmem:[#allocation2 + $0xd8] sm:$0xff] }
 0x142   :  { %1005 = vmatpush1.bf16.msra.mxu1 %v5350_v58  ;;  %903 = vmatprep.subr.bf16.mxu0 %v5357_v3  ;;  %v495_v58 = vld [vmem:[#allocation2 + $0xf0] sm:$0xff]  ;;  %v5339_v2 = vcombine.high %v492_v59, %v496_v60 }
 0x143   :  { %v290_v63 = vpack.c.bf16 %v280_v62, %v279_v61  ;;  %904 = vmatpush1.bf16.msra.mxu0 %v5356_v6  ;;  %1006 = vmatprep.subr.bf16.mxu1 %v5359_v8  ;;  %v5328_v62 = vcombine.low %v483_v41, %v487_v45  ;;  %v5337_v1 = vcombine.high %v491_v55, %v495_v58  ;;  %v499_v3 = vld [vmem:[#allocation2 + $0x110] sm:$0xff]  ;;  %v500_v8 = vld [vmem:[#allocation2 + $0x118] sm:$0xff] }
 0x144   :  { %v5336_v12 = vcombine.low %v491_v55, %v495_v58 }
 0x145   :  { %5966 = vmatmul.mubr.msk.bf16.gmra.mrb[24].mxu1 %vm333_vm3, %v290_v63  ;;  %v5330_v63 = vcombine.low %v484_v46, %v488_v47  ;;  %v527_v47 = vld [vmem:[#allocation2 + $0x1f0] sm:$0xff] }
 0x146   :  { %5969 = vmatprep.mubr.msk.bf16.mxu1 %vm6888_vm0, %v6887_v0  ;;  %1007 = vmatpush1.bf16.msra.mxu1 %v5358_v7  ;;  %v503_v7 = vld [vmem:[#allocation2 + $0x130] sm:$0xff] }
 0x147   :  { %1008 = vmatprep.subr.bf16.mxu1 %v5367_v14 }
 0x14a   :  { %1009 = vmatpush1.bf16.msra.mxu1 %v5366_v13  ;;  %v5345_v13 = vcombine.high %v499_v3, %v503_v7 }
 0x14b   :  { %1200 = vmatprep.subr.bf16.mxu1 %v5315_v19  ;;  %v5344_v19 = vcombine.low %v499_v3, %v503_v7 }
 0x14d   :  { %5970 = vmatmul.mubr.msk.bf16.gmra.mrb[28].mxu1 %vm333_vm3, %v7107_v5  ;;  %v521_v5 = vld [vmem:[#allocation2 + $0x1c0] sm:$0xff] }
 0x14e   :  { %5973 = vmatprep.mubr.msk.bf16.mxu1 %vm6888_vm0, %v6887_v0  ;;  %v5365_v11 = vcombine.high %v521_v5, %v525_v9 }
 0x150   :  { %905 = vmatprep.subr.bf16.mxu0 %v5365_v11 }
 0x155   :  { %5974 = vmatmul.mubr.msk.bf16.gmra.mrb[32].mxu1 %vm333_vm3, %v292_v31  ;;  %v475_v31 = vld [vmem:[#allocation2 + $0x50] sm:$0xff] }
 0x156   :  { %5977 = vmatprep.mubr.msk.bf16.mxu1 %vm6888_vm0, %v6887_v0  ;;  %v5364_v0 = vcombine.low %v521_v5, %v525_v9  ;;  %v5321_v39 = vcombine.high %v475_v31, %v479_v34  ;;  %v5320_v51 = vcombine.low %v475_v31, %v479_v34  ;;  %v504_v5 = vld [vmem:[#allocation2 + $0x138] sm:$0xff] }
 0x157   :  { %v5347_v14 = vcombine.high %v500_v8, %v504_v5  ;;  %v520_v34 = vld [vmem:[#allocation2 + $0x1b8] sm:$0xff] }
 0x158   :  { %906 = vmatpush1.bf16.msra.mxu0 %v5364_v0  ;;  %v5338_v0 = vcombine.low %v492_v59, %v496_v60 }
 0x159   :  { %1097 = vmatprep.subr.bf16.mxu0 %v5313_v21  ;;  %v511_v21 = vld [vmem:[#allocation2 + $0x170] sm:$0xff] }
 0x15d   :  { %5978 = vmatmul.mubr.msk.bf16.gmra.mrb[36].mxu1 %vm333_vm3, %v293_v56 }
 0x15e   :  { %1026 = vmatprep.mubr.bf16.mxu1 %v6889_v15 }
 0x200   :  { %v389_v25 = vpop.f32.mrb[12].mxu1 }
 0x201   :  { %v390_v26 = vadd.f32 %v7145_v22, %v389_v25  ;;  %v5955_v27 = vpop.f32.mrb[13].mxu1  ;;  %v5346_v25 = vcombine.low %v500_v8, %v504_v5 }
 0x202   :  { %v392_v28 = vpop.f32.mrb[14].mxu1  ;;  %v5353_v27 = vcombine.high %v507_v17, %v511_v21 }
 0x203   :  { %v393_v29 = vadd.f32 %v7145_v22, %v392_v28  ;;  %v5956_v30 = vpop.f32.mrb[15].mxu1  ;;  %v444_v32 = vmax.f32 %v390_v26, 0.0 }
 0x205   :  { %v445_v33 = vmax.f32 %v393_v29, 0.0  ;;  %v515_v29 = vld [vmem:[#allocation2 + $0x190] sm:$0xff] }
 0x207   :  { %v7149_v37 = vpack.c.bf16 %v445_v33, %v444_v32  ;;  %v519_v32 = vld [vmem:[#allocation2 + $0x1b0] sm:$0xff]  ;;  %v516_v33 = vld [vmem:[#allocation2 + $0x198] sm:$0xff] }
 0x208   :  { %v397_v38 = vpop.f32.mrb[16].mxu1  ;;  %v5361_v41 = vcombine.high %v515_v29, %v519_v32 }
 0x209   :  { %v398_v43 = vadd.f32 %v7145_v22, %v397_v38  ;;  %v5959_v44 = vpop.f32.mrb[17].mxu1  ;;  %924 = vmatmul.mubr.bf16.vlgmr.msra.gmra.mrb[16].mxu0 %v7149_v37  ;;  %1027 = vmatmul.mubr.bf16.vlgmr.msra.gmra.mrb[40].mxu1 %v7149_v37 }
 0x20a   :  { %v400_v48 = vpop.f32.mrb[18].mxu1  ;;  %933 = vmatprep.mubr.bf16.mxu0 %v6889_v15  ;;  %1036 = vmatprep.mubr.bf16.mxu1 %v6889_v15  ;;  %v523_v44 = vld [vmem:[#allocation2 + $0x1d0] sm:$0xff] }
 0x20b   :  { %v401_v49 = vadd.f32 %v7145_v22, %v400_v48  ;;  %v5960_v50 = vpop.f32.mrb[19].mxu1  ;;  %1098 = vmatpush1.bf16.msra.mxu0 %v5312_v24  ;;  %1201 = vmatpush1.bf16.msra.mxu1 %v5314_v16  ;;  %v446_v56 = vmax.f32 %v398_v43, 0.0  ;;  %v512_v24 = vld [vmem:[#allocation2 + $0x178] sm:$0xff]  ;;  %v5363_v43 = vcombine.high %v516_v33, %v520_v34 }
 0x20c   :  { %1099 = vmatprep.subr.bf16.mxu0 %v5321_v39  ;;  %1202 = vmatprep.subr.bf16.mxu1 %v5323_v40  ;;  %v5355_v28 = vcombine.high %v508_v23, %v512_v24  ;;  %v5352_v39 = vcombine.low %v507_v17, %v511_v21  ;;  %v5354_v40 = vcombine.low %v508_v23, %v512_v24  ;;  %v524_v48 = vld [vmem:[#allocation2 + $0x1d8] sm:$0xff] }
 0x20d   :  { %v447_v57 = vmax.f32 %v401_v49, 0.0  ;;  %v528_v49 = vld [vmem:[#allocation2 + $0x1f8] sm:$0xff] }
 0x20e   :  { %v5371_v55 = vcombine.high %v524_v48, %v528_v49  ;;  %v6058_v24 = vld [vmem:[#allocation5 + $0x8] ss:$16 sps:$4 sm:$0xff]  }
 0x20f   :  { %v7157_v61 = vpack.c.bf16 %v447_v57, %v446_v56  ;;  %1100 = vmatpush1.bf16.msra.mxu0 %v5320_v51  ;;  %1203 = vmatpush1.bf16.msra.mxu1 %v5322_v52  ;;  %v5360_v51 = vcombine.low %v515_v29, %v519_v32  ;;  %v5362_v52 = vcombine.low %v516_v33, %v520_v34  ;;  %v6067_v29 = vld [vmem:[#allocation5 + $0x40] ss:$16 sps:$4 sm:$0xff]   ;;  %v6078_v32 = vld [vmem:[#allocation5 + $0x6c] ss:$16 sps:$4 sm:$0xff]   ;;  %v6081_v34 = vld [vmem:[#allocation5 + $0x84] ss:$16 sps:$4 sm:$0xff]  }
 0x210   :  { %v405_v42 = vpop.f32.mrb[20].mxu1  ;;  %1101 = vmatprep.subr.bf16.mxu0 %v5329_v53  ;;  %1204 = vmatprep.subr.bf16.mxu1 %v5331_v54  ;;  %v5369_v54 = vcombine.high %v523_v44, %v527_v47  ;;  %v6073_v33 = vld [vmem:[#allocation5 + $0x60] ss:$16 sps:$4 sm:$0xff]  }
 0x211   :  { %v406_v4 = vadd.f32 %v7145_v22, %v405_v42  ;;  %v5963_v6 = vpop.f32.mrb[21].mxu1  ;;  %934 = vmatmul.mubr.bf16.gmra.mrb[20].mxu0 %v7157_v61  ;;  %1037 = vmatmul.mubr.bf16.gmra.mrb[44].mxu1 %v7157_v61 }
 0x212   :  { %v408_v9 = vpop.f32.mrb[22].mxu1  ;;  %943 = vmatprep.mubr.bf16.mxu0 %v6889_v15  ;;  %1046 = vmatprep.mubr.bf16.mxu1 %v6889_v15 }
 0x213   :  { %v409_v10 = vadd.f32 %v7145_v22, %v408_v9  ;;  %v5964_v11 = vpop.f32.mrb[23].mxu1  ;;  %1102 = vmatpush1.bf16.msra.mxu0 %v5328_v62  ;;  %1205 = vmatpush1.bf16.msra.mxu1 %v5330_v63  ;;  %v448_v18 = vmax.f32 %v406_v4, 0.0  ;;  %v5368_v62 = vcombine.low %v523_v44, %v527_v47  ;;  %v5370_v63 = vcombine.low %v524_v48, %v528_v49  ;;  %v6093_v44 = vld [vmem:[#allocation5 + $0xc4] ss:$16 sps:$4 sm:$0xff]   ;;  %v6094_v47 = vld [vmem:[#allocation5 + $0xc8] ss:$16 sps:$4 sm:$0xff]  }
 0x214   :  { %1103 = vmatprep.subr.bf16.mxu0 %v5337_v1  ;;  %1206 = vmatprep.subr.bf16.mxu1 %v5339_v2  ;;  %v6099_v48 = vld [vmem:[#allocation5 + $0xe4] ss:$16 sps:$4 sm:$0xff]   ;;  %v6102_v49 = vld [vmem:[#allocation5 + $0xec] ss:$16 sps:$4 sm:$0xff]  }
 0x215   :  { %v449_v20 = vmax.f32 %v409_v10, 0.0 }
 0x217   :  { %v7165_v16 = vpack.c.bf16 %v449_v20, %v448_v18  ;;  %1104 = vmatpush1.bf16.msra.mxu0 %v5336_v12  ;;  %1207 = vmatpush1.bf16.msra.mxu1 %v5338_v0 }
 0x218   :  { %v413_v26 = vpop.f32.mrb[24].mxu1  ;;  %1105 = vmatprep.subr.bf16.mxu0 %v5345_v13  ;;  %1208 = vmatprep.subr.bf16.mxu1 %v5347_v14 }
 0x219   :  { %v414_v30 = vadd.f32 %v7145_v22, %v413_v26  ;;  %v5967_v31 = vpop.f32.mrb[25].mxu1  ;;  %944 = vmatmul.mubr.bf16.gmra.mrb[24].mxu0 %v7165_v16  ;;  %1047 = vmatmul.mubr.bf16.gmra.mrb[48].mxu1 %v7165_v16  ;;  %v6064_v26 = vld [vmem:[#allocation5 + $0x28] ss:$16 sps:$4 sm:$0xff]  }
 0x21a   :  { %v416_v35 = vpop.f32.mrb[26].mxu1  ;;  %953 = vmatprep.mubr.bf16.mxu0 %v6889_v15  ;;  %1056 = vmatprep.mubr.bf16.mxu1 %v6889_v15  ;;  %v6075_v31 = vld [vmem:[#allocation5 + $0x64] ss:$16 sps:$4 sm:$0xff]  }
 0x21b   :  { %v417_v36 = vadd.f32 %v7145_v22, %v416_v35  ;;  %v5968_v38 = vpop.f32.mrb[27].mxu1  ;;  %1106 = vmatpush1.bf16.msra.mxu0 %v5344_v19  ;;  %1209 = vmatpush1.bf16.msra.mxu1 %v5346_v25  ;;  %v450_v45 = vmax.f32 %v414_v30, 0.0  ;;  %v6066_v19 = vld [vmem:[#allocation5 + $0x2c] ss:$16 sps:$4 sm:$0xff]   ;;  %v6061_v25 = vld [vmem:[#allocation5 + $0x20] ss:$16 sps:$4 sm:$0xff]  }
 0x21c   :  { %1107 = vmatprep.subr.bf16.mxu0 %v5353_v27  ;;  %1210 = vmatprep.subr.bf16.mxu1 %v5355_v28  ;;  %v6069_v27 = vld [vmem:[#allocation5 + $0x44] ss:$16 sps:$4 sm:$0xff]   ;;  %v6072_v28 = vld [vmem:[#allocation5 + $0x4c] ss:$16 sps:$4 sm:$0xff]   ;;  %v6070_v30 = vld [vmem:[#allocation5 + $0x48] ss:$16 sps:$4 sm:$0xff]  }
 0x21d   :  { %v451_v46 = vmax.f32 %v417_v36, 0.0  ;;  %v6084_v35 = vld [vmem:[#allocation5 + $0x8c] ss:$16 sps:$4 sm:$0xff]   ;;  %v6079_v36 = vld [vmem:[#allocation5 + $0x80] ss:$16 sps:$4 sm:$0xff]  }
 0x21e   :  { %v6082_v38 = vld [vmem:[#allocation5 + $0x88] ss:$16 sps:$4 sm:$0xff]  }
 0x21f   :  { %v7173_v50 = vpack.c.bf16 %v451_v46, %v450_v45  ;;  %1108 = vmatpush1.bf16.msra.mxu0 %v5352_v39  ;;  %1211 = vmatpush1.bf16.msra.mxu1 %v5354_v40  ;;  %v6087_v39 = vld [vmem:[#allocation5 + $0xa4] ss:$16 sps:$4 sm:$0xff]   ;;  %v6090_v40 = vld [vmem:[#allocation5 + $0xac] ss:$16 sps:$4 sm:$0xff]   ;;  %v6091_v46 = vld [vmem:[#allocation5 + $0xc0] ss:$16 sps:$4 sm:$0xff]  }
 0x220   :  { %v421_v53 = vpop.f32.mrb[28].mxu1  ;;  %1109 = vmatprep.subr.bf16.mxu0 %v5361_v41  ;;  %1212 = vmatprep.subr.bf16.mxu1 %v5363_v43  ;;  %v6085_v41 = vld [vmem:[#allocation5 + $0xa0] ss:$16 sps:$4 sm:$0xff]   ;;  %v6088_v43 = vld [vmem:[#allocation5 + $0xa8] ss:$16 sps:$4 sm:$0xff]  }
 0x221   :  { %v422_v56 = vadd.f32 %v7145_v22, %v421_v53  ;;  %v5971_v57 = vpop.f32.mrb[29].mxu1  ;;  %954 = vmatmul.mubr.bf16.gmra.mrb[28].mxu0 %v7173_v50  ;;  %1057 = vmatmul.mubr.bf16.gmra.mrb[52].mxu1 %v7173_v50  ;;  %v6096_v45 = vld [vmem:[#allocation5 + $0xcc] ss:$16 sps:$4 sm:$0xff]  }
 0x222   :  { %v424_v58 = vpop.f32.mrb[30].mxu1  ;;  %963 = vmatprep.mubr.bf16.mxu0 %v6889_v15  ;;  %1066 = vmatprep.mubr.bf16.mxu1 %v6889_v15  ;;  %v6108_v53 = vld [vmem:[#allocation5 + $0x10c] ss:$16 sps:$4 sm:$0xff]   ;;  %v6111_v57 = vld [vmem:[#allocation5 + $0x124] ss:$16 sps:$4 sm:$0xff]  }
 0x223   :  { %v425_v59 = vadd.f32 %v7145_v22, %v424_v58  ;;  %v5972_v60 = vpop.f32.mrb[31].mxu1  ;;  %1110 = vmatpush1.bf16.msra.mxu0 %v5360_v51  ;;  %1213 = vmatpush1.bf16.msra.mxu1 %v5362_v52  ;;  %v452_v42 = vmax.f32 %v422_v56, 0.0  ;;  %v6100_v51 = vld [vmem:[#allocation5 + $0xe8] ss:$16 sps:$4 sm:$0xff]   ;;  %v6105_v52 = vld [vmem:[#allocation5 + $0x104] ss:$16 sps:$4 sm:$0xff]  }
 0x224   :  { %1111 = vmatprep.subr.bf16.mxu0 %v5369_v54  ;;  %1214 = vmatprep.subr.bf16.mxu1 %v5371_v55  ;;  %v6103_v54 = vld [vmem:[#allocation5 + $0x100] ss:$16 sps:$4 sm:$0xff]   ;;  %v6106_v55 = vld [vmem:[#allocation5 + $0x108] ss:$16 sps:$4 sm:$0xff]   ;;  %v6117_v60 = vld [vmem:[#allocation5 + $0x144] ss:$16 sps:$4 sm:$0xff]  }
 0x225   :  { %v453_v1 = vmax.f32 %v425_v59, 0.0  ;;  %v6109_v56 = vld [vmem:[#allocation5 + $0x120] ss:$16 sps:$4 sm:$0xff]   ;;  %v6112_v58 = vld [vmem:[#allocation5 + $0x128] ss:$16 sps:$4 sm:$0xff]  }
 0x226   :  { %v6114_v59 = vld [vmem:[#allocation5 + $0x12c] ss:$16 sps:$4 sm:$0xff]  }
 0x227   :  { %v462_v2 = vpack.c.bf16 %v453_v1, %v452_v42  ;;  %1112 = vmatpush1.bf16.msra.mxu0 %v5368_v62  ;;  %1215 = vmatpush1.bf16.msra.mxu1 %v5370_v63  ;;  %v6120_v62 = vld [vmem:[#allocation5 + $0x14c] ss:$16 sps:$4 sm:$0xff]   ;;  %v6115_v63 = vld [vmem:[#allocation5 + $0x140] ss:$16 sps:$4 sm:$0xff]   ;;  %v6118_v42 = vld [vmem:[#allocation5 + $0x148] ss:$16 sps:$4 sm:$0xff]  }
 0x228   :  { %v429_v3 = vpop.f32.mrb[32].mxu1  ;;  %v6123_v1 = vld [vmem:[#allocation5 + $0x164] ss:$16 sps:$4 sm:$0xff]  }
 0x229   :  { %v430_v4 = vadd.f32 %v7145_v22, %v429_v3  ;;  %v5975_v6 = vpop.f32.mrb[33].mxu1  ;;  %964 = vmatmul.mubr.bf16.gmra.mrb[32].mxu0 %v462_v2  ;;  %1067 = vmatmul.mubr.bf16.gmra.mrb[56].mxu1 %v462_v2  ;;  %v6121_v3 = vld [vmem:[#allocation5 + $0x160] ss:$16 sps:$4 sm:$0xff]  }
 0x22a   :  { %v432_v7 = vpop.f32.mrb[34].mxu1  ;;  %973 = vmatprep.mubr.bf16.mxu0 %v6889_v15  ;;  %1076 = vmatprep.mubr.bf16.mxu1 %v6889_v15  ;;  %v6129_v6 = vld [vmem:[#allocation5 + $0x184] ss:$16 sps:$4 sm:$0xff]  }
 0x22b   :  { %v433_v8 = vadd.f32 %v7145_v22, %v432_v7  ;;  %v5976_v5 = vpop.f32.mrb[35].mxu1  ;;  %v454_v9 = vmax.f32 %v430_v4, 0.0  ;;  %v6124_v4 = vld [vmem:[#allocation5 + $0x168] ss:$16 sps:$4 sm:$0xff]   ;;  %v6132_v7 = vld [vmem:[#allocation5 + $0x18c] ss:$16 sps:$4 sm:$0xff]  }
 0x22c   :  { %v6130_v5 = vld [vmem:[#allocation5 + $0x188] ss:$16 sps:$4 sm:$0xff]  }
 0x22d   :  { %v455_v10 = vmax.f32 %v433_v8, 0.0  ;;  %v6127_v8 = vld [vmem:[#allocation5 + $0x180] ss:$16 sps:$4 sm:$0xff]  }
 0x22f   :  { %v463_v11 = vpack.c.bf16 %v455_v10, %v454_v9  ;;  %v6135_v9 = vld [vmem:[#allocation5 + $0x1a4] ss:$16 sps:$4 sm:$0xff]   ;;  %v6138_v10 = vld [vmem:[#allocation5 + $0x1ac] ss:$16 sps:$4 sm:$0xff]  }
 0x230   :  { %v437_v12 = vpop.f32.mrb[36].mxu1 }
 0x231   :  { %v438_v0 = vadd.f32 %v7145_v22, %v437_v12  ;;  %v5979_v13 = vpop.f32.mrb[37].mxu1  ;;  %974 = vmatmul.mubr.bf16.gmra.mrb[36].mxu0 %v463_v11  ;;  %1077 = vmatmul.mubr.bf16.gmra.mrb[60].mxu1 %v463_v11  ;;  %v6136_v12 = vld [vmem:[#allocation5 + $0x1a8] ss:$16 sps:$4 sm:$0xff]  }
 0x232   :  { %v440_v14 = vpop.f32.mrb[38].mxu1  ;;  %983 = vmatprep.mubr.bf16.mxu0 %v6889_v15  ;;  %1086 = vmatprep.mubr.bf16.mxu1 %v6889_v15  ;;  %v6144_v13 = vld [vmem:[#allocation5 + $0x1cc] ss:$16 sps:$4 sm:$0xff]  }
 0x233   :  { %v441_v17 = vadd.f32 %v7145_v22, %v440_v14  ;;  %v5980_v18 = vpop.f32.mrb[39].mxu1  ;;  %v456_v20 = vmax.f32 %v438_v0, 0.0  ;;  %v6057_v22 = vld [vmem:[#allocation5 + $0x4] ss:$16 sps:$4 sm:$0xff]   ;;  %v6139_v14 = vld [vmem:[#allocation5 + $0x1c0] ss:$16 sps:$4 sm:$0xff]  }
 0x234   :  { %3126 = vmatprep.subr.bf16.mxu0 %v6057_v22  ;;  %v6141_v0 = vld [vmem:[#allocation5 + $0x1c4] ss:$16 sps:$4 sm:$0xff]  }
 0x235   :  { %v457_v21 = vmax.f32 %v441_v17, 0.0  ;;  %v6142_v17 = vld [vmem:[#allocation5 + $0x1c8] ss:$16 sps:$4 sm:$0xff]   ;;  %v6147_v18 = vld [vmem:[#allocation5 + $0x1e4] ss:$16 sps:$4 sm:$0xff]  }
 0x236   :  { %v6153_v22 = vld [vmem:[#allocation5 + $0x204] ss:$16 sps:$4 sm:$0xff]  }
 0x237   :  { %v464_v23 = vpack.c.bf16 %v457_v21, %v456_v20  ;;  %v6150_v20 = vld [vmem:[#allocation5 + $0x1ec] ss:$16 sps:$4 sm:$0xff]   ;;  %v6145_v21 = vld [vmem:[#allocation5 + $0x1e0] ss:$16 sps:$4 sm:$0xff]  }
 0x239   :  { %984 = vmatmul.mubr.bf16.gmra.mrb[40].mxu0 %v464_v23  ;;  %1087 = vmatmul.mubr.bf16.gmra.mrb[64].mxu1 %v464_v23 }
 0x23a   :  { %1129 = vmatprep.mubr.bf16.mxu0 %v6889_v15  ;;  %1232 = vmatprep.mubr.bf16.mxu1 %v6889_v15 }
 0x241   :  { %1130 = vmatmul.mubr.bf16.vlgmr.msra.gmra.mrb[44].mxu0 %v7149_v37  ;;  %1233 = vmatmul.mubr.bf16.vlgmr.msra.gmra.mrb[68].mxu1 %v7149_v37  ;;  %v6060_v37 = vld [vmem:[#allocation5 + $0xc] ss:$16 sps:$4 sm:$0xff]  }
 0x242   :  { %1139 = vmatprep.mubr.bf16.mxu0 %v6889_v15  ;;  %1242 = vmatprep.mubr.bf16.mxu1 %v6889_v15 }
 0x243   :  { %3290 = vmatprep.subr.bf16.mxu1 %v6060_v37  ;;  %v6156_v37 = vld [vmem:[#allocation5 + $0x20c] ss:$16 sps:$4 sm:$0xff]  }
 0x244   :  { %3291 = vmatpush1.bf16.msra.mxu1 %v6058_v24 }
 0x245   :  { %3292 = vmatprep.subr.bf16.mxu1 %v6066_v19 }
 0x248   :  { %3293 = vmatpush1.bf16.msra.mxu1 %v6064_v26 }
 0x249   :  { %1140 = vmatmul.mubr.bf16.gmra.mrb[48].mxu0 %v7157_v61  ;;  %1243 = vmatmul.mubr.bf16.gmra.mrb[72].mxu1 %v7157_v61  ;;  %v6055_v61 = vld [vmem:[#allocation5] ss:$16 sps:$4 sm:$0xff]  }
 0x24a   :  { %1149 = vmatprep.mubr.bf16.mxu0 %v6889_v15  ;;  %1252 = vmatprep.mubr.bf16.mxu1 %v6889_v15 }
 0x24b   :  { %3127 = vmatpush1.bf16.msra.mxu0 %v6055_v61  ;;  %3294 = vmatprep.subr.bf16.mxu1 %v6072_v28  ;;  %v531_v61 = vlaneseq }
 0x24c   :  { %3295 = vmatpush1.bf16.msra.mxu1 %v6070_v30 }
 0x24d   :  { %3296 = vmatprep.subr.bf16.mxu1 %v6078_v32  ;;  %v7211_v24 = vshrl.u32 %v531_v61, 7 }
 0x24f   :  { %v7217_v19 = vsub.s32 2, %v7211_v24  ;;  %v7225_v26 = vsub.s32 1, %v7211_v24 }
 0x251   :  { %1150 = vmatmul.mubr.bf16.gmra.mrb[52].mxu0 %v7165_v16  ;;  %1253 = vmatmul.mubr.bf16.gmra.mrb[76].mxu1 %v7165_v16  ;;  %v6063_v16 = vld [vmem:[#allocation5 + $0x24] ss:$16 sps:$4 sm:$0xff]  }
 0x252   :  { %1159 = vmatprep.mubr.bf16.mxu0 %v6889_v15  ;;  %1262 = vmatprep.mubr.bf16.mxu1 %v6889_v15 }
 0x253   :  { %3128 = vmatprep.subr.bf16.mxu0 %v6063_v16  ;;  %v7214_v16 = vsub.s32 0, %v7211_v24 }
 0x254   :  { %3129 = vmatpush1.bf16.msra.mxu0 %v6061_v25  ;;  %v7222_v25 = vld [vmem:[%s7491_s6] sm:$0xff] }
 0x255   :  { %3130 = vmatprep.subr.bf16.mxu0 %v6069_v27  ;;  %v7228_v27 = vsub.s32 3, %v7211_v24  ;;  %v7232_v28 = vrot.slane %v7222_v25, %v7214_v16  ;;  %v7240_v32 = vrot.slane %v7222_v25, %v7225_v26 }
 0x258   :  { %3131 = vmatpush1.bf16.msra.mxu0 %v6067_v29  ;;  %v7236_v29 = vrot.slane %v7222_v25, %v7217_v19 }
 0x259   :  { %1160 = vmatmul.mubr.bf16.gmra.mrb[56].mxu0 %v7173_v50  ;;  %1263 = vmatmul.mubr.bf16.gmra.mrb[80].mxu1 %v7173_v50  ;;  %v6097_v50 = vld [vmem:[#allocation5 + $0xe0] ss:$16 sps:$4 sm:$0xff]  }
 0x25a   :  { %1169 = vmatprep.mubr.bf16.mxu0 %v6889_v15  ;;  %1272 = vmatprep.mubr.bf16.mxu1 %v6889_v15 }
 0x25b   :  { %3132 = vmatprep.subr.bf16.mxu0 %v6075_v31 }
 0x25c   :  { %3133 = vmatpush1.bf16.msra.mxu0 %v6073_v33  ;;  %v7244_v33 = vrot.slane %v7222_v25, %v7228_v27 }
 0x25d   :  { %3134 = vmatprep.subr.bf16.mxu0 %v6081_v34 }
 0x260   :  { %3135 = vmatpush1.bf16.msra.mxu0 %v6079_v36 }
 0x261   :  { %1170 = vmatmul.mubr.bf16.gmra.mrb[60].mxu0 %v462_v2  ;;  %1273 = vmatmul.mubr.bf16.gmra.mrb[84].mxu1 %v462_v2  ;;  %v6126_v2 = vld [vmem:[#allocation5 + $0x16c] ss:$16 sps:$4 sm:$0xff]  }
 0x262   :  { %1179 = vmatprep.mubr.bf16.mxu0 %v6889_v15  ;;  %1282 = vmatprep.mubr.bf16.mxu1 %v6889_v15 }
 0x263   :  { %3136 = vmatprep.subr.bf16.mxu0 %v6087_v39 }
 0x264   :  { %3137 = vmatpush1.bf16.msra.mxu0 %v6085_v41 }
 0x265   :  { %3138 = vmatprep.subr.bf16.mxu0 %v6093_v44 }
 0x268   :  { %3139 = vmatpush1.bf16.msra.mxu0 %v6091_v46 }
 0x269   :  { %1180 = vmatmul.mubr.bf16.gmra.mrb[64].mxu0 %v463_v11  ;;  %1283 = vmatmul.mubr.bf16.gmra.mrb[88].mxu1 %v463_v11  ;;  %v6133_v11 = vld [vmem:[#allocation5 + $0x1a0] ss:$16 sps:$4 sm:$0xff]  }
 0x26a   :  { %1189 = vmatprep.mubr.bf16.mxu0 %v6889_v15  ;;  %1292 = vmatprep.mubr.bf16.mxu1 %v6889_v15  ;;  %v6076_v15 = vld [vmem:[#allocation5 + $0x68] ss:$16 sps:$4 sm:$0xff]  }
 0x26b   :  { %3297 = vmatpush1.bf16.msra.mxu1 %v6076_v15  ;;  %3140 = vmatprep.subr.bf16.mxu0 %v6099_v48 }
 0x26c   :  { %3298 = vmatprep.subr.bf16.mxu1 %v6084_v35  ;;  %3141 = vmatpush1.bf16.msra.mxu0 %v6097_v50 }
 0x26d   :  { %3142 = vmatprep.subr.bf16.mxu0 %v6105_v52 }
 0x26f   :  { %3299 = vmatpush1.bf16.msra.mxu1 %v6082_v38 }
 0x270   :  { %3300 = vmatprep.subr.bf16.mxu1 %v6090_v40  ;;  %3143 = vmatpush1.bf16.msra.mxu0 %v6103_v54 }
 0x271   :  { %1190 = vmatmul.mubr.bf16.gmra.mrb[68].mxu0 %v464_v23  ;;  %1293 = vmatmul.mubr.bf16.gmra.mrb[92].mxu1 %v464_v23  ;;  %v6148_v23 = vld [vmem:[#allocation5 + $0x1e8] ss:$16 sps:$4 sm:$0xff]  }
 0x272   :  { %3144 = vmatprep.subr.bf16.mxu0 %v6111_v57 }
 0x273   :  { %3301 = vmatpush1.bf16.msra.mxu1 %v6088_v43 }
 0x274   :  { %3302 = vmatprep.subr.bf16.mxu1 %v6096_v45  ;;  %3145 = vmatpush1.bf16.msra.mxu0 %v6109_v56 }
 0x275   :  { %3146 = vmatprep.subr.bf16.mxu0 %v6117_v60 }
 0x277   :  { %3303 = vmatpush1.bf16.msra.mxu1 %v6094_v47 }
 0x278   :  { %3304 = vmatprep.subr.bf16.mxu1 %v6102_v49  ;;  %3147 = vmatpush1.bf16.msra.mxu0 %v6115_v63 }
 0x279   :  { %3148 = vmatprep.subr.bf16.mxu0 %v6123_v1 }
 0x27b   :  { %3305 = vmatpush1.bf16.msra.mxu1 %v6100_v51 }
 0x27c   :  { %3306 = vmatprep.subr.bf16.mxu1 %v6108_v53  ;;  %3149 = vmatpush1.bf16.msra.mxu0 %v6121_v3 }
 0x27d   :  { %3150 = vmatprep.subr.bf16.mxu0 %v6129_v6 }
 0x27f   :  { %3307 = vmatpush1.bf16.msra.mxu1 %v6106_v55 }
 0x280   :  { %3308 = vmatprep.subr.bf16.mxu1 %v6114_v59  ;;  %3151 = vmatpush1.bf16.msra.mxu0 %v6127_v8 }
 0x281   :  { %3152 = vmatprep.subr.bf16.mxu0 %v6135_v9 }
 0x283   :  { %3309 = vmatpush1.bf16.msra.mxu1 %v6112_v58 }
 0x284   :  { %3310 = vmatprep.subr.bf16.mxu1 %v6120_v62  ;;  %3153 = vmatpush1.bf16.msra.mxu0 %v6133_v11 }
 0x285   :  { %3154 = vmatprep.subr.bf16.mxu0 %v6141_v0 }
 0x287   :  { %3311 = vmatpush1.bf16.msra.mxu1 %v6118_v42 }
 0x288   :  { %3312 = vmatprep.subr.bf16.mxu1 %v6126_v2  ;;  %3155 = vmatpush1.bf16.msra.mxu0 %v6139_v14 }
 0x289   :  { %3156 = vmatprep.subr.bf16.mxu0 %v6147_v18 }
 0x28b   :  { %3313 = vmatpush1.bf16.msra.mxu1 %v6124_v4 }
 0x28c   :  { %3314 = vmatprep.subr.bf16.mxu1 %v6132_v7  ;;  %3157 = vmatpush1.bf16.msra.mxu0 %v6145_v21 }
 0x28d   :  { %3167 = vmatprep.subr.bf16.mxu0 %v6153_v22 }
 0x28f   :  { %3315 = vmatpush1.bf16.msra.mxu1 %v6130_v5 }
 0x290   :  { %3316 = vmatprep.subr.bf16.mxu1 %v6138_v10 }
 0x293   :  { %3317 = vmatpush1.bf16.msra.mxu1 %v6136_v12 }
 0x294   :  { %3318 = vmatprep.subr.bf16.mxu1 %v6144_v13 }
 0x297   :  { %3319 = vmatpush1.bf16.msra.mxu1 %v6142_v17 }
 0x298   :  { %3320 = vmatprep.subr.bf16.mxu1 %v6150_v20 }
 0x29b   :  { %3321 = vmatpush1.bf16.msra.mxu1 %v6148_v23 }
 0x29c   :  { %3331 = vmatprep.subr.bf16.mxu1 %v6156_v37 }
 0x2dc   :  { %v925_v30 = vpop.f32.mrb[16].mxu0  ;;  %v1028_v31 = vpop.f32.mrb[40].mxu1 }
 0x2dd   :  { %v927_v15 = vpop.f32.mrb[17].mxu0  ;;  %v1030_v34 = vpop.f32.mrb[41].mxu1  ;;  %v926_v38 = vadd.f32 %v925_v30, %v7232_v28  ;;  %v1029_v39 = vadd.f32 %v1028_v31, %v7236_v29 }
 0x2de   :  { %v929_v35 = vpop.f32.mrb[18].mxu0  ;;  %v1032_v36 = vpop.f32.mrb[42].mxu1  ;;  %v928_v45 = vadd.f32 %v927_v15, %v7240_v32  ;;  %v1031_v46 = vadd.f32 %v1030_v34, %v7244_v33 }
 0x2df   :  { %v930_v40 = vadd.f32 %v929_v35, %v7232_v28  ;;  %v1033_v41 = vadd.f32 %v1032_v36, %v7236_v29  ;;  %v931_v43 = vpop.f32.mrb[19].mxu0  ;;  %v1034_v44 = vpop.f32.mrb[43].mxu1 }
 0x2e0   :  { %v932_v47 = vadd.f32 %v931_v43, %v7240_v32  ;;  %v1035_v48 = vadd.f32 %v1034_v44, %v7244_v33 }
 0x2e1   :  { %v1303_v49 = vmax.f32 %v926_v38, %v930_v40  ;;  %v1327_v50 = vmax.f32 %v1029_v39, %v1033_v41 }
 0x2e2   :  { %v1315_v51 = vmax.f32 %v928_v45, %v932_v47  ;;  %v1339_v52 = vmax.f32 %v1031_v46, %v1035_v48 }
 0x2e4   :  { %v935_v53 = vpop.f32.mrb[20].mxu0  ;;  %v1038_v54 = vpop.f32.mrb[44].mxu1 }
 0x2e5   :  { %v936_v55 = vadd.f32 %v935_v53, %v7232_v28  ;;  %v1039_v56 = vadd.f32 %v1038_v54, %v7236_v29  ;;  %v937_v57 = vpop.f32.mrb[21].mxu0  ;;  %v1040_v58 = vpop.f32.mrb[45].mxu1 }
 0x2e6   :  { %v938_v59 = vadd.f32 %v937_v57, %v7240_v32  ;;  %v1041_v60 = vadd.f32 %v1040_v58, %v7244_v33  ;;  %v939_v62 = vpop.f32.mrb[22].mxu0  ;;  %v1042_v63 = vpop.f32.mrb[46].mxu1 }
 0x2e7   :  { %v1304_v42 = vmax.f32 %v1303_v49, %v936_v55  ;;  %v1328_v1 = vmax.f32 %v1327_v50, %v1039_v56  ;;  %v940_v2 = vadd.f32 %v939_v62, %v7232_v28  ;;  %v1043_v3 = vadd.f32 %v1042_v63, %v7236_v29  ;;  %v941_v4 = vpop.f32.mrb[23].mxu0  ;;  %v1044_v6 = vpop.f32.mrb[47].mxu1 }
 0x2e8   :  { %v1316_v7 = vmax.f32 %v1315_v51, %v938_v59  ;;  %v1340_v8 = vmax.f32 %v1339_v52, %v1041_v60  ;;  %v942_v5 = vadd.f32 %v941_v4, %v7240_v32  ;;  %v1045_v9 = vadd.f32 %v1044_v6, %v7244_v33 }
 0x2e9   :  { %v1305_v10 = vmax.f32 %v1304_v42, %v940_v2  ;;  %v1329_v11 = vmax.f32 %v1328_v1, %v1043_v3 }
 0x2ea   :  { %v1317_v12 = vmax.f32 %v1316_v7, %v942_v5  ;;  %v1341_v0 = vmax.f32 %v1340_v8, %v1045_v9 }
 0x2ec   :  { %v945_v13 = vpop.f32.mrb[24].mxu0  ;;  %v1048_v14 = vpop.f32.mrb[48].mxu1 }
 0x2ed   :  { %v946_v17 = vadd.f32 %v945_v13, %v7232_v28  ;;  %v1049_v18 = vadd.f32 %v1048_v14, %v7236_v29  ;;  %v947_v20 = vpop.f32.mrb[25].mxu0  ;;  %v1050_v21 = vpop.f32.mrb[49].mxu1 }
 0x2ee   :  { %v948_v23 = vadd.f32 %v947_v20, %v7240_v32  ;;  %v1051_v22 = vadd.f32 %v1050_v21, %v7244_v33  ;;  %v949_v37 = vpop.f32.mrb[26].mxu0  ;;  %v1052_v61 = vpop.f32.mrb[50].mxu1 }
 0x2ef   :  { %v1306_v30 = vmax.f32 %v1305_v10, %v946_v17  ;;  %v1330_v31 = vmax.f32 %v1329_v11, %v1049_v18  ;;  %v950_v15 = vadd.f32 %v949_v37, %v7232_v28  ;;  %v1053_v34 = vadd.f32 %v1052_v61, %v7236_v29  ;;  %v951_v35 = vpop.f32.mrb[27].mxu0  ;;  %v1054_v36 = vpop.f32.mrb[51].mxu1 }
 0x2f0   :  { %v1318_v38 = vmax.f32 %v1317_v12, %v948_v23  ;;  %v1342_v39 = vmax.f32 %v1341_v0, %v1051_v22  ;;  %v952_v40 = vadd.f32 %v951_v35, %v7240_v32  ;;  %v1055_v41 = vadd.f32 %v1054_v36, %v7244_v33 }
 0x2f1   :  { %v1307_v43 = vmax.f32 %v1306_v30, %v950_v15  ;;  %v1331_v44 = vmax.f32 %v1330_v31, %v1053_v34 }
 0x2f2   :  { %v1319_v45 = vmax.f32 %v1318_v38, %v952_v40  ;;  %v1343_v46 = vmax.f32 %v1342_v39, %v1055_v41 }
 0x2f4   :  { %v955_v47 = vpop.f32.mrb[28].mxu0  ;;  %v1058_v48 = vpop.f32.mrb[52].mxu1 }
 0x2f5   :  { %v956_v49 = vadd.f32 %v955_v47, %v7232_v28  ;;  %v1059_v50 = vadd.f32 %v1058_v48, %v7236_v29  ;;  %v957_v51 = vpop.f32.mrb[29].mxu0  ;;  %v1060_v52 = vpop.f32.mrb[53].mxu1 }
 0x2f6   :  { %v958_v53 = vadd.f32 %v957_v51, %v7240_v32  ;;  %v1061_v54 = vadd.f32 %v1060_v52, %v7244_v33  ;;  %v959_v55 = vpop.f32.mrb[30].mxu0  ;;  %v1062_v56 = vpop.f32.mrb[54].mxu1 }
 0x2f7   :  { %v1308_v57 = vmax.f32 %v1307_v43, %v956_v49  ;;  %v1332_v58 = vmax.f32 %v1331_v44, %v1059_v50  ;;  %v961_v59 = vpop.f32.mrb[31].mxu0  ;;  %v1064_v60 = vpop.f32.mrb[55].mxu1  ;;  %v960_v4 = vadd.f32 %v959_v55, %v7232_v28  ;;  %v1063_v6 = vadd.f32 %v1062_v56, %v7236_v29 }
 0x2f8   :  { %v1320_v62 = vmax.f32 %v1319_v45, %v958_v53  ;;  %v1344_v63 = vmax.f32 %v1343_v46, %v1061_v54  ;;  %v962_v7 = vadd.f32 %v961_v59, %v7240_v32  ;;  %v1065_v8 = vadd.f32 %v1064_v60, %v7244_v33 }
 0x2f9   :  { %v1309_v42 = vrot.slane %v1308_v57, 4  ;;  %v1333_v1 = vrot.slane %v1332_v58, 4 }
 0x2fa   :  { %v1321_v2 = vrot.slane %v1320_v62, 4  ;;  %v1345_v3 = vrot.slane %v1344_v63, 4 }
 0x2fb   :  { %v1310_v10 = vmax.f32 %v1308_v57, %v1309_v42  ;;  %v1334_v11 = vmax.f32 %v1332_v58, %v1333_v1 }
 0x2fc   :  { %v965_v5 = vpop.f32.mrb[32].mxu0  ;;  %v1068_v9 = vpop.f32.mrb[56].mxu1  ;;  %v1322_v17 = vmax.f32 %v1320_v62, %v1321_v2  ;;  %v1346_v18 = vmax.f32 %v1344_v63, %v1345_v3 }
 0x2fd   :  { %v966_v12 = vadd.f32 %v965_v5, %v7232_v28  ;;  %v1069_v0 = vadd.f32 %v1068_v9, %v7236_v29  ;;  %v967_v13 = vpop.f32.mrb[33].mxu0  ;;  %v1070_v14 = vpop.f32.mrb[57].mxu1  ;;  %v1311_v35 = vrot.slane %v1310_v10, 2  ;;  %v1335_v36 = vrot.slane %v1334_v11, 2 }
 0x2fe   :  { %v968_v20 = vadd.f32 %v967_v13, %v7240_v32  ;;  %v1071_v21 = vadd.f32 %v1070_v14, %v7244_v33  ;;  %v969_v23 = vpop.f32.mrb[34].mxu0  ;;  %v1072_v22 = vpop.f32.mrb[58].mxu1  ;;  %v1323_v40 = vrot.slane %v1322_v17, 2  ;;  %v1347_v41 = vrot.slane %v1346_v18, 2 }
 0x2ff   :  { %v1399_v37 = vmax.f32 %v960_v4, %v966_v12  ;;  %v1423_v61 = vmax.f32 %v1063_v6, %v1069_v0  ;;  %v971_v30 = vpop.f32.mrb[35].mxu0  ;;  %v1074_v31 = vpop.f32.mrb[59].mxu1  ;;  %v970_v38 = vadd.f32 %v969_v23, %v7232_v28  ;;  %v1073_v39 = vadd.f32 %v1072_v22, %v7236_v29 }
 0x300   :  { %v1411_v15 = vmax.f32 %v962_v7, %v968_v20  ;;  %v1435_v34 = vmax.f32 %v1065_v8, %v1071_v21  ;;  %v972_v43 = vadd.f32 %v971_v30, %v7240_v32  ;;  %v1075_v44 = vadd.f32 %v1074_v31, %v7244_v33 }
 0x301   :  { %v1400_v45 = vmax.f32 %v1399_v37, %v970_v38  ;;  %v1424_v46 = vmax.f32 %v1423_v61, %v1073_v39  ;;  %v1312_v51 = vmax.f32 %v1310_v10, %v1311_v35  ;;  %v1336_v52 = vmax.f32 %v1334_v11, %v1335_v36 }
 0x302   :  { %v1412_v47 = vmax.f32 %v1411_v15, %v972_v43  ;;  %v1436_v48 = vmax.f32 %v1435_v34, %v1075_v44  ;;  %v1324_v57 = vmax.f32 %v1322_v17, %v1323_v40  ;;  %v1348_v58 = vmax.f32 %v1346_v18, %v1347_v41 }
 0x303   :  { %v1313_v5 = vrot.slane %v1312_v51, 1  ;;  %v1337_v9 = vrot.slane %v1336_v52, 1  ;;  %v549_v23 = vsub.s32 4, %v7211_v24  ;;  %v557_v22 = vsub.s32 6, %v7211_v24 }
 0x304   :  { %v975_v49 = vpop.f32.mrb[36].mxu0  ;;  %v1078_v50 = vpop.f32.mrb[60].mxu1  ;;  %v1325_v12 = vrot.slane %v1324_v57, 1  ;;  %v1349_v0 = vrot.slane %v1348_v58, 1  ;;  %v553_v37 = vsub.s32 5, %v7211_v24  ;;  %v561_v61 = vsub.s32 7, %v7211_v24 }
 0x305   :  { %v976_v53 = vadd.f32 %v975_v49, %v7232_v28  ;;  %v1079_v54 = vadd.f32 %v1078_v50, %v7236_v29  ;;  %v977_v55 = vpop.f32.mrb[37].mxu0  ;;  %v1080_v56 = vpop.f32.mrb[61].mxu1  ;;  %v7298_v30 = vmax.f32 %v1312_v51, %v1313_v5  ;;  %v7300_v31 = vmax.f32 %v1336_v52, %v1337_v9 }
 0x306   :  { %v978_v59 = vadd.f32 %v977_v55, %v7240_v32  ;;  %v1081_v60 = vadd.f32 %v1080_v56, %v7244_v33  ;;  %v979_v62 = vpop.f32.mrb[38].mxu0  ;;  %v1082_v63 = vpop.f32.mrb[62].mxu1  ;;  %v7304_v38 = vmax.f32 %v1324_v57, %v1325_v12  ;;  %v7306_v39 = vmax.f32 %v1348_v58, %v1349_v0 }
 0x307   :  { %v1401_v42 = vmax.f32 %v1400_v45, %v976_v53  ;;  %v1425_v1 = vmax.f32 %v1424_v46, %v1079_v54  ;;  %v981_v2 = vpop.f32.mrb[39].mxu0  ;;  %v1084_v3 = vpop.f32.mrb[63].mxu1  ;;  %v980_v7 = vadd.f32 %v979_v62, %v7232_v28  ;;  %v1083_v8 = vadd.f32 %v1082_v63, %v7236_v29 }
 0x308   :  { %v1413_v4 = vmax.f32 %v1412_v47, %v978_v59  ;;  %v1437_v6 = vmax.f32 %v1436_v48, %v1081_v60  ;;  %v982_v10 = vadd.f32 %v981_v2, %v7240_v32  ;;  %v1085_v11 = vadd.f32 %v1084_v3, %v7244_v33 }
 0x309   :  { %v1402_v13 = vmax.f32 %v1401_v42, %v980_v7  ;;  %v1426_v14 = vmax.f32 %v1425_v1, %v1083_v8  ;;  %v7315_v57 = vrot.slane %v7222_v25, %v549_v23  ;;  %v7318_v58 = vrot.slane %v7222_v25, %v557_v22 }
 0x30a   :  { %v1414_v17 = vmax.f32 %v1413_v4, %v982_v10  ;;  %v1438_v18 = vmax.f32 %v1437_v6, %v1085_v11  ;;  %v7324_v60 = vrot.slane %v7222_v25, %v561_v61  ;;  %v1496_v42 = vpack.c.bf16 %v7304_v38, %v7304_v38 }
 0x30b   :  { %v1498_v1 = vpack.c.bf16 %v7306_v39, %v7306_v39 }
 0x30c   :  { %v985_v20 = vpop.f32.mrb[40].mxu0  ;;  %v1088_v21 = vpop.f32.mrb[64].mxu1 }
 0x30d   :  { %v986_v15 = vadd.f32 %v985_v20, %v7232_v28  ;;  %v1089_v34 = vadd.f32 %v1088_v21, %v7236_v29  ;;  %v987_v35 = vpop.f32.mrb[41].mxu0  ;;  %v1090_v36 = vpop.f32.mrb[65].mxu1 }
 0x30e   :  { %v988_v40 = vadd.f32 %v987_v35, %v7240_v32  ;;  %v1091_v41 = vadd.f32 %v1090_v36, %v7244_v33  ;;  %v989_v43 = vpop.f32.mrb[42].mxu0  ;;  %v1092_v44 = vpop.f32.mrb[66].mxu1 }
 0x30f   :  { %v1403_v45 = vmax.f32 %v1402_v13, %v986_v15  ;;  %v1427_v46 = vmax.f32 %v1426_v14, %v1089_v34  ;;  %v990_v47 = vadd.f32 %v989_v43, %v7232_v28  ;;  %v1093_v48 = vadd.f32 %v1092_v44, %v7236_v29  ;;  %v991_v49 = vpop.f32.mrb[43].mxu0  ;;  %v1094_v50 = vpop.f32.mrb[67].mxu1 }
 0x310   :  { %v1415_v51 = vmax.f32 %v1414_v17, %v988_v40  ;;  %v1439_v52 = vmax.f32 %v1438_v18, %v1091_v41  ;;  %v992_v53 = vadd.f32 %v991_v49, %v7240_v32  ;;  %v1095_v54 = vadd.f32 %v1094_v50, %v7244_v33 }
 0x311   :  { %v1404_v55 = vmax.f32 %v1403_v45, %v990_v47  ;;  %v1428_v56 = vmax.f32 %v1427_v46, %v1093_v48  ;;  %v7321_v29 = vrot.slane %v7222_v25, %v553_v37  ;;  %v1495_v32 = vpack.c.bf16 %v7298_v30, %v7298_v30 }
 0x312   :  { %v1416_v59 = vmax.f32 %v1415_v51, %v992_v53  ;;  %v1440_v28 = vmax.f32 %v1439_v52, %v1095_v54  ;;  %v1497_v33 = vpack.c.bf16 %v7300_v31, %v7300_v31  ;;  %v1806_v52 = vunpack.c.l.b16 %v1496_v42 }
 0x313   :  { %v1405_v62 = vrot.slane %v1404_v55, 4  ;;  %v1429_v63 = vrot.slane %v1428_v56, 4  ;;  %v1805_v44 = vunpack.c.l.b16 %v1495_v32  ;;  %v1808_v53 = vunpack.c.l.b16 %v1498_v1 }
 0x314   :  { %v1417_v2 = vrot.slane %v1416_v59, 4  ;;  %v1441_v3 = vrot.slane %v1440_v28, 4  ;;  %v1131_v4 = vpop.f32.mrb[44].mxu0  ;;  %v1234_v6 = vpop.f32.mrb[68].mxu1  ;;  %v1807_v45 = vunpack.c.l.b16 %v1497_v33 }
 0x315   :  { %v1406_v25 = vmax.f32 %v1404_v55, %v1405_v62  ;;  %v1430_v7 = vmax.f32 %v1428_v56, %v1429_v63  ;;  %v1132_v8 = vadd.f32 %v1131_v4, %v7315_v57  ;;  %v1235_v5 = vadd.f32 %v1234_v6, %v7318_v58  ;;  %v1133_v9 = vpop.f32.mrb[45].mxu0  ;;  %v1236_v10 = vpop.f32.mrb[69].mxu1 }
 0x316   :  { %v1418_v11 = vmax.f32 %v1416_v59, %v1417_v2  ;;  %v1442_v12 = vmax.f32 %v1440_v28, %v1441_v3  ;;  %v1134_v0 = vadd.f32 %v1133_v9, %v7321_v29  ;;  %v1237_v13 = vadd.f32 %v1236_v10, %v7324_v60  ;;  %v1135_v14 = vpop.f32.mrb[46].mxu0  ;;  %v1238_v17 = vpop.f32.mrb[70].mxu1 }
 0x317   :  { %v1407_v18 = vrot.slane %v1406_v25, 2  ;;  %v1431_v20 = vrot.slane %v1430_v7, 2  ;;  %v1136_v21 = vadd.f32 %v1135_v14, %v7315_v57  ;;  %v1239_v23 = vadd.f32 %v1238_v17, %v7318_v58  ;;  %v1137_v22 = vpop.f32.mrb[47].mxu0  ;;  %v1240_v37 = vpop.f32.mrb[71].mxu1 }
 0x318   :  { %v1419_v61 = vrot.slane %v1418_v11, 2  ;;  %v1443_v30 = vrot.slane %v1442_v12, 2  ;;  %v1138_v31 = vadd.f32 %v1137_v22, %v7321_v29  ;;  %v1241_v15 = vadd.f32 %v1240_v37, %v7324_v60 }
 0x319   :  { %v1408_v34 = vmax.f32 %v1406_v25, %v1407_v18  ;;  %v1432_v35 = vmax.f32 %v1430_v7, %v1431_v20  ;;  %v1351_v36 = vmax.f32 %v1132_v8, %v1136_v21  ;;  %v1375_v38 = vmax.f32 %v1235_v5, %v1239_v23 }
 0x31a   :  { %v1420_v39 = vmax.f32 %v1418_v11, %v1419_v61  ;;  %v1444_v40 = vmax.f32 %v1442_v12, %v1443_v30  ;;  %v1363_v41 = vmax.f32 %v1134_v0, %v1138_v31  ;;  %v1387_v43 = vmax.f32 %v1237_v13, %v1241_v15 }
 0x31b   :  { %v1409_v46 = vrot.slane %v1408_v34, 1  ;;  %v1433_v47 = vrot.slane %v1432_v35, 1 }
 0x31c   :  { %v1421_v48 = vrot.slane %v1420_v39, 1  ;;  %v1445_v49 = vrot.slane %v1444_v40, 1  ;;  %v1141_v50 = vpop.f32.mrb[48].mxu0  ;;  %v1244_v51 = vpop.f32.mrb[72].mxu1 }
 0x31d   :  { %v1410_v54 = vmax.f32 %v1408_v34, %v1409_v46  ;;  %v1434_v55 = vmax.f32 %v1432_v35, %v1433_v47  ;;  %v1142_v56 = vadd.f32 %v1141_v50, %v7315_v57  ;;  %v1245_v59 = vadd.f32 %v1244_v51, %v7318_v58  ;;  %v1143_v28 = vpop.f32.mrb[49].mxu0  ;;  %v1246_v62 = vpop.f32.mrb[73].mxu1 }
 0x31e   :  { %v1422_v63 = vmax.f32 %v1420_v39, %v1421_v48  ;;  %v1446_v2 = vmax.f32 %v1444_v40, %v1445_v49  ;;  %v1144_v32 = vadd.f32 %v1143_v28, %v7321_v29  ;;  %v1247_v33 = vadd.f32 %v1246_v62, %v7324_v60  ;;  %v1145_v3 = vpop.f32.mrb[50].mxu0  ;;  %v1248_v4 = vpop.f32.mrb[74].mxu1  ;;  %v6151_v48 = vld [vmem:[#allocation5 + $0x200] ss:$16 sps:$4 sm:$0xff]   ;;  %v6154_v49 = vld [vmem:[#allocation5 + $0x208] ss:$16 sps:$4 sm:$0xff]  }
 0x31f   :  { %v1503_v6 = vpack.c.bf16 %v1410_v54, %v1410_v54  ;;  %v1505_v25 = vpack.c.bf16 %v1434_v55, %v1434_v55  ;;  %v1352_v42 = vmax.f32 %v1351_v36, %v1142_v56  ;;  %v1376_v1 = vmax.f32 %v1375_v38, %v1245_v59  ;;  %v1147_v7 = vpop.f32.mrb[51].mxu0  ;;  %v1250_v8 = vpop.f32.mrb[75].mxu1 }
 0x320   :  { %v1504_v5 = vpack.c.bf16 %v1422_v63, %v1422_v63  ;;  %v1506_v9 = vpack.c.bf16 %v1446_v2, %v1446_v2  ;;  %v1364_v10 = vmax.f32 %v1363_v41, %v1144_v32  ;;  %v1388_v11 = vmax.f32 %v1387_v43, %v1247_v33  ;;  %v6159_v2 = vld [vmem:[#allocation5 + $0x224] ss:$16 sps:$4 sm:$0xff]   ;;  %v6162_v32 = vld [vmem:[#allocation5 + $0x22c] ss:$16 sps:$4 sm:$0xff]  }
 0x321   :  { %v1813_v12 = vunpack.c.l.b16 %v1503_v6  ;;  %v1815_v0 = vunpack.c.l.b16 %v1505_v25  ;;  %v1146_v13 = vadd.f32 %v1145_v3, %v7315_v57  ;;  %v1249_v14 = vadd.f32 %v1248_v4, %v7318_v58 }
 0x322   :  { %v1148_v17 = vadd.f32 %v1147_v7, %v7321_v29  ;;  %v1251_v18 = vadd.f32 %v1250_v8, %v7324_v60  ;;  %v1814_v20 = vunpack.c.l.b16 %v1504_v5  ;;  %v1816_v21 = vunpack.c.l.b16 %v1506_v9  ;;  %v6165_v7 = vld [vmem:[#allocation5 + $0x244] ss:$16 sps:$4 sm:$0xff]   ;;  %v6168_v9 = vld [vmem:[#allocation5 + $0x24c] ss:$16 sps:$4 sm:$0xff]  }
 0x323   :  { %v1353_v23 = vmax.f32 %v1352_v42, %v1146_v13  ;;  %v1377_v22 = vmax.f32 %v1376_v1, %v1249_v14  ;;  %v1822_v37 = vsel %vm1821_vm4, %v1813_v12, %v1805_v44  ;;  %v7352_v61 = vsel %vm1821_vm4, %v1815_v0, %v1807_v45  ;;  %v6157_v42 = vld [vmem:[#allocation5 + $0x220] ss:$16 sps:$4 sm:$0xff]   ;;  %v6160_v1 = vld [vmem:[#allocation5 + $0x228] ss:$16 sps:$4 sm:$0xff]  }
 0x324   :  { %v1365_v30 = vmax.f32 %v1364_v10, %v1148_v17  ;;  %v1389_v31 = vmax.f32 %v1388_v11, %v1251_v18  ;;  %v1151_v15 = vpop.f32.mrb[52].mxu0  ;;  %v1254_v34 = vpop.f32.mrb[76].mxu1  ;;  %v1823_v35 = vsel %vm1821_vm4, %v1814_v20, %v1806_v52  ;;  %v1825_v43 = vsel %vm1821_vm4, %v1816_v21, %v1808_v53  ;;  %v6163_v20 = vld [vmem:[#allocation5 + $0x240] ss:$16 sps:$4 sm:$0xff]   ;;  %v6166_v21 = vld [vmem:[#allocation5 + $0x248] ss:$16 sps:$4 sm:$0xff]  }
 0x325   :  { %v1152_v36 = vadd.f32 %v1151_v15, %v7315_v57  ;;  %v1255_v38 = vadd.f32 %v1254_v34, %v7318_v58  ;;  %v1153_v39 = vpop.f32.mrb[53].mxu0  ;;  %v1256_v40 = vpop.f32.mrb[77].mxu1  ;;  %v1831_v41 = vpack.c.b16 %v1823_v35, %v1823_v35  ;;  %v1830_v50 = vpack.c.b16 %v1822_v37, %v1822_v37  ;;  %v6174_v15 = vld [vmem:[#allocation5 + $0x26c] ss:$16 sps:$4 sm:$0xff]  }
 0x326   :  { %v1154_v44 = vadd.f32 %v1153_v39, %v7321_v29  ;;  %v1257_v45 = vadd.f32 %v1256_v40, %v7324_v60  ;;  %v1155_v46 = vpop.f32.mrb[54].mxu0  ;;  %v1258_v47 = vpop.f32.mrb[78].mxu1  ;;  %v1833_v4 = vpack.c.b16 %v1825_v43, %v1825_v43  ;;  %v6177_v39 = vld [vmem:[#allocation5 + $0x284] ss:$16 sps:$4 sm:$0xff]  }
 0x327   :  { %v1354_v51 = vmax.f32 %v1353_v23, %v1152_v36  ;;  %v1378_v52 = vmax.f32 %v1377_v22, %v1255_v38  ;;  %v1156_v54 = vadd.f32 %v1155_v46, %v7315_v57  ;;  %v1259_v55 = vadd.f32 %v1258_v47, %v7318_v58  ;;  %v1157_v56 = vpop.f32.mrb[55].mxu0  ;;  %v1260_v59 = vpop.f32.mrb[79].mxu1  ;;  %3158 = vmatprep.mubr.bf16.mxu0 %v1831_v41  ;;  %v6169_v36 = vld [vmem:[#allocation5 + $0x260] ss:$16 sps:$4 sm:$0xff]   ;;  %v6172_v38 = vld [vmem:[#allocation5 + $0x268] ss:$16 sps:$4 sm:$0xff]  }
 0x328   :  { %v1366_v28 = vmax.f32 %v1365_v30, %v1154_v44  ;;  %v1390_v53 = vmax.f32 %v1389_v31, %v1257_v45  ;;  %v1158_v62 = vadd.f32 %v1157_v56, %v7321_v29  ;;  %v1261_v63 = vadd.f32 %v1260_v59, %v7324_v60  ;;  %3322 = vmatprep.mubr.bf16.mxu1 %v1831_v41  ;;  %v6171_v31 = vld [vmem:[#allocation5 + $0x264] ss:$16 sps:$4 sm:$0xff]   ;;  %v6180_v44 = vld [vmem:[#allocation5 + $0x28c] ss:$16 sps:$4 sm:$0xff]   ;;  %v6175_v59 = vld [vmem:[#allocation5 + $0x280] ss:$16 sps:$4 sm:$0xff]  }
 0x329   :  { %v1355_v33 = vmax.f32 %v1354_v51, %v1156_v54  ;;  %v1379_v3 = vmax.f32 %v1378_v52, %v1259_v55  ;;  %3159 = vmatmul.mubr.bf16.vlgmr.msra.gmra.mrb[72].mxu0 %v1830_v50  ;;  %3323 = vmatmul.mubr.bf16.vlgmr.msra.gmra.mrb[96].mxu1 %v1830_v50 }
 0x32a   :  { %v1367_v6 = vmax.f32 %v1366_v28, %v1158_v62  ;;  %v1391_v25 = vmax.f32 %v1390_v53, %v1261_v63  ;;  %3168 = vmatpush1.bf16.msra.mxu0 %v6151_v48  ;;  %3332 = vmatpush1.bf16.msra.mxu1 %v6154_v49  ;;  %v6178_v28 = vld [vmem:[#allocation5 + $0x288] ss:$16 sps:$4 sm:$0xff]  }
 0x32b   :  { %3199 = vmatprep.mubr.bf16.mxu0 %v1833_v4  ;;  %3363 = vmatprep.mubr.bf16.mxu1 %v1833_v4  ;;  %v6186_v4 = vld [vmem:[#allocation5 + $0x2ac] ss:$16 sps:$4 sm:$0xff]  }
 0x32c   :  { %3169 = vmatprep.subr.bf16.mxu0 %v6159_v2  ;;  %3333 = vmatprep.subr.bf16.mxu1 %v6162_v32  ;;  %v1161_v8 = vpop.f32.mrb[56].mxu0  ;;  %v1264_v5 = vpop.f32.mrb[80].mxu1  ;;  %v6183_v32 = vld [vmem:[#allocation5 + $0x2a4] ss:$16 sps:$4 sm:$0xff]  }
 0x32d   :  { %v1162_v10 = vadd.f32 %v1161_v8, %v7315_v57  ;;  %v1265_v11 = vadd.f32 %v1264_v5, %v7318_v58  ;;  %v1163_v12 = vpop.f32.mrb[57].mxu0  ;;  %v1266_v0 = vpop.f32.mrb[81].mxu1  ;;  %v6181_v8 = vld [vmem:[#allocation5 + $0x2a0] ss:$16 sps:$4 sm:$0xff]   ;;  %v6184_v5 = vld [vmem:[#allocation5 + $0x2a8] ss:$16 sps:$4 sm:$0xff]  }
 0x32e   :  { %3170 = vmatpush1.bf16.msra.mxu0 %v6157_v42  ;;  %3334 = vmatpush1.bf16.msra.mxu1 %v6160_v1  ;;  %v1164_v13 = vadd.f32 %v1163_v12, %v7321_v29  ;;  %v1267_v14 = vadd.f32 %v1266_v0, %v7324_v60  ;;  %v1165_v17 = vpop.f32.mrb[58].mxu0  ;;  %v1268_v18 = vpop.f32.mrb[82].mxu1  ;;  %v6189_v12 = vld [vmem:[#allocation5 + $0x2c4] ss:$16 sps:$4 sm:$0xff]   ;;  %v6192_v0 = vld [vmem:[#allocation5 + $0x2cc] ss:$16 sps:$4 sm:$0xff]  }
 0x32f   :  { %v7368_v23 = vmax.f32 %v1355_v33, %v1162_v10  ;;  %v7370_v22 = vmax.f32 %v1379_v3, %v1265_v11  ;;  %v1167_v37 = vpop.f32.mrb[59].mxu0  ;;  %v1270_v30 = vpop.f32.mrb[83].mxu1  ;;  %3171 = vmatprep.subr.bf16.mxu0 %v6165_v7  ;;  %3335 = vmatprep.subr.bf16.mxu1 %v6168_v9  ;;  %v1166_v40 = vadd.f32 %v1165_v17, %v7315_v57 }
 0x330   :  { %v7372_v34 = vmax.f32 %v1367_v6, %v1164_v13  ;;  %v7374_v35 = vmax.f32 %v1391_v25, %v1267_v14  ;;  %v1269_v45 = vadd.f32 %v1268_v18, %v7318_v58  ;;  %v1168_v46 = vadd.f32 %v1167_v37, %v7321_v29 }
 0x331   :  { %v1271_v51 = vadd.f32 %v1270_v30, %v7324_v60  ;;  %v1357_v42 = vrot.slane %v7368_v23, 4  ;;  %v1381_v9 = vrot.slane %v7370_v22, 4 }
 0x332   :  { %3172 = vmatpush1.bf16.msra.mxu0 %v6163_v20  ;;  %3336 = vmatpush1.bf16.msra.mxu1 %v6166_v21  ;;  %v1369_v20 = vrot.slane %v7372_v34, 4  ;;  %v1393_v21 = vrot.slane %v7374_v35, 4 }
 0x333   :  { %3173 = vmatprep.subr.bf16.mxu0 %v6171_v31  ;;  %3337 = vmatprep.subr.bf16.mxu1 %v6174_v15 }
 0x334   :  { %v1171_v41 = vpop.f32.mrb[60].mxu0  ;;  %v1274_v43 = vpop.f32.mrb[84].mxu1 }
 0x335   :  { %v1172_v47 = vadd.f32 %v1171_v41, %v7315_v57  ;;  %v1275_v48 = vadd.f32 %v1274_v43, %v7318_v58  ;;  %v1173_v49 = vpop.f32.mrb[61].mxu0  ;;  %v1276_v50 = vpop.f32.mrb[85].mxu1  ;;  %v6187_v41 = vld [vmem:[#allocation5 + $0x2c0] ss:$16 sps:$4 sm:$0xff]   ;;  %v6190_v43 = vld [vmem:[#allocation5 + $0x2c8] ss:$16 sps:$4 sm:$0xff]  }
 0x336   :  { %3174 = vmatpush1.bf16.msra.mxu0 %v6169_v36  ;;  %3338 = vmatpush1.bf16.msra.mxu1 %v6172_v38  ;;  %v1174_v52 = vadd.f32 %v1173_v49, %v7321_v29  ;;  %v1277_v54 = vadd.f32 %v1276_v50, %v7324_v60  ;;  %v1175_v55 = vpop.f32.mrb[62].mxu0  ;;  %v1278_v56 = vpop.f32.mrb[86].mxu1  ;;  %v1358_v36 = vmax.f32 %v7368_v23, %v1357_v42  ;;  %v6195_v49 = vld [vmem:[#allocation5 + $0x2e4] ss:$16 sps:$4 sm:$0xff]   ;;  %v6198_v50 = vld [vmem:[#allocation5 + $0x2ec] ss:$16 sps:$4 sm:$0xff]  }
 0x337   :  { %v1447_v53 = vmax.f32 %v1166_v40, %v1172_v47  ;;  %v1471_v62 = vmax.f32 %v1269_v45, %v1275_v48  ;;  %v1177_v63 = vpop.f32.mrb[63].mxu0  ;;  %v1280_v2 = vpop.f32.mrb[87].mxu1  ;;  %3175 = vmatprep.subr.bf16.mxu0 %v6177_v39  ;;  %3339 = vmatprep.subr.bf16.mxu1 %v6180_v44  ;;  %v1176_v6 = vadd.f32 %v1175_v55, %v7315_v57 }
 0x338   :  { %v1459_v33 = vmax.f32 %v1168_v46, %v1174_v52  ;;  %v1483_v3 = vmax.f32 %v1271_v51, %v1277_v54  ;;  %v1279_v25 = vadd.f32 %v1278_v56, %v7318_v58  ;;  %v1178_v1 = vadd.f32 %v1177_v63, %v7321_v29 }
 0x339   :  { %v1281_v7 = vadd.f32 %v1280_v2, %v7324_v60  ;;  %v1448_v10 = vmax.f32 %v1447_v53, %v1176_v6  ;;  %v7397_v44 = vmax.f32 %v7370_v22, %v1381_v9  ;;  %v1370_v55 = vmax.f32 %v7372_v34, %v1369_v20  ;;  %v6193_v2 = vld [vmem:[#allocation5 + $0x2e0] ss:$16 sps:$4 sm:$0xff]  }
 0x33a   :  { %3176 = vmatpush1.bf16.msra.mxu0 %v6175_v59  ;;  %3340 = vmatpush1.bf16.msra.mxu1 %v6178_v28  ;;  %v1472_v11 = vmax.f32 %v1471_v62, %v1279_v25  ;;  %v1460_v13 = vmax.f32 %v1459_v33, %v1178_v1  ;;  %v1394_v22 = vmax.f32 %v7374_v35, %v1393_v21  ;;  %v1359_v28 = vrot.slane %v1358_v36, 2  ;;  %v6204_v35 = vld [vmem:[#allocation5 + $0x30c] ss:$16 sps:$4 sm:$0xff]   ;;  %v6199_v9 = vld [vmem:[#allocation5 + $0x300] ss:$16 sps:$4 sm:$0xff]  }
 0x33b   :  { %3177 = vmatprep.subr.bf16.mxu0 %v6183_v32  ;;  %v1484_v14 = vmax.f32 %v1483_v3, %v1281_v7  ;;  %3341 = vmatprep.subr.bf16.mxu1 %v6186_v4  ;;  %v6196_v32 = vld [vmem:[#allocation5 + $0x2e8] ss:$16 sps:$4 sm:$0xff]   ;;  %v6201_v3 = vld [vmem:[#allocation5 + $0x304] ss:$16 sps:$4 sm:$0xff]   ;;  %v1383_v25 = vrot.slane %v7397_v44, 2  ;;  %v1371_v42 = vrot.slane %v1370_v55, 2 }
 0x33c   :  { %v1181_v17 = vpop.f32.mrb[64].mxu0  ;;  %v1284_v18 = vpop.f32.mrb[88].mxu1 }
 0x33d   :  { %v1182_v37 = vadd.f32 %v1181_v17, %v7315_v57  ;;  %v1285_v30 = vadd.f32 %v1284_v18, %v7318_v58  ;;  %v1183_v31 = vpop.f32.mrb[65].mxu0  ;;  %v1286_v15 = vpop.f32.mrb[89].mxu1  ;;  %v6202_v17 = vld [vmem:[#allocation5 + $0x308] ss:$16 sps:$4 sm:$0xff]  }
 0x33e   :  { %3178 = vmatpush1.bf16.msra.mxu0 %v6181_v8  ;;  %3342 = vmatpush1.bf16.msra.mxu1 %v6184_v5  ;;  %v1184_v38 = vadd.f32 %v1183_v31, %v7321_v29  ;;  %v1185_v39 = vpop.f32.mrb[66].mxu0  ;;  %v1288_v40 = vpop.f32.mrb[90].mxu1  ;;  %v1287_v51 = vadd.f32 %v1286_v15, %v7324_v60  ;;  %v6207_v15 = vld [vmem:[#allocation5 + $0x324] ss:$16 sps:$4 sm:$0xff]  }
 0x33f   :  { %v1449_v45 = vmax.f32 %v1448_v10, %v1182_v37  ;;  %v1473_v46 = vmax.f32 %v1472_v11, %v1285_v30  ;;  %v1187_v47 = vpop.f32.mrb[67].mxu0  ;;  %v1290_v48 = vpop.f32.mrb[91].mxu1  ;;  %3179 = vmatprep.subr.bf16.mxu0 %v6189_v12  ;;  %3343 = vmatprep.subr.bf16.mxu1 %v6192_v0  ;;  %v1186_v52 = vadd.f32 %v1185_v39, %v7315_v57  ;;  %v1395_v11 = vrot.slane %v1394_v22, 2 }
 0x340   :  { %v1461_v23 = vmax.f32 %v1460_v13, %v1184_v38  ;;  %v1289_v54 = vadd.f32 %v1288_v40, %v7318_v58  ;;  %v1188_v56 = vadd.f32 %v1187_v47, %v7321_v29  ;;  %v1291_v59 = vadd.f32 %v1290_v48, %v7324_v60 }
 0x341   :  { %v1485_v53 = vmax.f32 %v1484_v14, %v1287_v51  ;;  %v1450_v62 = vmax.f32 %v1449_v45, %v1186_v52  ;;  %v1360_v10 = vmax.f32 %v1358_v36, %v1359_v28  ;;  %v6210_v36 = vld [vmem:[#allocation5 + $0x32c] ss:$16 sps:$4 sm:$0xff]   ;;  %v1372_v45 = vmax.f32 %v1370_v55, %v1371_v42 }
 0x342   :  { %v1474_v63 = vmax.f32 %v1473_v46, %v1289_v54  ;;  %3180 = vmatpush1.bf16.msra.mxu0 %v6187_v41  ;;  %3344 = vmatpush1.bf16.msra.mxu1 %v6190_v43  ;;  %v1462_v33 = vmax.f32 %v1461_v23, %v1188_v56  ;;  %v1384_v43 = vmax.f32 %v7397_v44, %v1383_v25  ;;  %v6216_v52 = vld [vmem:[#allocation5 + $0x34c] ss:$16 sps:$4 sm:$0xff]  }
 0x343   :  { %3181 = vmatprep.subr.bf16.mxu0 %v6195_v49  ;;  %3345 = vmatprep.subr.bf16.mxu1 %v6198_v50  ;;  %v1486_v4 = vmax.f32 %v1485_v53, %v1291_v59  ;;  %v6205_v49 = vld [vmem:[#allocation5 + $0x320] ss:$16 sps:$4 sm:$0xff]   ;;  %v6208_v50 = vld [vmem:[#allocation5 + $0x328] ss:$16 sps:$4 sm:$0xff]   ;;  %v1373_v55 = vrot.slane %v1372_v45, 1 }
 0x344   :  { %v1191_v34 = vpop.f32.mrb[68].mxu0  ;;  %v1294_v6 = vpop.f32.mrb[92].mxu1  ;;  %v1385_v44 = vrot.slane %v1384_v43, 1 }
 0x345   :  { %v1192_v1 = vadd.f32 %v1191_v34, %v7315_v57  ;;  %v1295_v7 = vadd.f32 %v1294_v6, %v7318_v58  ;;  %v1193_v8 = vpop.f32.mrb[69].mxu0  ;;  %v1296_v5 = vpop.f32.mrb[93].mxu1  ;;  %v1374_v42 = vmax.f32 %v1372_v45, %v1373_v55  ;;  %v6231_v45 = vld [vmem:[#allocation5 + $0x3a4] ss:$16 sps:$4 sm:$0xff]  }
 0x346   :  { %3182 = vmatpush1.bf16.msra.mxu0 %v6193_v2  ;;  %3346 = vmatpush1.bf16.msra.mxu1 %v6196_v32  ;;  %v1194_v12 = vadd.f32 %v1193_v8, %v7321_v29  ;;  %v1297_v0 = vadd.f32 %v1296_v5, %v7324_v60  ;;  %v1195_v13 = vpop.f32.mrb[70].mxu0  ;;  %v1298_v14 = vpop.f32.mrb[94].mxu1  ;;  %v6214_v2 = vld [vmem:[#allocation5 + $0x348] ss:$16 sps:$4 sm:$0xff]   ;;  %v1386_v25 = vmax.f32 %v1384_v43, %v1385_v44  ;;  %v6240_v44 = vld [vmem:[#allocation5 + $0x3cc] ss:$16 sps:$4 sm:$0xff]  }
 0x347   :  { %v1451_v18 = vmax.f32 %v1450_v62, %v1192_v1  ;;  %v1475_v20 = vmax.f32 %v1474_v63, %v1295_v7  ;;  %v1196_v21 = vadd.f32 %v1195_v13, %v7315_v57  ;;  %v1299_v37 = vadd.f32 %v1298_v14, %v7318_v58  ;;  %v1197_v30 = vpop.f32.mrb[71].mxu0  ;;  %v1300_v31 = vpop.f32.mrb[95].mxu1  ;;  %3183 = vmatprep.subr.bf16.mxu0 %v6201_v3  ;;  %v6211_v63 = vld [vmem:[#allocation5 + $0x340] ss:$16 sps:$4 sm:$0xff]   ;;  %v6219_v3 = vld [vmem:[#allocation5 + $0x364] ss:$16 sps:$4 sm:$0xff]  }
 0x348   :  { %v1463_v38 = vmax.f32 %v1462_v33, %v1194_v12  ;;  %v1487_v39 = vmax.f32 %v1486_v4, %v1297_v0  ;;  %v1198_v40 = vadd.f32 %v1197_v30, %v7321_v29  ;;  %v1301_v41 = vadd.f32 %v1300_v31, %v7324_v60  ;;  %3347 = vmatprep.subr.bf16.mxu1 %v6204_v35  ;;  %v6213_v29 = vld [vmem:[#allocation5 + $0x344] ss:$16 sps:$4 sm:$0xff]   ;;  %v6222_v4 = vld [vmem:[#allocation5 + $0x36c] ss:$16 sps:$4 sm:$0xff]   ;;  %v6220_v12 = vld [vmem:[#allocation5 + $0x368] ss:$16 sps:$4 sm:$0xff]  }
 0x349   :  { %v1452_v46 = vmax.f32 %v1451_v18, %v1196_v21  ;;  %v1476_v47 = vmax.f32 %v1475_v20, %v1299_v37  ;;  %v1396_v57 = vmax.f32 %v1394_v22, %v1395_v11  ;;  %v1361_v60 = vrot.slane %v1360_v10, 1  ;;  %v6217_v11 = vld [vmem:[#allocation5 + $0x360] ss:$16 sps:$4 sm:$0xff]   ;;  %v6225_v14 = vld [vmem:[#allocation5 + $0x384] ss:$16 sps:$4 sm:$0xff]  }
 0x34a   :  { %v1464_v48 = vmax.f32 %v1463_v38, %v1198_v40  ;;  %v1488_v58 = vmax.f32 %v1487_v39, %v1301_v41  ;;  %3184 = vmatpush1.bf16.msra.mxu0 %v6199_v9  ;;  %3348 = vmatpush1.bf16.msra.mxu1 %v6202_v17  ;;  %v6228_v17 = vld [vmem:[#allocation5 + $0x38c] ss:$16 sps:$4 sm:$0xff]   ;;  %v1501_v21 = vpack.c.bf16 %v1386_v25, %v1386_v25  ;;  %v6223_v39 = vld [vmem:[#allocation5 + $0x380] ss:$16 sps:$4 sm:$0xff]   ;;  %v6226_v40 = vld [vmem:[#allocation5 + $0x388] ss:$16 sps:$4 sm:$0xff]  }
 0x34b   :  { %v1453_v23 = vrot.slane %v1452_v46, 4  ;;  %v1477_v51 = vrot.slane %v1476_v47, 4  ;;  %3185 = vmatprep.subr.bf16.mxu0 %v6207_v15  ;;  %3349 = vmatprep.subr.bf16.mxu1 %v6210_v36  ;;  %v1397_v22 = vrot.slane %v1396_v57, 1  ;;  %v1362_v34 = vmax.f32 %v1360_v10, %v1361_v60 }
 0x34c   :  { %v1465_v54 = vrot.slane %v1464_v48, 4  ;;  %v1489_v56 = vrot.slane %v1488_v58, 4  ;;  %v1500_v37 = vpack.c.bf16 %v1374_v42, %v1374_v42  ;;  %v6255_v42 = vld [vmem:[#allocation5 + $0x424] ss:$16 sps:$4 sm:$0xff]  }
 0x34d   :  { %v1454_v59 = vmax.f32 %v1452_v46, %v1453_v23  ;;  %v1478_v28 = vmax.f32 %v1476_v47, %v1477_v51  ;;  %v1398_v8 = vmax.f32 %v1396_v57, %v1397_v22  ;;  %v1499_v10 = vpack.c.bf16 %v1362_v34, %v1362_v34  ;;  %v6234_v46 = vld [vmem:[#allocation5 + $0x3ac] ss:$16 sps:$4 sm:$0xff]   ;;  %v6229_v23 = vld [vmem:[#allocation5 + $0x3a0] ss:$16 sps:$4 sm:$0xff]   ;;  %v6232_v51 = vld [vmem:[#allocation5 + $0x3a8] ss:$16 sps:$4 sm:$0xff]  }
 0x34e   :  { %v1466_v53 = vmax.f32 %v1464_v48, %v1465_v54  ;;  %v1490_v62 = vmax.f32 %v1488_v58, %v1489_v56  ;;  %3186 = vmatpush1.bf16.msra.mxu0 %v6205_v49  ;;  %3350 = vmatpush1.bf16.msra.mxu1 %v6208_v50  ;;  %v1811_v58 = vunpack.c.l.b16 %v1501_v21  ;;  %v6237_v56 = vld [vmem:[#allocation5 + $0x3c4] ss:$16 sps:$4 sm:$0xff]   ;;  %v6247_v34 = vld [vmem:[#allocation5 + $0x400] ss:$16 sps:$4 sm:$0xff]  }
 0x34f   :  { %v1455_v32 = vrot.slane %v1454_v59, 2  ;;  %v1479_v33 = vrot.slane %v1478_v28, 2  ;;  %3187 = vmatprep.subr.bf16.mxu0 %v6213_v29  ;;  %3351 = vmatprep.subr.bf16.mxu1 %v6216_v52  ;;  %v1502_v15 = vpack.c.bf16 %v1398_v8, %v1398_v8  ;;  %v1809_v48 = vunpack.c.l.b16 %v1499_v10  ;;  %v6256_v8 = vld [vmem:[#allocation5 + $0x428] ss:$16 sps:$4 sm:$0xff]   ;;  %v6276_v10 = vld [vmem:[#allocation5 + $0x48c] ss:$16 sps:$4 sm:$0xff]  }
 0x350   :  { %v1467_v6 = vrot.slane %v1466_v53, 2  ;;  %v1491_v35 = vrot.slane %v1490_v62, 2  ;;  %v1810_v29 = vunpack.c.l.b16 %v1500_v37  ;;  %v6279_v21 = vld [vmem:[#allocation5 + $0x4a4] ss:$16 sps:$4 sm:$0xff]   ;;  %v6282_v37 = vld [vmem:[#allocation5 + $0x4ac] ss:$16 sps:$4 sm:$0xff]  }
 0x351   :  { %v1456_v1 = vmax.f32 %v1454_v59, %v1455_v32  ;;  %v1480_v7 = vmax.f32 %v1478_v28, %v1479_v33  ;;  %v1812_v60 = vunpack.c.l.b16 %v1502_v15  ;;  %v6241_v32 = vld [vmem:[#allocation5 + $0x3e0] ss:$16 sps:$4 sm:$0xff]   ;;  %v6244_v33 = vld [vmem:[#allocation5 + $0x3e8] ss:$16 sps:$4 sm:$0xff]   ;;  %v6285_v15 = vld [vmem:[#allocation5 + $0x4c4] ss:$16 sps:$4 sm:$0xff]  }
 0x352   :  { %v1468_v5 = vmax.f32 %v1466_v53, %v1467_v6  ;;  %v1492_v9 = vmax.f32 %v1490_v62, %v1491_v35  ;;  %3188 = vmatpush1.bf16.msra.mxu0 %v6211_v63  ;;  %3352 = vmatpush1.bf16.msra.mxu1 %v6214_v2  ;;  %v6235_v53 = vld [vmem:[#allocation5 + $0x3c0] ss:$16 sps:$4 sm:$0xff]   ;;  %v6238_v62 = vld [vmem:[#allocation5 + $0x3c8] ss:$16 sps:$4 sm:$0xff]   ;;  %v6243_v63 = vld [vmem:[#allocation5 + $0x3e4] ss:$16 sps:$4 sm:$0xff]   ;;  %v1832_v6 = vpack.c.b16 %v7352_v61, %v7352_v61 }
 0x353   :  { %v1457_v0 = vrot.slane %v1456_v1, 1  ;;  %v1481_v13 = vrot.slane %v1480_v7, 1  ;;  %3189 = vmatprep.subr.bf16.mxu0 %v6219_v3  ;;  %3353 = vmatprep.subr.bf16.mxu1 %v6222_v4  ;;  %v6246_v2 = vld [vmem:[#allocation5 + $0x3ec] ss:$16 sps:$4 sm:$0xff]   ;;  %v6249_v3 = vld [vmem:[#allocation5 + $0x404] ss:$16 sps:$4 sm:$0xff]  }
 0x354   :  { %v1469_v18 = vrot.slane %v1468_v5, 1  ;;  %v1493_v20 = vrot.slane %v1492_v9, 1  ;;  %v6252_v4 = vld [vmem:[#allocation5 + $0x40c] ss:$16 sps:$4 sm:$0xff]   ;;  %v6250_v35 = vld [vmem:[#allocation5 + $0x408] ss:$16 sps:$4 sm:$0xff]  }
 0x355   :  { %v1458_v30 = vmax.f32 %v1456_v1, %v1457_v0  ;;  %v1482_v31 = vmax.f32 %v1480_v7, %v1481_v13  ;;  %v6258_v1 = vld [vmem:[#allocation5 + $0x42c] ss:$16 sps:$4 sm:$0xff]   ;;  %v6253_v7 = vld [vmem:[#allocation5 + $0x420] ss:$16 sps:$4 sm:$0xff]  }
 0x356   :  { %v1470_v36 = vmax.f32 %v1468_v5, %v1469_v18  ;;  %v1494_v38 = vmax.f32 %v1492_v9, %v1493_v20  ;;  %3190 = vmatpush1.bf16.msra.mxu0 %v6217_v11  ;;  %3354 = vmatpush1.bf16.msra.mxu1 %v6220_v12  ;;  %v6261_v5 = vld [vmem:[#allocation5 + $0x444] ss:$16 sps:$4 sm:$0xff]   ;;  %v6264_v9 = vld [vmem:[#allocation5 + $0x44c] ss:$16 sps:$4 sm:$0xff]   ;;  %v6259_v61 = vld [vmem:[#allocation5 + $0x440] ss:$16 sps:$4 sm:$0xff]  }
 0x357   :  { %v1507_v41 = vpack.c.bf16 %v1458_v30, %v1458_v30  ;;  %v1509_v43 = vpack.c.bf16 %v1482_v31, %v1482_v31  ;;  %3191 = vmatprep.subr.bf16.mxu0 %v6225_v14  ;;  %3355 = vmatprep.subr.bf16.mxu1 %v6228_v17  ;;  %v6262_v11 = vld [vmem:[#allocation5 + $0x448] ss:$16 sps:$4 sm:$0xff]   ;;  %v6267_v12 = vld [vmem:[#allocation5 + $0x464] ss:$16 sps:$4 sm:$0xff]   ;;  %v6270_v0 = vld [vmem:[#allocation5 + $0x46c] ss:$16 sps:$4 sm:$0xff]  }
 0x358   :  { %v1508_v47 = vpack.c.bf16 %v1470_v36, %v1470_v36  ;;  %v1510_v57 = vpack.c.bf16 %v1494_v38, %v1494_v38  ;;  %v6265_v13 = vld [vmem:[#allocation5 + $0x460] ss:$16 sps:$4 sm:$0xff]   ;;  %v6268_v14 = vld [vmem:[#allocation5 + $0x468] ss:$16 sps:$4 sm:$0xff]   ;;  %v6273_v17 = vld [vmem:[#allocation5 + $0x484] ss:$16 sps:$4 sm:$0xff]  }
 0x359   :  { %v1817_v49 = vunpack.c.l.b16 %v1507_v41  ;;  %v1819_v50 = vunpack.c.l.b16 %v1509_v43  ;;  %v6271_v18 = vld [vmem:[#allocation5 + $0x480] ss:$16 sps:$4 sm:$0xff]   ;;  %v6274_v20 = vld [vmem:[#allocation5 + $0x488] ss:$16 sps:$4 sm:$0xff]   ;;  %v6288_v36 = vld [vmem:[#allocation5 + $0x4cc] ss:$16 sps:$4 sm:$0xff]  }
 0x35a   :  { %3192 = vmatpush1.bf16.msra.mxu0 %v6223_v39  ;;  %3356 = vmatpush1.bf16.msra.mxu1 %v6226_v40  ;;  %v1818_v52 = vunpack.c.l.b16 %v1508_v47  ;;  %v1820_v54 = vunpack.c.l.b16 %v1510_v57  ;;  %v6277_v30 = vld [vmem:[#allocation5 + $0x4a0] ss:$16 sps:$4 sm:$0xff]   ;;  %v6280_v31 = vld [vmem:[#allocation5 + $0x4a8] ss:$16 sps:$4 sm:$0xff]   ;;  %v6291_v40 = vld [vmem:[#allocation5 + $0x4e4] ss:$16 sps:$4 sm:$0xff]  }
 0x35b   :  { %3193 = vmatprep.subr.bf16.mxu0 %v6231_v45  ;;  %3357 = vmatprep.subr.bf16.mxu1 %v6234_v46  ;;  %v7417_v55 = vsel %vm1821_vm4, %v1817_v49, %v1809_v48  ;;  %v7420_v59 = vsel %vm1821_vm4, %v1819_v50, %v1811_v58  ;;  %v6283_v38 = vld [vmem:[#allocation5 + $0x4c0] ss:$16 sps:$4 sm:$0xff]   ;;  %v6286_v39 = vld [vmem:[#allocation5 + $0x4c8] ss:$16 sps:$4 sm:$0xff]   ;;  %v6294_v41 = vld [vmem:[#allocation5 + $0x4ec] ss:$16 sps:$4 sm:$0xff]  }
 0x35c   :  { %v1827_v28 = vsel %vm1821_vm4, %v1818_v52, %v1810_v29  ;;  %v7424_v22 = vsel %vm1821_vm4, %v1820_v54, %v1812_v60  ;;  %v6289_v43 = vld [vmem:[#allocation5 + $0x4e0] ss:$16 sps:$4 sm:$0xff]   ;;  %v6292_v45 = vld [vmem:[#allocation5 + $0x4e8] ss:$16 sps:$4 sm:$0xff]   ;;  %v6297_v46 = vld [vmem:[#allocation5 + $0x504] ss:$16 sps:$4 sm:$0xff]  }
 0x35d   :  { %v1835_v25 = vpack.c.b16 %v1827_v28, %v1827_v28  ;;  %v6300_v47 = vld [vmem:[#allocation5 + $0x50c] ss:$16 sps:$4 sm:$0xff]   ;;  %v6295_v57 = vld [vmem:[#allocation5 + $0x500] ss:$16 sps:$4 sm:$0xff]   ;;  %v6298_v48 = vld [vmem:[#allocation5 + $0x508] ss:$16 sps:$4 sm:$0xff]  }
 0x35e   :  { %3194 = vmatpush1.bf16.msra.mxu0 %v6229_v23  ;;  %3358 = vmatpush1.bf16.msra.mxu1 %v6232_v51  ;;  %v6303_v58 = vld [vmem:[#allocation5 + $0x524] ss:$16 sps:$4 sm:$0xff]   ;;  %v6306_v49 = vld [vmem:[#allocation5 + $0x52c] ss:$16 sps:$4 sm:$0xff]   ;;  %v6301_v50 = vld [vmem:[#allocation5 + $0x520] ss:$16 sps:$4 sm:$0xff]  }
 0x35f   :  { %3195 = vmatprep.subr.bf16.mxu0 %v6237_v56  ;;  %3359 = vmatprep.subr.bf16.mxu1 %v6240_v44  ;;  %v6304_v23 = vld [vmem:[#allocation5 + $0x528] ss:$16 sps:$4 sm:$0xff]   ;;  %v6309_v51 = vld [vmem:[#allocation5 + $0x544] ss:$16 sps:$4 sm:$0xff]   ;;  %v6312_v29 = vld [vmem:[#allocation5 + $0x54c] ss:$16 sps:$4 sm:$0xff]  }
 0x360   :  { %v6307_v52 = vld [vmem:[#allocation5 + $0x540] ss:$16 sps:$4 sm:$0xff]   ;;  %v6310_v60 = vld [vmem:[#allocation5 + $0x548] ss:$16 sps:$4 sm:$0xff]   ;;  %v6315_v54 = vld [vmem:[#allocation5 + $0x564] ss:$16 sps:$4 sm:$0xff]  }
 0x361   :  { %v6318_v56 = vld [vmem:[#allocation5 + $0x56c] ss:$16 sps:$4 sm:$0xff]   ;;  %v6313_v44 = vld [vmem:[#allocation5 + $0x560] ss:$16 sps:$4 sm:$0xff]   ;;  %v6316_v28 = vld [vmem:[#allocation5 + $0x568] ss:$16 sps:$4 sm:$0xff]  }
 0x362   :  { %3196 = vmatpush1.bf16.msra.mxu0 %v6235_v53  ;;  %3360 = vmatpush1.bf16.msra.mxu1 %v6238_v62  ;;  %v6321_v53 = vld [vmem:[#allocation5 + $0x584] ss:$16 sps:$4 sm:$0xff]   ;;  %v6324_v62 = vld [vmem:[#allocation5 + $0x58c] ss:$16 sps:$4 sm:$0xff]  }
 0x363   :  { %3197 = vmatprep.subr.bf16.mxu0 %v6243_v63  ;;  %3361 = vmatprep.subr.bf16.mxu1 %v6246_v2  ;;  %v6319_v63 = vld [vmem:[#allocation5 + $0x580] ss:$16 sps:$4 sm:$0xff]   ;;  %v6322_v2 = vld [vmem:[#allocation5 + $0x588] ss:$16 sps:$4 sm:$0xff]  }
 0x366   :  { %3198 = vmatpush1.bf16.msra.mxu0 %v6241_v32  ;;  %3362 = vmatpush1.bf16.msra.mxu1 %v6244_v33  ;;  %v6327_v32 = vld [vmem:[#allocation5 + $0x5a4] ss:$16 sps:$4 sm:$0xff]   ;;  %v6330_v33 = vld [vmem:[#allocation5 + $0x5ac] ss:$16 sps:$4 sm:$0xff]  }
 0x367   :  { %3208 = vmatprep.subr.bf16.mxu0 %v6249_v3  ;;  %3372 = vmatprep.subr.bf16.mxu1 %v6252_v4  ;;  %v6325_v3 = vld [vmem:[#allocation5 + $0x5a0] ss:$16 sps:$4 sm:$0xff]   ;;  %v6328_v4 = vld [vmem:[#allocation5 + $0x5a8] ss:$16 sps:$4 sm:$0xff]  }
 0x369   :  { %3200 = vmatmul.mubr.bf16.vlgmr.msra.gmra.mrb[72].mxu0 %v1832_v6  ;;  %3364 = vmatmul.mubr.bf16.vlgmr.msra.gmra.mrb[96].mxu1 %v1832_v6  ;;  %v6336_v6 = vld [vmem:[#allocation5 + $0x5cc] ss:$16 sps:$4 sm:$0xff]  }
 0x36a   :  { %3209 = vmatpush1.bf16.msra.mxu0 %v6247_v34  ;;  %3240 = vmatprep.mubr.bf16.mxu0 %v1835_v25  ;;  %v6333_v34 = vld [vmem:[#allocation5 + $0x5c4] ss:$16 sps:$4 sm:$0xff]  }
 0x36b   :  { %3373 = vmatpush1.bf16.msra.mxu1 %v6250_v35  ;;  %3404 = vmatprep.mubr.bf16.mxu1 %v1835_v25  ;;  %v6331_v35 = vld [vmem:[#allocation5 + $0x5c0] ss:$16 sps:$4 sm:$0xff]   ;;  %v6334_v25 = vld [vmem:[#allocation5 + $0x5c8] ss:$16 sps:$4 sm:$0xff]  }
 0x36c   :  { %3210 = vmatprep.subr.bf16.mxu0 %v6255_v42  ;;  %3374 = vmatprep.subr.bf16.mxu1 %v6258_v1  ;;  %v6339_v42 = vld [vmem:[#allocation5 + $0x5e4] ss:$16 sps:$4 sm:$0xff]   ;;  %v6342_v1 = vld [vmem:[#allocation5 + $0x5ec] ss:$16 sps:$4 sm:$0xff]  }
 0x36e   :  { %3211 = vmatpush1.bf16.msra.mxu0 %v6253_v7  ;;  %v6337_v7 = vld [vmem:[#allocation5 + $0x5e0] ss:$16 sps:$4 sm:$0xff]  }
 0x36f   :  { %3375 = vmatpush1.bf16.msra.mxu1 %v6256_v8  ;;  %3212 = vmatprep.subr.bf16.mxu0 %v6261_v5  ;;  %v6340_v8 = vld [vmem:[#allocation5 + $0x5e8] ss:$16 sps:$4 sm:$0xff]   ;;  %v6345_v5 = vld [vmem:[#allocation5 + $0x604] ss:$16 sps:$4 sm:$0xff]  }
 0x370   :  { %3376 = vmatprep.subr.bf16.mxu1 %v6264_v9  ;;  %v6348_v9 = vld [vmem:[#allocation5 + $0x60c] ss:$16 sps:$4 sm:$0xff]  }
 0x372   :  { %3213 = vmatpush1.bf16.msra.mxu0 %v6259_v61  ;;  %v6343_v61 = vld [vmem:[#allocation5 + $0x600] ss:$16 sps:$4 sm:$0xff]  }
 0x373   :  { %3377 = vmatpush1.bf16.msra.mxu1 %v6262_v11  ;;  %3214 = vmatprep.subr.bf16.mxu0 %v6267_v12  ;;  %v1834_v11 = vpack.c.b16 %v7417_v55, %v7417_v55  ;;  %v6346_v12 = vld [vmem:[#allocation5 + $0x608] ss:$16 sps:$4 sm:$0xff]   ;;  %v6355_v55 = vld [vmem:[#allocation5 + $0x640] ss:$16 sps:$4 sm:$0xff]  }
 0x374   :  { %3378 = vmatprep.subr.bf16.mxu1 %v6270_v0  ;;  %v6351_v0 = vld [vmem:[#allocation5 + $0x624] ss:$16 sps:$4 sm:$0xff]  }
 0x376   :  { %3215 = vmatpush1.bf16.msra.mxu0 %v6265_v13  ;;  %v1837_v13 = vpack.c.b16 %v7424_v22, %v7424_v22  ;;  %v6366_v22 = vld [vmem:[#allocation5 + $0x66c] ss:$16 sps:$4 sm:$0xff]  }
 0x377   :  { %3379 = vmatpush1.bf16.msra.mxu1 %v6268_v14  ;;  %3216 = vmatprep.subr.bf16.mxu0 %v6273_v17  ;;  %v6354_v14 = vld [vmem:[#allocation5 + $0x62c] ss:$16 sps:$4 sm:$0xff]   ;;  %v6349_v17 = vld [vmem:[#allocation5 + $0x620] ss:$16 sps:$4 sm:$0xff]  }
 0x378   :  { %3380 = vmatprep.subr.bf16.mxu1 %v6276_v10  ;;  %v6352_v10 = vld [vmem:[#allocation5 + $0x628] ss:$16 sps:$4 sm:$0xff]  }
 0x37a   :  { %3217 = vmatpush1.bf16.msra.mxu0 %v6271_v18  ;;  %v6357_v18 = vld [vmem:[#allocation5 + $0x644] ss:$16 sps:$4 sm:$0xff]  }
 0x37b   :  { %3381 = vmatpush1.bf16.msra.mxu1 %v6274_v20  ;;  %3218 = vmatprep.subr.bf16.mxu0 %v6279_v21  ;;  %v6360_v20 = vld [vmem:[#allocation5 + $0x64c] ss:$16 sps:$4 sm:$0xff]   ;;  %v6358_v21 = vld [vmem:[#allocation5 + $0x648] ss:$16 sps:$4 sm:$0xff]  }
 0x37c   :  { %3382 = vmatprep.subr.bf16.mxu1 %v6282_v37  ;;  %v6363_v37 = vld [vmem:[#allocation5 + $0x664] ss:$16 sps:$4 sm:$0xff]  }
 0x37e   :  { %3219 = vmatpush1.bf16.msra.mxu0 %v6277_v30  ;;  %v6361_v30 = vld [vmem:[#allocation5 + $0x660] ss:$16 sps:$4 sm:$0xff]  }
 0x37f   :  { %3383 = vmatpush1.bf16.msra.mxu1 %v6280_v31  ;;  %3220 = vmatprep.subr.bf16.mxu0 %v6285_v15  ;;  %v6364_v31 = vld [vmem:[#allocation5 + $0x668] ss:$16 sps:$4 sm:$0xff]   ;;  %v6369_v15 = vld [vmem:[#allocation5 + $0x684] ss:$16 sps:$4 sm:$0xff]  }
 0x380   :  { %3384 = vmatprep.subr.bf16.mxu1 %v6288_v36  ;;  %v6372_v36 = vld [vmem:[#allocation5 + $0x68c] ss:$16 sps:$4 sm:$0xff]  }
 0x382   :  { %3221 = vmatpush1.bf16.msra.mxu0 %v6283_v38  ;;  %v6367_v38 = vld [vmem:[#allocation5 + $0x680] ss:$16 sps:$4 sm:$0xff]  }
 0x383   :  { %3385 = vmatpush1.bf16.msra.mxu1 %v6286_v39  ;;  %3222 = vmatprep.subr.bf16.mxu0 %v6291_v40  ;;  %v6370_v39 = vld [vmem:[#allocation5 + $0x688] ss:$16 sps:$4 sm:$0xff]   ;;  %v6375_v40 = vld [vmem:[#allocation5 + $0x6a4] ss:$16 sps:$4 sm:$0xff]  }
 0x384   :  { %3386 = vmatprep.subr.bf16.mxu1 %v6294_v41  ;;  %v6378_v41 = vld [vmem:[#allocation5 + $0x6ac] ss:$16 sps:$4 sm:$0xff]  }
 0x386   :  { %3223 = vmatpush1.bf16.msra.mxu0 %v6289_v43  ;;  %v6373_v43 = vld [vmem:[#allocation5 + $0x6a0] ss:$16 sps:$4 sm:$0xff]  }
 0x387   :  { %3387 = vmatpush1.bf16.msra.mxu1 %v6292_v45  ;;  %3224 = vmatprep.subr.bf16.mxu0 %v6297_v46  ;;  %v6376_v45 = vld [vmem:[#allocation5 + $0x6a8] ss:$16 sps:$4 sm:$0xff]   ;;  %v6381_v46 = vld [vmem:[#allocation5 + $0x6c4] ss:$16 sps:$4 sm:$0xff]  }
 0x388   :  { %3388 = vmatprep.subr.bf16.mxu1 %v6300_v47  ;;  %v6384_v47 = vld [vmem:[#allocation5 + $0x6cc] ss:$16 sps:$4 sm:$0xff]  }
 0x38a   :  { %3225 = vmatpush1.bf16.msra.mxu0 %v6295_v57  ;;  %v6379_v57 = vld [vmem:[#allocation5 + $0x6c0] ss:$16 sps:$4 sm:$0xff]  }
 0x38b   :  { %3389 = vmatpush1.bf16.msra.mxu1 %v6298_v48  ;;  %3226 = vmatprep.subr.bf16.mxu0 %v6303_v58  ;;  %v6382_v48 = vld [vmem:[#allocation5 + $0x6c8] ss:$16 sps:$4 sm:$0xff]   ;;  %v6387_v58 = vld [vmem:[#allocation5 + $0x6e4] ss:$16 sps:$4 sm:$0xff]  }
 0x38c   :  { %3390 = vmatprep.subr.bf16.mxu1 %v6306_v49  ;;  %v6390_v49 = vld [vmem:[#allocation5 + $0x6ec] ss:$16 sps:$4 sm:$0xff]  }
 0x38e   :  { %3227 = vmatpush1.bf16.msra.mxu0 %v6301_v50  ;;  %v6385_v50 = vld [vmem:[#allocation5 + $0x6e0] ss:$16 sps:$4 sm:$0xff]  }
 0x38f   :  { %3391 = vmatpush1.bf16.msra.mxu1 %v6304_v23  ;;  %3228 = vmatprep.subr.bf16.mxu0 %v6309_v51  ;;  %v6388_v23 = vld [vmem:[#allocation5 + $0x6e8] ss:$16 sps:$4 sm:$0xff]   ;;  %v6393_v51 = vld [vmem:[#allocation5 + $0x704] ss:$16 sps:$4 sm:$0xff]  }
 0x390   :  { %3392 = vmatprep.subr.bf16.mxu1 %v6312_v29  ;;  %v6396_v29 = vld [vmem:[#allocation5 + $0x70c] ss:$16 sps:$4 sm:$0xff]  }
 0x392   :  { %3229 = vmatpush1.bf16.msra.mxu0 %v6307_v52  ;;  %v6391_v52 = vld [vmem:[#allocation5 + $0x700] ss:$16 sps:$4 sm:$0xff]  }
 0x393   :  { %3393 = vmatpush1.bf16.msra.mxu1 %v6310_v60  ;;  %3230 = vmatprep.subr.bf16.mxu0 %v6315_v54  ;;  %v6394_v60 = vld [vmem:[#allocation5 + $0x708] ss:$16 sps:$4 sm:$0xff]   ;;  %v6399_v54 = vld [vmem:[#allocation5 + $0x724] ss:$16 sps:$4 sm:$0xff]  }
 0x394   :  { %3394 = vmatprep.subr.bf16.mxu1 %v6318_v56  ;;  %v6402_v56 = vld [vmem:[#allocation5 + $0x72c] ss:$16 sps:$4 sm:$0xff]  }
 0x396   :  { %3231 = vmatpush1.bf16.msra.mxu0 %v6313_v44  ;;  %v6397_v44 = vld [vmem:[#allocation5 + $0x720] ss:$16 sps:$4 sm:$0xff]  }
 0x397   :  { %3395 = vmatpush1.bf16.msra.mxu1 %v6316_v28  ;;  %3232 = vmatprep.subr.bf16.mxu0 %v6321_v53  ;;  %v6400_v28 = vld [vmem:[#allocation5 + $0x728] ss:$16 sps:$4 sm:$0xff]   ;;  %v6405_v53 = vld [vmem:[#allocation5 + $0x744] ss:$16 sps:$4 sm:$0xff]  }
 0x398   :  { %3396 = vmatprep.subr.bf16.mxu1 %v6324_v62  ;;  %v6408_v62 = vld [vmem:[#allocation5 + $0x74c] ss:$16 sps:$4 sm:$0xff]  }
 0x39a   :  { %3233 = vmatpush1.bf16.msra.mxu0 %v6319_v63  ;;  %v6403_v63 = vld [vmem:[#allocation5 + $0x740] ss:$16 sps:$4 sm:$0xff]  }
 0x39b   :  { %3397 = vmatpush1.bf16.msra.mxu1 %v6322_v2  ;;  %3234 = vmatprep.subr.bf16.mxu0 %v6327_v32  ;;  %v6406_v2 = vld [vmem:[#allocation5 + $0x748] ss:$16 sps:$4 sm:$0xff]   ;;  %v6411_v32 = vld [vmem:[#allocation5 + $0x764] ss:$16 sps:$4 sm:$0xff]  }
 0x39c   :  { %3398 = vmatprep.subr.bf16.mxu1 %v6330_v33  ;;  %v6414_v33 = vld [vmem:[#allocation5 + $0x76c] ss:$16 sps:$4 sm:$0xff]  }
 0x39e   :  { %3235 = vmatpush1.bf16.msra.mxu0 %v6325_v3  ;;  %v6409_v3 = vld [vmem:[#allocation5 + $0x760] ss:$16 sps:$4 sm:$0xff]  }
 0x39f   :  { %3399 = vmatpush1.bf16.msra.mxu1 %v6328_v4  ;;  %3236 = vmatprep.subr.bf16.mxu0 %v6333_v34  ;;  %v6412_v4 = vld [vmem:[#allocation5 + $0x768] ss:$16 sps:$4 sm:$0xff]   ;;  %v6417_v34 = vld [vmem:[#allocation5 + $0x784] ss:$16 sps:$4 sm:$0xff]  }
 0x3a0   :  { %3400 = vmatprep.subr.bf16.mxu1 %v6336_v6  ;;  %v6420_v6 = vld [vmem:[#allocation5 + $0x78c] ss:$16 sps:$4 sm:$0xff]  }
 0x3a2   :  { %3237 = vmatpush1.bf16.msra.mxu0 %v6331_v35  ;;  %v6415_v35 = vld [vmem:[#allocation5 + $0x780] ss:$16 sps:$4 sm:$0xff]  }
 0x3a3   :  { %3401 = vmatpush1.bf16.msra.mxu1 %v6334_v25  ;;  %3238 = vmatprep.subr.bf16.mxu0 %v6339_v42  ;;  %v6418_v25 = vld [vmem:[#allocation5 + $0x788] ss:$16 sps:$4 sm:$0xff]   ;;  %v6423_v42 = vld [vmem:[#allocation5 + $0x7a4] ss:$16 sps:$4 sm:$0xff]  }
 0x3a4   :  { %3402 = vmatprep.subr.bf16.mxu1 %v6342_v1  ;;  %v6426_v1 = vld [vmem:[#allocation5 + $0x7ac] ss:$16 sps:$4 sm:$0xff]  }
 0x3a6   :  { %3239 = vmatpush1.bf16.msra.mxu0 %v6337_v7  ;;  %v6421_v7 = vld [vmem:[#allocation5 + $0x7a0] ss:$16 sps:$4 sm:$0xff]  }
 0x3a7   :  { %3403 = vmatpush1.bf16.msra.mxu1 %v6340_v8  ;;  %3249 = vmatprep.subr.bf16.mxu0 %v6345_v5  ;;  %v6424_v8 = vld [vmem:[#allocation5 + $0x7a8] ss:$16 sps:$4 sm:$0xff]   ;;  %v6429_v5 = vld [vmem:[#allocation5 + $0x7c4] ss:$16 sps:$4 sm:$0xff]  }
 0x3a8   :  { %3413 = vmatprep.subr.bf16.mxu1 %v6348_v9  ;;  %v6432_v9 = vld [vmem:[#allocation5 + $0x7cc] ss:$16 sps:$4 sm:$0xff]  }
 0x3a9   :  { %3241 = vmatmul.mubr.bf16.vlgmr.msra.gmra.mrb[72].mxu0 %v1834_v11 }
 0x3aa   :  { %3405 = vmatmul.mubr.bf16.vlgmr.msra.gmra.mrb[96].mxu1 %v1834_v11  ;;  %3250 = vmatpush1.bf16.msra.mxu0 %v6343_v61  ;;  %v6427_v61 = vld [vmem:[#allocation5 + $0x7c0] ss:$16 sps:$4 sm:$0xff]   ;;  %v6430_v11 = vld [vmem:[#allocation5 + $0x7c8] ss:$16 sps:$4 sm:$0xff]  }
 0x3ab   :  { %3281 = vmatprep.mubr.bf16.mxu0 %v1837_v13  ;;  %3414 = vmatpush1.bf16.msra.mxu1 %v6346_v12  ;;  %v6435_v12 = vld [vmem:[#allocation5 + $0x7e4] ss:$16 sps:$4 sm:$0xff]  }
 0x3ac   :  { %3445 = vmatprep.mubr.bf16.mxu1 %v1837_v13  ;;  %3251 = vmatprep.subr.bf16.mxu0 %v6351_v0  ;;  %v6438_v0 = vld [vmem:[#allocation5 + $0x7ec] ss:$16 sps:$4 sm:$0xff]   ;;  %v6433_v13 = vld [vmem:[#allocation5 + $0x7e0] ss:$16 sps:$4 sm:$0xff]  }
 0x3ad   :  { %3415 = vmatprep.subr.bf16.mxu1 %v6354_v14  ;;  %v6436_v14 = vld [vmem:[#allocation5 + $0x7e8] ss:$16 sps:$4 sm:$0xff]  }
 0x3ae   :  { %3252 = vmatpush1.bf16.msra.mxu0 %v6349_v17  ;;  %v6441_v17 = vld [vmem:[#allocation7 + $0x4] ss:$16 sps:$4 sm:$0xff]  }
 0x3af   :  { %3416 = vmatpush1.bf16.msra.mxu1 %v6352_v10  ;;  %3253 = vmatprep.subr.bf16.mxu0 %v6357_v18  ;;  %v6444_v10 = vld [vmem:[#allocation7 + $0xc] ss:$16 sps:$4 sm:$0xff]   ;;  %v6439_v18 = vld [vmem:[#allocation7] ss:$16 sps:$4 sm:$0xff]  }
 0x3b0   :  { %3417 = vmatprep.subr.bf16.mxu1 %v6360_v20  ;;  %v1836_v20 = vpack.c.b16 %v7420_v59, %v7420_v59  ;;  %v6454_v59 = vld [vmem:[#allocation7 + $0x48] ss:$16 sps:$4 sm:$0xff]  }
 0x3b2   :  { %3254 = vmatpush1.bf16.msra.mxu0 %v6355_v55  ;;  %v6442_v55 = vld [vmem:[#allocation7 + $0x8] ss:$16 sps:$4 sm:$0xff]  }
 0x3b3   :  { %3418 = vmatpush1.bf16.msra.mxu1 %v6358_v21  ;;  %3255 = vmatprep.subr.bf16.mxu0 %v6363_v37  ;;  %v6447_v21 = vld [vmem:[#allocation7 + $0x24] ss:$16 sps:$4 sm:$0xff]   ;;  %v6450_v37 = vld [vmem:[#allocation7 + $0x2c] ss:$16 sps:$4 sm:$0xff]  }
 0x3b4   :  { %3419 = vmatprep.subr.bf16.mxu1 %v6366_v22  ;;  %v6445_v22 = vld [vmem:[#allocation7 + $0x20] ss:$16 sps:$4 sm:$0xff]  }
 0x3b6   :  { %3256 = vmatpush1.bf16.msra.mxu0 %v6361_v30  ;;  %v6448_v30 = vld [vmem:[#allocation7 + $0x28] ss:$16 sps:$4 sm:$0xff]  }
 0x3b7   :  { %3420 = vmatpush1.bf16.msra.mxu1 %v6364_v31  ;;  %3257 = vmatprep.subr.bf16.mxu0 %v6369_v15  ;;  %v6453_v31 = vld [vmem:[#allocation7 + $0x44] ss:$16 sps:$4 sm:$0xff]   ;;  %v6456_v15 = vld [vmem:[#allocation7 + $0x4c] ss:$16 sps:$4 sm:$0xff]  }
 0x3b8   :  { %3421 = vmatprep.subr.bf16.mxu1 %v6372_v36  ;;  %v6451_v36 = vld [vmem:[#allocation7 + $0x40] ss:$16 sps:$4 sm:$0xff]  }
 0x3ba   :  { %3258 = vmatpush1.bf16.msra.mxu0 %v6367_v38  ;;  %v6459_v38 = vld [vmem:[#allocation7 + $0x64] ss:$16 sps:$4 sm:$0xff]  }
 0x3bb   :  { %3422 = vmatpush1.bf16.msra.mxu1 %v6370_v39  ;;  %3259 = vmatprep.subr.bf16.mxu0 %v6375_v40  ;;  %v6462_v39 = vld [vmem:[#allocation7 + $0x6c] ss:$16 sps:$4 sm:$0xff]   ;;  %v6457_v40 = vld [vmem:[#allocation7 + $0x60] ss:$16 sps:$4 sm:$0xff]  }
 0x3bc   :  { %3423 = vmatprep.subr.bf16.mxu1 %v6378_v41  ;;  %v6460_v41 = vld [vmem:[#allocation7 + $0x68] ss:$16 sps:$4 sm:$0xff]  }
 0x3be   :  { %3260 = vmatpush1.bf16.msra.mxu0 %v6373_v43  ;;  %v6465_v43 = vld [vmem:[#allocation7 + $0x84] ss:$16 sps:$4 sm:$0xff]  }
 0x3bf   :  { %3424 = vmatpush1.bf16.msra.mxu1 %v6376_v45  ;;  %3261 = vmatprep.subr.bf16.mxu0 %v6381_v46  ;;  %v6468_v45 = vld [vmem:[#allocation7 + $0x8c] ss:$16 sps:$4 sm:$0xff]   ;;  %v6463_v46 = vld [vmem:[#allocation7 + $0x80] ss:$16 sps:$4 sm:$0xff]  }
 0x3c0   :  { %3425 = vmatprep.subr.bf16.mxu1 %v6384_v47  ;;  %v6466_v47 = vld [vmem:[#allocation7 + $0x88] ss:$16 sps:$4 sm:$0xff]  }
 0x3c2   :  { %3262 = vmatpush1.bf16.msra.mxu0 %v6379_v57  ;;  %v6471_v57 = vld [vmem:[#allocation7 + $0xa4] ss:$16 sps:$4 sm:$0xff]  }
 0x3c3   :  { %3426 = vmatpush1.bf16.msra.mxu1 %v6382_v48  ;;  %3263 = vmatprep.subr.bf16.mxu0 %v6387_v58  ;;  %v6474_v48 = vld [vmem:[#allocation7 + $0xac] ss:$16 sps:$4 sm:$0xff]   ;;  %v6469_v58 = vld [vmem:[#allocation7 + $0xa0] ss:$16 sps:$4 sm:$0xff]  }
 0x3c4   :  { %3427 = vmatprep.subr.bf16.mxu1 %v6390_v49  ;;  %v6472_v49 = vld [vmem:[#allocation7 + $0xa8] ss:$16 sps:$4 sm:$0xff]  }
 0x3c6   :  { %3264 = vmatpush1.bf16.msra.mxu0 %v6385_v50  ;;  %v6477_v50 = vld [vmem:[#allocation7 + $0xc4] ss:$16 sps:$4 sm:$0xff]  }
 0x3c7   :  { %3428 = vmatpush1.bf16.msra.mxu1 %v6388_v23  ;;  %3265 = vmatprep.subr.bf16.mxu0 %v6393_v51  ;;  %v6480_v23 = vld [vmem:[#allocation7 + $0xcc] ss:$16 sps:$4 sm:$0xff]   ;;  %v6475_v51 = vld [vmem:[#allocation7 + $0xc0] ss:$16 sps:$4 sm:$0xff]  }
 0x3c8   :  { %3429 = vmatprep.subr.bf16.mxu1 %v6396_v29  ;;  %v6478_v29 = vld [vmem:[#allocation7 + $0xc8] ss:$16 sps:$4 sm:$0xff]  }
 0x3ca   :  { %3266 = vmatpush1.bf16.msra.mxu0 %v6391_v52  ;;  %v6483_v52 = vld [vmem:[#allocation7 + $0xe4] ss:$16 sps:$4 sm:$0xff]  }
 0x3cb   :  { %3430 = vmatpush1.bf16.msra.mxu1 %v6394_v60  ;;  %3267 = vmatprep.subr.bf16.mxu0 %v6399_v54  ;;  %v6486_v60 = vld [vmem:[#allocation7 + $0xec] ss:$16 sps:$4 sm:$0xff]   ;;  %v6481_v54 = vld [vmem:[#allocation7 + $0xe0] ss:$16 sps:$4 sm:$0xff]  }
 0x3cc   :  { %3431 = vmatprep.subr.bf16.mxu1 %v6402_v56  ;;  %v6484_v56 = vld [vmem:[#allocation7 + $0xe8] ss:$16 sps:$4 sm:$0xff]  }
 0x3ce   :  { %3268 = vmatpush1.bf16.msra.mxu0 %v6397_v44  ;;  %v6489_v44 = vld [vmem:[#allocation7 + $0x104] ss:$16 sps:$4 sm:$0xff]  }
 0x3cf   :  { %3432 = vmatpush1.bf16.msra.mxu1 %v6400_v28  ;;  %3269 = vmatprep.subr.bf16.mxu0 %v6405_v53  ;;  %v6492_v28 = vld [vmem:[#allocation7 + $0x10c] ss:$16 sps:$4 sm:$0xff]   ;;  %v6487_v53 = vld [vmem:[#allocation7 + $0x100] ss:$16 sps:$4 sm:$0xff]  }
 0x3d0   :  { %3433 = vmatprep.subr.bf16.mxu1 %v6408_v62  ;;  %v6490_v62 = vld [vmem:[#allocation7 + $0x108] ss:$16 sps:$4 sm:$0xff]  }
 0x3d2   :  { %3270 = vmatpush1.bf16.msra.mxu0 %v6403_v63  ;;  %v6495_v63 = vld [vmem:[#allocation7 + $0x124] ss:$16 sps:$4 sm:$0xff]  }
 0x3d3   :  { %3434 = vmatpush1.bf16.msra.mxu1 %v6406_v2  ;;  %3271 = vmatprep.subr.bf16.mxu0 %v6411_v32  ;;  %v6498_v2 = vld [vmem:[#allocation7 + $0x12c] ss:$16 sps:$4 sm:$0xff]   ;;  %v6493_v32 = vld [vmem:[#allocation7 + $0x120] ss:$16 sps:$4 sm:$0xff]  }
 0x3d4   :  { %3435 = vmatprep.subr.bf16.mxu1 %v6414_v33  ;;  %v6496_v33 = vld [vmem:[#allocation7 + $0x128] ss:$16 sps:$4 sm:$0xff]  }
 0x3d6   :  { %3272 = vmatpush1.bf16.msra.mxu0 %v6409_v3  ;;  %v6501_v3 = vld [vmem:[#allocation7 + $0x144] ss:$16 sps:$4 sm:$0xff]  }
 0x3d7   :  { %3436 = vmatpush1.bf16.msra.mxu1 %v6412_v4  ;;  %3273 = vmatprep.subr.bf16.mxu0 %v6417_v34  ;;  %v6504_v4 = vld [vmem:[#allocation7 + $0x14c] ss:$16 sps:$4 sm:$0xff]   ;;  %v6499_v34 = vld [vmem:[#allocation7 + $0x140] ss:$16 sps:$4 sm:$0xff]  }
 0x3d8   :  { %3437 = vmatprep.subr.bf16.mxu1 %v6420_v6  ;;  %v6502_v6 = vld [vmem:[#allocation7 + $0x148] ss:$16 sps:$4 sm:$0xff]  }
 0x3da   :  { %3274 = vmatpush1.bf16.msra.mxu0 %v6415_v35  ;;  %v6507_v35 = vld [vmem:[#allocation7 + $0x164] ss:$16 sps:$4 sm:$0xff]  }
 0x3db   :  { %3438 = vmatpush1.bf16.msra.mxu1 %v6418_v25  ;;  %3275 = vmatprep.subr.bf16.mxu0 %v6423_v42  ;;  %v6510_v25 = vld [vmem:[#allocation7 + $0x16c] ss:$16 sps:$4 sm:$0xff]   ;;  %v6505_v42 = vld [vmem:[#allocation7 + $0x160] ss:$16 sps:$4 sm:$0xff]  }
 0x3dc   :  { %3439 = vmatprep.subr.bf16.mxu1 %v6426_v1  ;;  %v6508_v1 = vld [vmem:[#allocation7 + $0x168] ss:$16 sps:$4 sm:$0xff]  }
 0x3de   :  { %3276 = vmatpush1.bf16.msra.mxu0 %v6421_v7  ;;  %v6513_v7 = vld [vmem:[#allocation7 + $0x184] ss:$16 sps:$4 sm:$0xff]  }
 0x3df   :  { %3440 = vmatpush1.bf16.msra.mxu1 %v6424_v8  ;;  %3277 = vmatprep.subr.bf16.mxu0 %v6429_v5  ;;  %v6516_v8 = vld [vmem:[#allocation7 + $0x18c] ss:$16 sps:$4 sm:$0xff]   ;;  %v6511_v5 = vld [vmem:[#allocation7 + $0x180] ss:$16 sps:$4 sm:$0xff]  }
 0x3e0   :  { %3441 = vmatprep.subr.bf16.mxu1 %v6432_v9  ;;  %v6514_v9 = vld [vmem:[#allocation7 + $0x188] ss:$16 sps:$4 sm:$0xff]  }
 0x3e2   :  { %3278 = vmatpush1.bf16.msra.mxu0 %v6427_v61  ;;  %v6519_v61 = vld [vmem:[#allocation7 + $0x1a4] ss:$16 sps:$4 sm:$0xff]  }
 0x3e3   :  { %3442 = vmatpush1.bf16.msra.mxu1 %v6430_v11  ;;  %3279 = vmatprep.subr.bf16.mxu0 %v6435_v12  ;;  %v6522_v11 = vld [vmem:[#allocation7 + $0x1ac] ss:$16 sps:$4 sm:$0xff]   ;;  %v6517_v12 = vld [vmem:[#allocation7 + $0x1a0] ss:$16 sps:$4 sm:$0xff]  }
 0x3e4   :  { %3443 = vmatprep.subr.bf16.mxu1 %v6438_v0  ;;  %v6520_v0 = vld [vmem:[#allocation7 + $0x1a8] ss:$16 sps:$4 sm:$0xff]  }
 0x3e6   :  { %3280 = vmatpush1.bf16.msra.mxu0 %v6433_v13  ;;  %v6525_v13 = vld [vmem:[#allocation7 + $0x1c4] ss:$16 sps:$4 sm:$0xff]  }
 0x3e7   :  { %3444 = vmatpush1.bf16.msra.mxu1 %v6436_v14  ;;  %4252 = vmatprep.subr.bf16.mxu0 %v6441_v17  ;;  %v6528_v14 = vld [vmem:[#allocation7 + $0x1cc] ss:$16 sps:$4 sm:$0xff]   ;;  %v6523_v17 = vld [vmem:[#allocation7 + $0x1c0] ss:$16 sps:$4 sm:$0xff]  }
 0x3e8   :  { %4334 = vmatprep.subr.bf16.mxu1 %v6444_v10  ;;  %v6526_v10 = vld [vmem:[#allocation7 + $0x1c8] ss:$16 sps:$4 sm:$0xff]  }
 0x3e9   :  { %3282 = vmatmul.mubr.bf16.vlgmr.msra.gmra.mrb[72].mxu0 %v1836_v20 }
 0x3ea   :  { %3446 = vmatmul.mubr.bf16.vlgmr.msra.gmra.mrb[96].mxu1 %v1836_v20  ;;  %4253 = vmatpush1.bf16.msra.mxu0 %v6439_v18  ;;  %v6531_v18 = vld [vmem:[#allocation7 + $0x1e4] ss:$16 sps:$4 sm:$0xff]   ;;  %v6534_v20 = vld [vmem:[#allocation7 + $0x1ec] ss:$16 sps:$4 sm:$0xff]  }
 0x3eb   :  { %4335 = vmatpush1.bf16.msra.mxu1 %v6442_v55  ;;  %4254 = vmatprep.subr.bf16.mxu0 %v6447_v21  ;;  %v6529_v55 = vld [vmem:[#allocation7 + $0x1e0] ss:$16 sps:$4 sm:$0xff]   ;;  %v6532_v21 = vld [vmem:[#allocation7 + $0x1e8] ss:$16 sps:$4 sm:$0xff]  }
 0x3ec   :  { %4336 = vmatprep.subr.bf16.mxu1 %v6450_v37  ;;  %v6537_v37 = vld [vmem:[#allocation7 + $0x204] ss:$16 sps:$4 sm:$0xff]  }
 0x3ee   :  { %4255 = vmatpush1.bf16.msra.mxu0 %v6445_v22  ;;  %v6540_v22 = vld [vmem:[#allocation7 + $0x20c] ss:$16 sps:$4 sm:$0xff]  }
 0x3ef   :  { %4337 = vmatpush1.bf16.msra.mxu1 %v6448_v30  ;;  %4256 = vmatprep.subr.bf16.mxu0 %v6453_v31  ;;  %v7437_v30 = vld [vmem:[%s7493_s8] sm:$0xf] }
 0x3f0   :  { %4338 = vmatprep.subr.bf16.mxu1 %v6456_v15  ;;  %v1772_v31 = vrot.slane %v7437_v30, %v7214_v16  ;;  %v1776_v15 = vrot.slane %v7437_v30, %v7225_v26 }
 0x3f2   :  { %4257 = vmatpush1.bf16.msra.mxu0 %v6451_v36  ;;  %v1784_v36 = vrot.slane %v7437_v30, %v7228_v27 }
 0x3f3   :  { %4339 = vmatpush1.bf16.msra.mxu1 %v6454_v59  ;;  %4258 = vmatprep.subr.bf16.mxu0 %v6459_v38 }
 0x3f4   :  { %4340 = vmatprep.subr.bf16.mxu1 %v6462_v39 }
 0x3f6   :  { %4259 = vmatpush1.bf16.msra.mxu0 %v6457_v40 }
 0x3f7   :  { %4341 = vmatpush1.bf16.msra.mxu1 %v6460_v41  ;;  %4260 = vmatprep.subr.bf16.mxu0 %v6465_v43 }
 0x3f8   :  { %4342 = vmatprep.subr.bf16.mxu1 %v6468_v45 }
 0x3fa   :  { %4261 = vmatpush1.bf16.msra.mxu0 %v6463_v46 }
 0x3fb   :  { %4343 = vmatpush1.bf16.msra.mxu1 %v6466_v47  ;;  %4262 = vmatprep.subr.bf16.mxu0 %v6471_v57 }
 0x3fc   :  { %4344 = vmatprep.subr.bf16.mxu1 %v6474_v48 }
 0x3fe   :  { %4263 = vmatpush1.bf16.msra.mxu0 %v6469_v58 }
 0x3ff   :  { %4345 = vmatpush1.bf16.msra.mxu1 %v6472_v49  ;;  %4264 = vmatprep.subr.bf16.mxu0 %v6477_v50 }
 0x400   :  { %4346 = vmatprep.subr.bf16.mxu1 %v6480_v23 }
 0x402   :  { %4265 = vmatpush1.bf16.msra.mxu0 %v6475_v51  ;;  %v6535_v51 = vld [vmem:[#allocation7 + $0x200] ss:$16 sps:$4 sm:$0xff]  }
 0x403   :  { %4347 = vmatpush1.bf16.msra.mxu1 %v6478_v29  ;;  %4266 = vmatprep.subr.bf16.mxu0 %v6483_v52  ;;  %v6538_v29 = vld [vmem:[#allocation7 + $0x208] ss:$16 sps:$4 sm:$0xff]  }
 0x404   :  { %4348 = vmatprep.subr.bf16.mxu1 %v6486_v60  ;;  %v6543_v60 = vld [vmem:[#allocation7 + $0x224] ss:$16 sps:$4 sm:$0xff]  }
 0x406   :  { %4267 = vmatpush1.bf16.msra.mxu0 %v6481_v54  ;;  %v6546_v54 = vld [vmem:[#allocation7 + $0x22c] ss:$16 sps:$4 sm:$0xff]  }
 0x407   :  { %4349 = vmatpush1.bf16.msra.mxu1 %v6484_v56  ;;  %4268 = vmatprep.subr.bf16.mxu0 %v6489_v44  ;;  %v6541_v44 = vld [vmem:[#allocation7 + $0x220] ss:$16 sps:$4 sm:$0xff]  }
 0x408   :  { %4350 = vmatprep.subr.bf16.mxu1 %v6492_v28  ;;  %v6544_v28 = vld [vmem:[#allocation7 + $0x228] ss:$16 sps:$4 sm:$0xff]  }
 0x40a   :  { %4269 = vmatpush1.bf16.msra.mxu0 %v6487_v53  ;;  %v6549_v53 = vld [vmem:[#allocation7 + $0x244] ss:$16 sps:$4 sm:$0xff]  }
 0x40b   :  { %4351 = vmatpush1.bf16.msra.mxu1 %v6490_v62  ;;  %4270 = vmatprep.subr.bf16.mxu0 %v6495_v63  ;;  %v6552_v62 = vld [vmem:[#allocation7 + $0x24c] ss:$16 sps:$4 sm:$0xff]   ;;  %v6547_v63 = vld [vmem:[#allocation7 + $0x240] ss:$16 sps:$4 sm:$0xff]  }
 0x40c   :  { %4352 = vmatprep.subr.bf16.mxu1 %v6498_v2  ;;  %v6550_v2 = vld [vmem:[#allocation7 + $0x248] ss:$16 sps:$4 sm:$0xff]  }
 0x40e   :  { %4271 = vmatpush1.bf16.msra.mxu0 %v6493_v32  ;;  %v6555_v32 = vld [vmem:[#allocation7 + $0x264] ss:$16 sps:$4 sm:$0xff]  }
 0x40f   :  { %4353 = vmatpush1.bf16.msra.mxu1 %v6496_v33  ;;  %4272 = vmatprep.subr.bf16.mxu0 %v6501_v3  ;;  %v6558_v33 = vld [vmem:[#allocation7 + $0x26c] ss:$16 sps:$4 sm:$0xff]   ;;  %v6553_v3 = vld [vmem:[#allocation7 + $0x260] ss:$16 sps:$4 sm:$0xff]  }
 0x410   :  { %4354 = vmatprep.subr.bf16.mxu1 %v6504_v4  ;;  %v6556_v4 = vld [vmem:[#allocation7 + $0x268] ss:$16 sps:$4 sm:$0xff]  }
 0x412   :  { %4273 = vmatpush1.bf16.msra.mxu0 %v6499_v34  ;;  %v6561_v34 = vld [vmem:[#allocation7 + $0x284] ss:$16 sps:$4 sm:$0xff]  }
 0x413   :  { %4355 = vmatpush1.bf16.msra.mxu1 %v6502_v6  ;;  %4274 = vmatprep.subr.bf16.mxu0 %v6507_v35  ;;  %v6564_v6 = vld [vmem:[#allocation7 + $0x28c] ss:$16 sps:$4 sm:$0xff]   ;;  %v6559_v35 = vld [vmem:[#allocation7 + $0x280] ss:$16 sps:$4 sm:$0xff]  }
 0x414   :  { %4356 = vmatprep.subr.bf16.mxu1 %v6510_v25  ;;  %v6562_v25 = vld [vmem:[#allocation7 + $0x288] ss:$16 sps:$4 sm:$0xff]  }
 0x416   :  { %4275 = vmatpush1.bf16.msra.mxu0 %v6505_v42  ;;  %v6567_v42 = vld [vmem:[#allocation7 + $0x2a4] ss:$16 sps:$4 sm:$0xff]  }
 0x417   :  { %4357 = vmatpush1.bf16.msra.mxu1 %v6508_v1  ;;  %4276 = vmatprep.subr.bf16.mxu0 %v6513_v7  ;;  %v6570_v1 = vld [vmem:[#allocation7 + $0x2ac] ss:$16 sps:$4 sm:$0xff]   ;;  %v6565_v7 = vld [vmem:[#allocation7 + $0x2a0] ss:$16 sps:$4 sm:$0xff]  }
 0x418   :  { %4358 = vmatprep.subr.bf16.mxu1 %v6516_v8  ;;  %v6568_v8 = vld [vmem:[#allocation7 + $0x2a8] ss:$16 sps:$4 sm:$0xff]  }
 0x41a   :  { %4277 = vmatpush1.bf16.msra.mxu0 %v6511_v5  ;;  %v6573_v5 = vld [vmem:[#allocation7 + $0x2c4] ss:$16 sps:$4 sm:$0xff]  }
 0x41b   :  { %4359 = vmatpush1.bf16.msra.mxu1 %v6514_v9  ;;  %4278 = vmatprep.subr.bf16.mxu0 %v6519_v61  ;;  %v6576_v9 = vld [vmem:[#allocation7 + $0x2cc] ss:$16 sps:$4 sm:$0xff]   ;;  %v6571_v61 = vld [vmem:[#allocation7 + $0x2c0] ss:$16 sps:$4 sm:$0xff]  }
 0x41c   :  { %4360 = vmatprep.subr.bf16.mxu1 %v6522_v11  ;;  %v6574_v11 = vld [vmem:[#allocation7 + $0x2c8] ss:$16 sps:$4 sm:$0xff]  }
 0x41e   :  { %4279 = vmatpush1.bf16.msra.mxu0 %v6517_v12  ;;  %v6579_v12 = vld [vmem:[#allocation7 + $0x2e4] ss:$16 sps:$4 sm:$0xff]  }
 0x41f   :  { %4361 = vmatpush1.bf16.msra.mxu1 %v6520_v0  ;;  %4280 = vmatprep.subr.bf16.mxu0 %v6525_v13  ;;  %v6582_v0 = vld [vmem:[#allocation7 + $0x2ec] ss:$16 sps:$4 sm:$0xff]   ;;  %v6577_v13 = vld [vmem:[#allocation7 + $0x2e0] ss:$16 sps:$4 sm:$0xff]  }
 0x420   :  { %4362 = vmatprep.subr.bf16.mxu1 %v6528_v14  ;;  %v6580_v14 = vld [vmem:[#allocation7 + $0x2e8] ss:$16 sps:$4 sm:$0xff]  }
 0x422   :  { %4281 = vmatpush1.bf16.msra.mxu0 %v6523_v17  ;;  %v6585_v17 = vld [vmem:[#allocation7 + $0x304] ss:$16 sps:$4 sm:$0xff]  }
 0x423   :  { %4363 = vmatpush1.bf16.msra.mxu1 %v6526_v10  ;;  %4282 = vmatprep.subr.bf16.mxu0 %v6531_v18  ;;  %v6588_v10 = vld [vmem:[#allocation7 + $0x30c] ss:$16 sps:$4 sm:$0xff]   ;;  %v6583_v18 = vld [vmem:[#allocation7 + $0x300] ss:$16 sps:$4 sm:$0xff]  }
 0x424   :  { %4364 = vmatprep.subr.bf16.mxu1 %v6534_v20  ;;  %v6586_v20 = vld [vmem:[#allocation7 + $0x308] ss:$16 sps:$4 sm:$0xff]  }
 0x426   :  { %4283 = vmatpush1.bf16.msra.mxu0 %v6529_v55  ;;  %v6591_v55 = vld [vmem:[#allocation7 + $0x324] ss:$16 sps:$4 sm:$0xff]  }
 0x427   :  { %4365 = vmatpush1.bf16.msra.mxu1 %v6532_v21  ;;  %4293 = vmatprep.subr.bf16.mxu0 %v6537_v37  ;;  %v6594_v21 = vld [vmem:[#allocation7 + $0x32c] ss:$16 sps:$4 sm:$0xff]   ;;  %v6589_v37 = vld [vmem:[#allocation7 + $0x320] ss:$16 sps:$4 sm:$0xff]  }
 0x428   :  { %4375 = vmatprep.subr.bf16.mxu1 %v6540_v22  ;;  %v6592_v22 = vld [vmem:[#allocation7 + $0x328] ss:$16 sps:$4 sm:$0xff]  }
 0x4bc   :  { %v3283_v59 = vpop.f32.mrb[72].mxu0 }
 0x4bd   :  { %v5983_v38 = vadd.f32 %v3283_v59, %v1772_v31  ;;  %v7445_v39 = vpop.f32.mrb[96].mxu1  ;;  %v3285_v40 = vpop.f32.mrb[73].mxu0  ;;  %v6597_v31 = vld [vmem:[#allocation7 + $0x344] ss:$16 sps:$4 sm:$0xff]   ;;  %v6598_v59 = vld [vmem:[#allocation7 + $0x348] ss:$16 sps:$4 sm:$0xff]  }
 0x4be   :  { %v5984_v41 = vadd.f32 %v3285_v40, %v1776_v15  ;;  %v3449_v43 = vpop.f32.mrb[97].mxu1  ;;  %v3287_v45 = vpop.f32.mrb[74].mxu0  ;;  %v6600_v15 = vld [vmem:[#allocation7 + $0x34c] ss:$16 sps:$4 sm:$0xff]  }
 0x4bf   :  { %v3454_v46 = vmax.f32 %v5983_v38, 0.0  ;;  %v5986_v47 = vadd.f32 %v3449_v43, %v1784_v36  ;;  %v3451_v57 = vpop.f32.mrb[98].mxu1  ;;  %v3288_v48 = vpop.f32.mrb[75].mxu0  ;;  %v6595_v36 = vld [vmem:[#allocation7 + $0x340] ss:$16 sps:$4 sm:$0xff]  }
 0x4c0   :  { %v3455_v58 = vmax.f32 %v5984_v41, 0.0  ;;  %v3452_v49 = vpop.f32.mrb[99].mxu1  ;;  %v6603_v38 = vld [vmem:[#allocation7 + $0x364] ss:$16 sps:$4 sm:$0xff]   ;;  %v6606_v40 = vld [vmem:[#allocation7 + $0x36c] ss:$16 sps:$4 sm:$0xff]  }
 0x4c1   :  { %v3457_v50 = vmax.f32 %v5986_v47, 0.0  ;;  %v3458_v52 = vpack.c.bf16 %v3454_v46, %v3454_v46  ;;  %v6601_v41 = vld [vmem:[#allocation7 + $0x360] ss:$16 sps:$4 sm:$0xff]   ;;  %v6604_v43 = vld [vmem:[#allocation7 + $0x368] ss:$16 sps:$4 sm:$0xff]  }
 0x4c2   :  { %v3459_v23 = vpack.c.bf16 %v3455_v58, %v3455_v58  ;;  %v6609_v45 = vld [vmem:[#allocation7 + $0x384] ss:$16 sps:$4 sm:$0xff]   ;;  %v6612_v46 = vld [vmem:[#allocation7 + $0x38c] ss:$16 sps:$4 sm:$0xff]   ;;  %v6607_v47 = vld [vmem:[#allocation7 + $0x380] ss:$16 sps:$4 sm:$0xff]  }
 0x4c3   :  { %v3461_v56 = vpack.c.bf16 %v3457_v50, %v3457_v50  ;;  %v6610_v57 = vld [vmem:[#allocation7 + $0x388] ss:$16 sps:$4 sm:$0xff]   ;;  %v6615_v48 = vld [vmem:[#allocation7 + $0x3a4] ss:$16 sps:$4 sm:$0xff]   ;;  %v6618_v58 = vld [vmem:[#allocation7 + $0x3ac] ss:$16 sps:$4 sm:$0xff]  }
 0x4c4   :  { %4284 = vmatprep.mubr.bf16.mxu0 %v3459_v23  ;;  %4366 = vmatprep.mubr.bf16.mxu1 %v3459_v23  ;;  %v6613_v49 = vld [vmem:[#allocation7 + $0x3a0] ss:$16 sps:$4 sm:$0xff]   ;;  %v6616_v50 = vld [vmem:[#allocation7 + $0x3a8] ss:$16 sps:$4 sm:$0xff]   ;;  %v1780_v23 = vrot.slane %v7437_v30, %v7217_v19 }
 0x4c5   :  { %4285 = vmatmul.mubr.bf16.vlgmr.msra.gmra.mrb[76].mxu0 %v3458_v52  ;;  %4367 = vmatmul.mubr.bf16.vlgmr.msra.gmra.mrb[100].mxu1 %v3458_v52  ;;  %v6619_v52 = vld [vmem:[#allocation7 + $0x3c0] ss:$16 sps:$4 sm:$0xff]  }
 0x4c6   :  { %4294 = vmatpush1.bf16.msra.mxu0 %v6535_v51  ;;  %4376 = vmatpush1.bf16.msra.mxu1 %v6538_v29  ;;  %v6621_v51 = vld [vmem:[#allocation7 + $0x3c4] ss:$16 sps:$4 sm:$0xff]   ;;  %v6624_v29 = vld [vmem:[#allocation7 + $0x3cc] ss:$16 sps:$4 sm:$0xff]  }
 0x4c7   :  { %4325 = vmatprep.mubr.bf16.mxu0 %v3461_v56  ;;  %4407 = vmatprep.mubr.bf16.mxu1 %v3461_v56  ;;  %v6627_v56 = vld [vmem:[#allocation7 + $0x3e4] ss:$16 sps:$4 sm:$0xff]  }
 0x4c8   :  { %4295 = vmatprep.subr.bf16.mxu0 %v6543_v60  ;;  %4377 = vmatprep.subr.bf16.mxu1 %v6546_v54  ;;  %v6622_v60 = vld [vmem:[#allocation7 + $0x3c8] ss:$16 sps:$4 sm:$0xff]   ;;  %v5985_v54 = vadd.f32 %v7445_v39, %v1780_v23  ;;  %v6633_v30 = vld [vmem:[#allocation8 + $0x4] ss:$12 sps:$4 sm:$0xff]  }
 0x4c9   :  { %v6636_v39 = vld [vmem:[#allocation8 + $0x1c] ss:$12 sps:$4 sm:$0xff]  }
 0x4ca   :  { %4296 = vmatpush1.bf16.msra.mxu0 %v6541_v44  ;;  %4378 = vmatpush1.bf16.msra.mxu1 %v6544_v28  ;;  %v6630_v44 = vld [vmem:[#allocation7 + $0x3ec] ss:$16 sps:$4 sm:$0xff]   ;;  %v6625_v28 = vld [vmem:[#allocation7 + $0x3e0] ss:$16 sps:$4 sm:$0xff]  }
 0x4cb   :  { %4297 = vmatprep.subr.bf16.mxu0 %v6549_v53  ;;  %4379 = vmatprep.subr.bf16.mxu1 %v6552_v62  ;;  %v6628_v53 = vld [vmem:[#allocation7 + $0x3e8] ss:$16 sps:$4 sm:$0xff]   ;;  %v3456_v62 = vmax.f32 %v5985_v54, 0.0  ;;  %v6694_v23 = vld [vmem:[#allocation8 + $0xb0] ss:$12 sps:$4 sm:$0xff]  }
 0x4ce   :  { %4298 = vmatpush1.bf16.msra.mxu0 %v6547_v63  ;;  %4380 = vmatpush1.bf16.msra.mxu1 %v6550_v2  ;;  %v6658_v63 = vld [vmem:[#allocation8 + $0xc8] ss:$12 sps:$4 sm:$0xff]   ;;  %v6631_v2 = vld [vmem:[#allocation8] ss:$12 sps:$4 sm:$0xff]  }
 0x4cf   :  { %4299 = vmatprep.subr.bf16.mxu0 %v6555_v32  ;;  %4381 = vmatprep.subr.bf16.mxu1 %v6558_v33  ;;  %v6659_v32 = vld [vmem:[#allocation8 + $0x8] ss:$12 sps:$4 sm:$0xff]   ;;  %v3460_v33 = vpack.c.bf16 %v3456_v62, %v3456_v62 }
 0x4d2   :  { %4300 = vmatpush1.bf16.msra.mxu0 %v6553_v3  ;;  %4382 = vmatpush1.bf16.msra.mxu1 %v6556_v4  ;;  %v6663_v3 = vld [vmem:[#allocation8 + $0xe0] ss:$12 sps:$4 sm:$0xff]   ;;  %v6634_v4 = vld [vmem:[#allocation8 + $0x18] ss:$12 sps:$4 sm:$0xff]  }
 0x4d3   :  { %4301 = vmatprep.subr.bf16.mxu0 %v6561_v34  ;;  %4383 = vmatprep.subr.bf16.mxu1 %v6564_v6  ;;  %v6664_v34 = vld [vmem:[#allocation8 + $0x20] ss:$12 sps:$4 sm:$0xff]  }
 0x4d4   :  { %v6639_v6 = vld [vmem:[#allocation8 + $0x34] ss:$12 sps:$4 sm:$0xff]  }
 0x4d6   :  { %4302 = vmatpush1.bf16.msra.mxu0 %v6559_v35  ;;  %4384 = vmatpush1.bf16.msra.mxu1 %v6562_v25  ;;  %v6668_v35 = vld [vmem:[#allocation8 + $0xf8] ss:$12 sps:$4 sm:$0xff]   ;;  %v6637_v25 = vld [vmem:[#allocation8 + $0x30] ss:$12 sps:$4 sm:$0xff]  }
 0x4d7   :  { %4303 = vmatprep.subr.bf16.mxu0 %v6567_v42  ;;  %4385 = vmatprep.subr.bf16.mxu1 %v6570_v1  ;;  %v6669_v42 = vld [vmem:[#allocation8 + $0x38] ss:$12 sps:$4 sm:$0xff]  }
 0x4d8   :  { %v6642_v1 = vld [vmem:[#allocation8 + $0x4c] ss:$12 sps:$4 sm:$0xff]  }
 0x4da   :  { %4304 = vmatpush1.bf16.msra.mxu0 %v6565_v7  ;;  %4386 = vmatpush1.bf16.msra.mxu1 %v6568_v8  ;;  %v6673_v7 = vld [vmem:[#allocation8 + $0x110] ss:$12 sps:$4 sm:$0xff]   ;;  %v6640_v8 = vld [vmem:[#allocation8 + $0x48] ss:$12 sps:$4 sm:$0xff]  }
 0x4db   :  { %4305 = vmatprep.subr.bf16.mxu0 %v6573_v5  ;;  %4387 = vmatprep.subr.bf16.mxu1 %v6576_v9  ;;  %v6674_v5 = vld [vmem:[#allocation8 + $0x50] ss:$12 sps:$4 sm:$0xff]  }
 0x4dc   :  { %v6645_v9 = vld [vmem:[#allocation8 + $0x64] ss:$12 sps:$4 sm:$0xff]  }
 0x4de   :  { %4306 = vmatpush1.bf16.msra.mxu0 %v6571_v61  ;;  %4388 = vmatpush1.bf16.msra.mxu1 %v6574_v11  ;;  %v6678_v61 = vld [vmem:[#allocation8 + $0x128] ss:$12 sps:$4 sm:$0xff]   ;;  %v6643_v11 = vld [vmem:[#allocation8 + $0x60] ss:$12 sps:$4 sm:$0xff]  }
 0x4df   :  { %4307 = vmatprep.subr.bf16.mxu0 %v6579_v12  ;;  %4389 = vmatprep.subr.bf16.mxu1 %v6582_v0  ;;  %v6679_v12 = vld [vmem:[#allocation8 + $0x68] ss:$12 sps:$4 sm:$0xff]  }
 0x4e0   :  { %v6648_v0 = vld [vmem:[#allocation8 + $0x7c] ss:$12 sps:$4 sm:$0xff]  }
 0x4e2   :  { %4308 = vmatpush1.bf16.msra.mxu0 %v6577_v13  ;;  %4390 = vmatpush1.bf16.msra.mxu1 %v6580_v14  ;;  %v6683_v13 = vld [vmem:[#allocation8 + $0x140] ss:$12 sps:$4 sm:$0xff]   ;;  %v6646_v14 = vld [vmem:[#allocation8 + $0x78] ss:$12 sps:$4 sm:$0xff]  }
 0x4e3   :  { %4309 = vmatprep.subr.bf16.mxu0 %v6585_v17  ;;  %4391 = vmatprep.subr.bf16.mxu1 %v6588_v10  ;;  %v6684_v17 = vld [vmem:[#allocation8 + $0x80] ss:$12 sps:$4 sm:$0xff]  }
 0x4e4   :  { %v6651_v10 = vld [vmem:[#allocation8 + $0x94] ss:$12 sps:$4 sm:$0xff]  }
 0x4e6   :  { %4310 = vmatpush1.bf16.msra.mxu0 %v6583_v18  ;;  %4392 = vmatpush1.bf16.msra.mxu1 %v6586_v20  ;;  %v6649_v18 = vld [vmem:[#allocation8 + $0x90] ss:$12 sps:$4 sm:$0xff]   ;;  %v6654_v20 = vld [vmem:[#allocation8 + $0xac] ss:$12 sps:$4 sm:$0xff]  }
 0x4e7   :  { %4311 = vmatprep.subr.bf16.mxu0 %v6591_v55  ;;  %4393 = vmatprep.subr.bf16.mxu1 %v6594_v21  ;;  %v6652_v55 = vld [vmem:[#allocation8 + $0xa8] ss:$12 sps:$4 sm:$0xff]   ;;  %v6657_v21 = vld [vmem:[#allocation8 + $0xc4] ss:$12 sps:$4 sm:$0xff]  }
 0x4ea   :  { %4312 = vmatpush1.bf16.msra.mxu0 %v6589_v37  ;;  %4394 = vmatpush1.bf16.msra.mxu1 %v6592_v22  ;;  %v6655_v37 = vld [vmem:[#allocation8 + $0xc0] ss:$12 sps:$4 sm:$0xff]   ;;  %v6662_v22 = vld [vmem:[#allocation8 + $0xdc] ss:$12 sps:$4 sm:$0xff]  }
 0x4eb   :  { %4313 = vmatprep.subr.bf16.mxu0 %v6597_v31  ;;  %4395 = vmatprep.subr.bf16.mxu1 %v6600_v15  ;;  %v6660_v31 = vld [vmem:[#allocation8 + $0xd8] ss:$12 sps:$4 sm:$0xff]   ;;  %v6667_v15 = vld [vmem:[#allocation8 + $0xf4] ss:$12 sps:$4 sm:$0xff]  }
 0x4ee   :  { %4314 = vmatpush1.bf16.msra.mxu0 %v6595_v36  ;;  %4396 = vmatpush1.bf16.msra.mxu1 %v6598_v59  ;;  %v6665_v36 = vld [vmem:[#allocation8 + $0xf0] ss:$12 sps:$4 sm:$0xff]   ;;  %v6672_v59 = vld [vmem:[#allocation8 + $0x10c] ss:$12 sps:$4 sm:$0xff]  }
 0x4ef   :  { %4315 = vmatprep.subr.bf16.mxu0 %v6603_v38  ;;  %4397 = vmatprep.subr.bf16.mxu1 %v6606_v40  ;;  %v6670_v38 = vld [vmem:[#allocation8 + $0x108] ss:$12 sps:$4 sm:$0xff]   ;;  %v6677_v40 = vld [vmem:[#allocation8 + $0x124] ss:$12 sps:$4 sm:$0xff]  }
 0x4f2   :  { %4316 = vmatpush1.bf16.msra.mxu0 %v6601_v41  ;;  %4398 = vmatpush1.bf16.msra.mxu1 %v6604_v43  ;;  %v6675_v41 = vld [vmem:[#allocation8 + $0x120] ss:$12 sps:$4 sm:$0xff]   ;;  %v6682_v43 = vld [vmem:[#allocation8 + $0x13c] ss:$12 sps:$4 sm:$0xff]  }
 0x4f3   :  { %4317 = vmatprep.subr.bf16.mxu0 %v6609_v45  ;;  %4399 = vmatprep.subr.bf16.mxu1 %v6612_v46  ;;  %v6680_v45 = vld [vmem:[#allocation8 + $0x138] ss:$12 sps:$4 sm:$0xff]   ;;  %v6687_v46 = vld [vmem:[#allocation8 + $0x154] ss:$12 sps:$4 sm:$0xff]  }
 0x4f6   :  { %4318 = vmatpush1.bf16.msra.mxu0 %v6607_v47  ;;  %4400 = vmatpush1.bf16.msra.mxu1 %v6610_v57  ;;  %v6688_v47 = vld [vmem:[#allocation8 + $0x158] ss:$12 sps:$4 sm:$0xff]   ;;  %v6685_v57 = vld [vmem:[#allocation8 + $0x150] ss:$12 sps:$4 sm:$0xff]  }
 0x4f7   :  { %4319 = vmatprep.subr.bf16.mxu0 %v6615_v48  ;;  %4401 = vmatprep.subr.bf16.mxu1 %v6618_v58  ;;  %v6689_v48 = vld [vmem:[#allocation8 + $0x98] ss:$12 sps:$4 sm:$0xff]  }
 0x4f8   :  { %v6692_v58 = vld [vmem:[#allocation8 + $0x16c] ss:$12 sps:$4 sm:$0xff]  }
 0x4fa   :  { %4320 = vmatpush1.bf16.msra.mxu0 %v6613_v49  ;;  %4402 = vmatpush1.bf16.msra.mxu1 %v6616_v50  ;;  %v6693_v49 = vld [vmem:[#allocation8 + $0x170] ss:$12 sps:$4 sm:$0xff]   ;;  %v6690_v50 = vld [vmem:[#allocation8 + $0x168] ss:$12 sps:$4 sm:$0xff]  }
 0x4fb   :  { %4321 = vmatprep.subr.bf16.mxu0 %v6621_v51  ;;  %4403 = vmatprep.subr.bf16.mxu1 %v6624_v29  ;;  %v6697_v51 = vld [vmem:[#allocation8 + $0x184] ss:$12 sps:$4 sm:$0xff]   ;;  %v6698_v29 = vld [vmem:[#allocation8 + $0x248] ss:$12 sps:$4 sm:$0xff]  }
 0x4fe   :  { %4322 = vmatpush1.bf16.msra.mxu0 %v6619_v52  ;;  %4404 = vmatpush1.bf16.msra.mxu1 %v6622_v60  ;;  %v7453_v52 = vld [vmem:[%s7495_s10] sm:$0xf] }
 0x4ff   :  { %4323 = vmatprep.subr.bf16.mxu0 %v6627_v56  ;;  %4405 = vmatprep.subr.bf16.mxu1 %v6630_v44  ;;  %v3595_v60 = vrot.slane %v7453_v52, %v7214_v16  ;;  %v3599_v54 = vrot.slane %v7453_v52, %v7225_v26  ;;  %v3607_v56 = vrot.slane %v7453_v52, %v7228_v27  ;;  %v6702_v27 = vld [vmem:[#allocation8 + $0x19c] ss:$12 sps:$4 sm:$0xff]  }
 0x502   :  { %4324 = vmatpush1.bf16.msra.mxu0 %v6625_v28  ;;  %4406 = vmatpush1.bf16.msra.mxu1 %v6628_v53 }
 0x503   :  { %5081 = vmatprep.subr.bf16.mxu0 %v6633_v30  ;;  %5871 = vmatprep.subr.bf16.mxu1 %v6658_v63 }
 0x505   :  { %4326 = vmatmul.mubr.bf16.vlgmr.msra.gmra.mrb[76].mxu0 %v3460_v33  ;;  %4408 = vmatmul.mubr.bf16.vlgmr.msra.gmra.mrb[100].mxu1 %v3460_v33 }
 0x506   :  { %5082 = vmatpush1.bf16.msra.mxu0 %v6631_v2  ;;  %5872 = vmatpush3.bf16.msra.mxu1 %v6659_v32 }
 0x507   :  { %5083 = vmatprep.subr.bf16.mxu0 %v6636_v39  ;;  %5873 = vmatprep.subr.bf16.mxu1 %v6663_v3 }
 0x50a   :  { %5084 = vmatpush1.bf16.msra.mxu0 %v6634_v4  ;;  %5874 = vmatpush3.bf16.msra.mxu1 %v6664_v34 }
 0x50b   :  { %5085 = vmatprep.subr.bf16.mxu0 %v6639_v6  ;;  %5875 = vmatprep.subr.bf16.mxu1 %v6668_v35 }
 0x50e   :  { %5086 = vmatpush1.bf16.msra.mxu0 %v6637_v25  ;;  %5876 = vmatpush3.bf16.msra.mxu1 %v6669_v42  ;;  %v6695_v25 = vld [vmem:[#allocation8 + $0x180] ss:$12 sps:$4 sm:$0xff]   ;;  %v6699_v42 = vld [vmem:[#allocation8 + $0x188] ss:$12 sps:$4 sm:$0xff]  }
 0x50f   :  { %5087 = vmatprep.subr.bf16.mxu0 %v6642_v1  ;;  %5877 = vmatprep.subr.bf16.mxu1 %v6673_v7  ;;  %v6703_v7 = vld [vmem:[#allocation8 + $0x260] ss:$12 sps:$4 sm:$0xff]  }
 0x512   :  { %5088 = vmatpush1.bf16.msra.mxu0 %v6640_v8  ;;  %5878 = vmatpush3.bf16.msra.mxu1 %v6674_v5  ;;  %v6700_v5 = vld [vmem:[#allocation8 + $0x198] ss:$12 sps:$4 sm:$0xff]  }
 0x513   :  { %5089 = vmatprep.subr.bf16.mxu0 %v6645_v9  ;;  %5879 = vmatprep.subr.bf16.mxu1 %v6678_v61  ;;  %v6704_v9 = vld [vmem:[#allocation8 + $0x1a0] ss:$12 sps:$4 sm:$0xff]  }
 0x514   :  { %v6707_v61 = vld [vmem:[#allocation8 + $0x1b4] ss:$12 sps:$4 sm:$0xff]  }
 0x516   :  { %5090 = vmatpush1.bf16.msra.mxu0 %v6643_v11  ;;  %5880 = vmatpush3.bf16.msra.mxu1 %v6679_v12  ;;  %v6708_v11 = vld [vmem:[#allocation8 + $0x278] ss:$12 sps:$4 sm:$0xff]   ;;  %v6705_v12 = vld [vmem:[#allocation8 + $0x1b0] ss:$12 sps:$4 sm:$0xff]  }
 0x517   :  { %5091 = vmatprep.subr.bf16.mxu0 %v6648_v0  ;;  %5881 = vmatprep.subr.bf16.mxu1 %v6683_v13  ;;  %v6709_v0 = vld [vmem:[#allocation8 + $0x1b8] ss:$12 sps:$4 sm:$0xff]  }
 0x518   :  { %v6712_v13 = vld [vmem:[#allocation8 + $0x1cc] ss:$12 sps:$4 sm:$0xff]  }
 0x51a   :  { %5092 = vmatpush1.bf16.msra.mxu0 %v6646_v14  ;;  %5882 = vmatpush3.bf16.msra.mxu1 %v6684_v17  ;;  %v6713_v14 = vld [vmem:[#allocation8 + $0x290] ss:$12 sps:$4 sm:$0xff]   ;;  %v6710_v17 = vld [vmem:[#allocation8 + $0x1c8] ss:$12 sps:$4 sm:$0xff]  }
 0x51b   :  { %5093 = vmatprep.subr.bf16.mxu0 %v6651_v10  ;;  %5883 = vmatprep.subr.bf16.mxu1 %v6688_v47  ;;  %v6714_v10 = vld [vmem:[#allocation8 + $0x1d0] ss:$12 sps:$4 sm:$0xff]   ;;  %v6730_v47 = vld [vmem:[#allocation8 + $0x228] ss:$12 sps:$4 sm:$0xff]  }
 0x51e   :  { %5094 = vmatpush1.bf16.msra.mxu0 %v6649_v18  ;;  %5884 = vmatpush3.bf16.msra.mxu1 %v6689_v48  ;;  %v6717_v18 = vld [vmem:[#allocation8 + $0x1e4] ss:$12 sps:$4 sm:$0xff]  }
 0x51f   :  { %5095 = vmatprep.subr.bf16.mxu0 %v6654_v20  ;;  %5885 = vmatprep.subr.bf16.mxu1 %v6693_v49  ;;  %v6718_v20 = vld [vmem:[#allocation8 + $0x2a8] ss:$12 sps:$4 sm:$0xff]   ;;  %v6735_v49 = vld [vmem:[#allocation8 + $0x240] ss:$12 sps:$4 sm:$0xff]  }
 0x522   :  { %5096 = vmatpush1.bf16.msra.mxu0 %v6652_v55  ;;  %5886 = vmatpush3.bf16.msra.mxu1 %v6694_v23  ;;  %v6715_v55 = vld [vmem:[#allocation8 + $0x1e0] ss:$12 sps:$4 sm:$0xff]   ;;  %v6740_v23 = vld [vmem:[#allocation8 + $0x25c] ss:$12 sps:$4 sm:$0xff]  }
 0x523   :  { %5097 = vmatprep.subr.bf16.mxu0 %v6657_v21  ;;  %5893 = vmatprep.subr.bf16.mxu1 %v6698_v29  ;;  %v6719_v21 = vld [vmem:[#allocation8 + $0x1e8] ss:$12 sps:$4 sm:$0xff]  }
 0x524   :  { %v6743_v29 = vld [vmem:[#allocation8 + $0x274] ss:$12 sps:$4 sm:$0xff]  }
 0x526   :  { %5098 = vmatpush1.bf16.msra.mxu0 %v6655_v37  ;;  %v6722_v37 = vld [vmem:[#allocation8 + $0x1fc] ss:$12 sps:$4 sm:$0xff]  }
 0x527   :  { %5099 = vmatprep.subr.bf16.mxu0 %v6662_v22  ;;  %v6723_v22 = vld [vmem:[#allocation8 + $0x2c0] ss:$12 sps:$4 sm:$0xff]  }
 0x52a   :  { %5100 = vmatpush1.bf16.msra.mxu0 %v6660_v31  ;;  %v6720_v31 = vld [vmem:[#allocation8 + $0x1f8] ss:$12 sps:$4 sm:$0xff]  }
 0x52b   :  { %5101 = vmatprep.subr.bf16.mxu0 %v6667_v15  ;;  %v6724_v15 = vld [vmem:[#allocation8 + $0x200] ss:$12 sps:$4 sm:$0xff]  }
 0x52e   :  { %5102 = vmatpush1.bf16.msra.mxu0 %v6665_v36  ;;  %v3603_v36 = vrot.slane %v7453_v52, %v7217_v19  ;;  %v6741_v52 = vld [vmem:[#allocation8 + $0x270] ss:$12 sps:$4 sm:$0xff]  }
 0x52f   :  { %5103 = vmatprep.subr.bf16.mxu0 %v6672_v59  ;;  %v6727_v59 = vld [vmem:[#allocation8 + $0x214] ss:$12 sps:$4 sm:$0xff]  }
 0x532   :  { %5104 = vmatpush1.bf16.msra.mxu0 %v6670_v38  ;;  %v6728_v38 = vld [vmem:[#allocation8 + $0x2d8] ss:$12 sps:$4 sm:$0xff]  }
 0x533   :  { %5105 = vmatprep.subr.bf16.mxu0 %v6677_v40  ;;  %v6725_v40 = vld [vmem:[#allocation8 + $0x210] ss:$12 sps:$4 sm:$0xff]  }
 0x536   :  { %5106 = vmatpush1.bf16.msra.mxu0 %v6675_v41  ;;  %v6729_v41 = vld [vmem:[#allocation8 + $0x218] ss:$12 sps:$4 sm:$0xff]  }
 0x537   :  { %5107 = vmatprep.subr.bf16.mxu0 %v6682_v43 }
 0x53a   :  { %5108 = vmatpush1.bf16.msra.mxu0 %v6680_v45  ;;  %v6732_v45 = vld [vmem:[#allocation8 + $0x22c] ss:$12 sps:$4 sm:$0xff]  }
 0x53b   :  { %5109 = vmatprep.subr.bf16.mxu0 %v6687_v46  ;;  %v6733_v46 = vld [vmem:[#allocation8 + $0x2f0] ss:$12 sps:$4 sm:$0xff]  }
 0x53e   :  { %5110 = vmatpush1.bf16.msra.mxu0 %v6685_v57  ;;  %v6734_v57 = vld [vmem:[#allocation8 + $0x230] ss:$12 sps:$4 sm:$0xff]  }
 0x53f   :  { %5111 = vmatprep.subr.bf16.mxu0 %v6692_v58  ;;  %v6737_v58 = vld [vmem:[#allocation8 + $0x244] ss:$12 sps:$4 sm:$0xff]  }
 0x542   :  { %5112 = vmatpush1.bf16.msra.mxu0 %v6690_v50 }
 0x543   :  { %5122 = vmatprep.subr.bf16.mxu0 %v6697_v51  ;;  %v6738_v51 = vld [vmem:[#allocation8 + $0x258] ss:$12 sps:$4 sm:$0xff]  }
 0x5d8   :  { %v4327_v44 = vpop.f32.mrb[76].mxu0  ;;  %v7461_v28 = vpop.f32.mrb[100].mxu1 }
 0x5d9   :  { %v5987_v53 = vadd.f32 %v4327_v44, %v3595_v60  ;;  %v4329_v62 = vpop.f32.mrb[77].mxu0  ;;  %v4411_v30 = vpop.f32.mrb[101].mxu1  ;;  %v5989_v43 = vadd.f32 %v7461_v28, %v3603_v36  ;;  %v6746_v60 = vld [vmem:[#allocation8 + $0x28c] ss:$12 sps:$4 sm:$0xff]   ;;  %v6752_v28 = vld [vmem:[#allocation8 + $0x2bc] ss:$12 sps:$4 sm:$0xff]  }
 0x5da   :  { %v5988_v63 = vadd.f32 %v4329_v62, %v3599_v54  ;;  %v5990_v2 = vadd.f32 %v4411_v30, %v3607_v56  ;;  %v4331_v32 = vpop.f32.mrb[78].mxu0  ;;  %v4413_v33 = vpop.f32.mrb[102].mxu1  ;;  %v6744_v54 = vld [vmem:[#allocation8 + $0x288] ss:$12 sps:$4 sm:$0xff]   ;;  %v6749_v56 = vld [vmem:[#allocation8 + $0x2a4] ss:$12 sps:$4 sm:$0xff]  }
 0x5db   :  { %v4416_v39 = vmax.f32 %v5987_v53, 0.0  ;;  %v4332_v3 = vpop.f32.mrb[79].mxu0  ;;  %v4414_v4 = vpop.f32.mrb[103].mxu1  ;;  %v4418_v48 = vmax.f32 %v5989_v43, 0.0  ;;  %v6747_v44 = vld [vmem:[#allocation8 + $0x2a0] ss:$12 sps:$4 sm:$0xff]  }
 0x5dc   :  { %v4417_v34 = vmax.f32 %v5988_v63, 0.0  ;;  %v4419_v6 = vmax.f32 %v5990_v2, 0.0  ;;  %v6750_v53 = vld [vmem:[#allocation8 + $0x2b8] ss:$12 sps:$4 sm:$0xff]   ;;  %v6755_v62 = vld [vmem:[#allocation8 + $0x2d4] ss:$12 sps:$4 sm:$0xff]  }
 0x5dd   :  { %v4420_v1 = vpack.c.bf16 %v4416_v39, %v4416_v39  ;;  %v4422_v50 = vpack.c.bf16 %v4418_v48, %v4418_v48  ;;  %v6753_v30 = vld [vmem:[#allocation8 + $0x2d0] ss:$12 sps:$4 sm:$0xff]   ;;  %v6758_v63 = vld [vmem:[#allocation8 + $0x2ec] ss:$12 sps:$4 sm:$0xff]   ;;  %v6756_v2 = vld [vmem:[#allocation8 + $0x2e8] ss:$12 sps:$4 sm:$0xff]  }
 0x5de   :  { %v4421_v35 = vpack.c.bf16 %v4417_v34, %v4417_v34  ;;  %v4423_v8 = vpack.c.bf16 %v4419_v6, %v4419_v6  ;;  %v4552_v34 = vld [vmem:[%s7497_s12] sm:$0x7]  ;;  %s6891_s12 = smov [#allocation10]  }
 0x5df   :  { %v4565_v6 = vrot.slane %v4552_v34, %v7217_v19  ;;  %s5270_s5 = sshll.u32 %s6891_s12, 4  ;;  %s5271_s5 = int_to_ptr.vmem [resolvable:$true] %s5270_s5 }
 0x5e0   :  { %5113 = vmatprep.mubr.bf16.mxu0 %v4421_v35  ;;  %5195 = vmatprep.mubr.bf16.mxu1 %v4421_v35  ;;  %s6847_s23 = scalar_lea.vmem %s5271_s5, 96  ;;  %p6852_p5 = scmp.lt.s32.totalorder %s5271_s5, %s5271_s5 }
 0x5e1   :  { %5114 = vmatmul.mubr.bf16.vlgmr.msra.gmra.mrb[80].mxu0 %v4420_v1  ;;  %5196 = vmatmul.mubr.bf16.vlgmr.msra.gmra.mrb[104].mxu1 %v4420_v1  ;;  %p6848_p4 = scmp.ne.s32.totalorder %s5271_s5, %s6847_s23  ;;  %p6853_p6 = scmp.lt.s32.totalorder %s6847_s23, %s6847_s23 }
 0x5e2   :  { %5123 = vmatpush1.bf16.msra.mxu0 %v6695_v25  ;;  %5894 = vmatpush3.bf16.msra.mxu1 %v6699_v42 }
 0x5e3   :  { %5154 = vmatprep.mubr.bf16.mxu0 %v4423_v8  ;;  %5235 = vmatprep.mubr.bf16.mxu1 %v4423_v8  ;;  %p6854_p7 = por %p6853_p6, %p6852_p5 }
 0x5e4   :  { %5124 = vmatprep.subr.bf16.mxu0 %v6702_v27  ;;  %5895 = vmatprep.subr.bf16.mxu1 %v6703_v7 }
 0x5e5   :  { %p6855_p8 = pnand %p6854_p7, %p6848_p4 }
 0x5e6   :  { %5125 = vmatpush1.bf16.msra.mxu0 %v6700_v5  ;;  %5896 = vmatpush3.bf16.msra.mxu1 %v6704_v9  ;;  %v6890_v5 = vmov 1983009808  }
 0x5e7   :  { %5126 = vmatprep.subr.bf16.mxu0 %v6707_v61  ;;  %5897 = vmatprep.subr.bf16.mxu1 %v6708_v11  ;;  %v5248_v9 = vunpack.c.l.s4 %v6890_v5  ;;  %v4557_v61 = vrot.slane %v4552_v34, %v7214_v16 }
 0x5e9   :  { %v5249_v11 = vunpack.c.0.s8 %v5248_v9 }
 0x5ea   :  { %5127 = vmatpush1.bf16.msra.mxu0 %v6705_v12  ;;  %5898 = vmatpush3.bf16.msra.mxu1 %v6709_v0  ;;  %v4561_v12 = vrot.slane %v4552_v34, %v7225_v26 }
 0x5eb   :  { %5128 = vmatprep.subr.bf16.mxu0 %v6712_v13  ;;  %5899 = vmatprep.subr.bf16.mxu1 %v6713_v14 }
 0x5ee   :  { %5129 = vmatpush1.bf16.msra.mxu0 %v6710_v17  ;;  %5900 = vmatpush3.bf16.msra.mxu1 %v6714_v10  ;;  %v5252_v17 = vsub.s32 %v5249_v11, %v7211_v24 }
 0x5ef   :  { %5130 = vmatprep.subr.bf16.mxu0 %v6717_v18  ;;  %5901 = vmatprep.subr.bf16.mxu1 %v6718_v20 }
 0x5f2   :  { %5131 = vmatpush1.bf16.msra.mxu0 %v6715_v55  ;;  %5902 = vmatpush3.bf16.msra.mxu1 %v6719_v21 }
 0x5f3   :  { %5132 = vmatprep.subr.bf16.mxu0 %v6722_v37  ;;  %5903 = vmatprep.subr.bf16.mxu1 %v6723_v22 }
 0x5f6   :  { %5133 = vmatpush1.bf16.msra.mxu0 %v6720_v31  ;;  %5904 = vmatpush3.bf16.msra.mxu1 %v6724_v15 }
 0x5f7   :  { %5134 = vmatprep.subr.bf16.mxu0 %v6727_v59  ;;  %5905 = vmatprep.subr.bf16.mxu1 %v6728_v38 }
 0x5fa   :  { %5135 = vmatpush1.bf16.msra.mxu0 %v6725_v40  ;;  %5906 = vmatpush3.bf16.msra.mxu1 %v6729_v41 }
 0x5fb   :  { %5136 = vmatprep.subr.bf16.mxu0 %v6732_v45  ;;  %5907 = vmatprep.subr.bf16.mxu1 %v6733_v46 }
 0x5fe   :  { %5137 = vmatpush1.bf16.msra.mxu0 %v6730_v47  ;;  %5908 = vmatpush3.bf16.msra.mxu1 %v6734_v57 }
 0x5ff   :  { %5138 = vmatprep.subr.bf16.mxu0 %v6737_v58 }
 0x601   :  { %5236 = vmatmul.mubr.bf16.vlgmr.msra.gmra.mrb[108].mxu1 %v4422_v50 }
 0x602   :  { %5139 = vmatpush1.bf16.msra.mxu0 %v6735_v49 }
 0x603   :  { %5140 = vmatprep.subr.bf16.mxu0 %v6740_v23 }
 0x606   :  { %5141 = vmatpush1.bf16.msra.mxu0 %v6738_v51 }
 0x607   :  { %5142 = vmatprep.subr.bf16.mxu0 %v6743_v29 }
 0x60a   :  { %5143 = vmatpush1.bf16.msra.mxu0 %v6741_v52 }
 0x60b   :  { %5144 = vmatprep.subr.bf16.mxu0 %v6746_v60 }
 0x60e   :  { %5145 = vmatpush1.bf16.msra.mxu0 %v6744_v54 }
 0x60f   :  { %5146 = vmatprep.subr.bf16.mxu0 %v6749_v56 }
 0x612   :  { %5147 = vmatpush1.bf16.msra.mxu0 %v6747_v44 }
 0x613   :  { %5148 = vmatprep.subr.bf16.mxu0 %v6752_v28 }
 0x616   :  { %5149 = vmatpush1.bf16.msra.mxu0 %v6750_v53 }
 0x617   :  { %5150 = vmatprep.subr.bf16.mxu0 %v6755_v62 }
 0x61a   :  { %5151 = vmatpush1.bf16.msra.mxu0 %v6753_v30 }
 0x61b   :  { %5152 = vmatprep.subr.bf16.mxu0 %v6758_v63 }
 0x61e   :  { %5153 = vmatpush1.bf16.msra.mxu0 %v6756_v2 }
 0x621   :  { %5155 = vmatmul.mubr.bf16.vlgmr.msra.gmra.mrb[80].mxu0 %v4422_v50 }
 0x6b4   :  { %v5887_v32 = vpop.f32.mrb[104].mxu1 }
 0x6b5   :  { %v5888_v33 = vpop.f32.mrb[105].mxu1 }
 0x6b6   :  { %v5889_v39 = vadd.f32 %v5888_v33, %v5887_v32  ;;  %v5890_v3 = vpop.f32.mrb[106].mxu1 }
 0x6b7   :  { %v5891_v4 = vpop.f32.mrb[107].mxu1 }
 0x6b8   :  { %v5198_v42 = vadd.f32 %v5889_v39, %v4565_v6 }
 0x6d4   :  { %v5909_v35 = vpop.f32.mrb[108].mxu1 }
 0x6d5   :  { %v5910_v25 = vpop.f32.mrb[109].mxu1 }
 0x6d6   :  { %v5911_v1 = vadd.f32 %v5910_v25, %v5909_v35  ;;  %v5912_v27 = vpop.f32.mrb[110].mxu1 }
 0x6d7   :  { %v5913_v7 = vpop.f32.mrb[111].mxu1 }
 0x6d8   :  { %v5238_v8 = vadd.f32 %v5911_v1, %v5198_v42 }
 0x6da   :  { %v5260_v55 = vrot.slane %v5238_v8, %v5252_v17 }
 0x6f4   :  { %v5156_v0 = vpop.f32.mrb[80].mxu0 }
 0x6f5   :  { %v5991_v13 = vadd.f32 %v5156_v0, %v4557_v61  ;;  %v5158_v14 = vpop.f32.mrb[81].mxu0 }
 0x6f6   :  { %v5992_v19 = vadd.f32 %v5158_v14, %v4561_v12  ;;  %v5160_v10 = vpop.f32.mrb[82].mxu0 }
 0x6f7   :  { %v5161_v18 = vpop.f32.mrb[83].mxu0 }
 0x6f8   :  { %v5246_v20 = vcombine.low %v5991_v13, %v5992_v19 }
 0x6fa   :  { %v5253_v21 = vrot.slane %v5246_v20, %v5252_v17 }
 0x6fc   :  { %v5261_v37 = vcombine.low %v5253_v21, %v5260_v55 }
 0x6fe   :  { %5263 = vst [vmem:[#allocation10] sm:$0x3f] %v5261_v37 }
 0x6ff   :  { %6858 = shalt.err (!%p6855_p8)
}
 0x700   :  { %s6859_s16 = scalar_lea.hbm %s7498_s13, 96 }
 0x701   :  { %p6860_p9 = scmp.ne.s32.totalorder %s7498_s13, %s6859_s16  ;;  %p6863_p10 = scmp.lt.u32.totalorder %s6859_s16, %s7498_s13 }
 0x703   :  { %p6865_p11 = pnand %p6863_p10, %p6860_p9 }
 0x705   :  { %6868 = shalt.err (!%p6865_p11)
}
 0x706   :  { %5273 = dma.vmem_to_hbm [thread:$0]  %s5271_s5, 96, %s7498_s13, [#allocation4]  }
 0x707   :  { %6875 = dma.done.wait [#allocation4], 96  }
 0x708   :  { %6876 = vsyncadd [#allocation4], 4294967200 }
 0x709   :  { %5277 = vsyncpa [#allocation3], 1 }
 0x70a   :  { %5278 = vsyncpa [#allocation6], 1 }
 0x70b   :  { %5279 = vsyncpa [#allocation9], 1 }
 0x70c   :  { %5280 = vsyncpa [#allocation4], 1 }

</bundles_post_ra>
